<compile_context>
chip_gen: v5e
topology: v5e:2x2
jax: 0.10.0
libtpu: 0.0.40
codegen_flags: <defaults>
</compile_context>

<pallas_src>
import numpy as np
import jax
import jax.numpy as jnp
from jax import lax
from jax.experimental import pallas as pl
from jax.experimental.pallas import tpu as pltpu

F1, D2, KW1, KW2 = 16, 32, 64, 16   # conv1 filters, depthwise filters, conv1/sep widths


def _elu(x):
    # ELU(alpha=1); clamp before exp so the unselected branch never produces inf.
    return jnp.where(x > 0, x, jnp.exp(jnp.minimum(x, 0.0)) - 1.0)


def eegnet_kernel(x_ref, w1_ref, b1_ref, wd_ref, b2_ref, p1_ref, ws_ref, b3_ref,
                  p2_ref, wfc_ref, bfc_ref, out_ref, g_sc, zi_sc):
    f32 = jnp.float32
    bf16 = jnp.bfloat16
    C = x_ref.shape[1]          # Chans
    T1 = g_sc.shape[1]          # conv1 output length = Samples + 1
    T3 = zi_sc.shape[1]         # separable-conv output length = T1//4 + 1

    # ---- conv1 im2col built in-kernel (tap-major rows) from the raw padded input -------
    # g_sc[k*C + c, t] = xpad[c, t + k].  64 static lane-shifted copies; scratch kept f32
    # so the C-row sublane offsets stay (8,128)-tile aligned; cast to bf16 once for MXU.
    x = x_ref[0].astype(f32)                                           # (C, S+64)
    for k in range(KW1):
        g_sc[k * C:(k + 1) * C, :] = x[:, k:k + T1]

    # ---- conv1 + bn1 + ELU: single MXU dot, K = KW1*C -----------------------------------
    a1 = _elu(jnp.dot(w1_ref[...], g_sc[...].astype(bf16),
                      preferred_element_type=f32) + b1_ref[...])       # (F1*C, T1)

    # ---- depthwiseConv + bn2 + ELU: single MXU dot, K = F1*C ----------------------------
    a2 = _elu(jnp.dot(wd_ref[...], a1.astype(bf16),
                      preferred_element_type=f32) + b2_ref[...])       # (D2, T1)

    # ---- pool1 (avg 1x4) + zero-pad(8 each side) via a per-example (T1, T2+16) operator -
    z = jnp.dot(a2.astype(bf16), p1_ref[...],
                preferred_element_type=f32)                            # (D2, T2+16)

    # ---- stack the 16 separable-conv tap views on sublanes (static lane slices) ---------
    for k in range(KW2):
        zi_sc[k * D2:(k + 1) * D2, :] = z[:, k:k + T3]

    # ---- separableConv + bn3 + ELU folded into ONE K = 16*32 = 512 MXU dot --------------
    a3 = _elu(jnp.dot(ws_ref[...], zi_sc[...].astype(bf16),
                      preferred_element_type=f32) + b3_ref[...])       # (D2, T3)

    # ---- pool2 (avg 1x8) ----------------------------------------------------------------
    p4 = jnp.dot(a3.astype(bf16), p2_ref[...],
                 preferred_element_type=f32)                           # (D2, T4)

    # ---- flatten (channel-major, matching torch) + fc (tiny; f32 for final accuracy) ----
    h = jnp.sum(wfc_ref[...] * p4[None, :, :], axis=1)                 # (ncls, T4)
    out_ref[0, 0, :] = jnp.sum(h, axis=1) + bfc_ref[:, 0]              # (ncls,)


def init_params(key, num_classes, chans, samples):
    """Deterministic synthetic parameters (PyTorch layout) with eval-mode BN folded."""
    eps = 1e-5
    std = 0.1
    ks = jax.random.split(key, 20)
    w1 = jax.random.normal(ks[0], (16, 1, 1, 64), jnp.float32) * std
    g1 = jax.random.uniform(ks[1], (16,), jnp.float32, 0.5, 1.5)
    be1 = jax.random.normal(ks[2], (16,), jnp.float32) * std
    m1 = jax.random.normal(ks[3], (16,), jnp.float32) * std
    v1 = jax.random.uniform(ks[4], (16,), jnp.float32, 0.5, 1.5)
    wd = jax.random.normal(ks[5], (32, 1, chans, 1), jnp.float32) * std
    g2 = jax.random.uniform(ks[6], (32,), jnp.float32, 0.5, 1.5)
    be2 = jax.random.normal(ks[7], (32,), jnp.float32) * std
    m2 = jax.random.normal(ks[8], (32,), jnp.float32) * std
    v2 = jax.random.uniform(ks[9], (32,), jnp.float32, 0.5, 1.5)
    ws = jax.random.normal(ks[10], (32, 32, 1, 16), jnp.float32) * std
    g3 = jax.random.uniform(ks[11], (32,), jnp.float32, 0.5, 1.5)
    be3 = jax.random.normal(ks[12], (32,), jnp.float32) * std
    m3 = jax.random.normal(ks[13], (32,), jnp.float32) * std
    v3 = jax.random.uniform(ks[14], (32,), jnp.float32, 0.5, 1.5)
    wfc = jax.random.normal(ks[15], (num_classes, 32 * (samples // 32)), jnp.float32) * std
    bfc = jax.random.normal(ks[16], (num_classes,), jnp.float32) * std

    s1 = g1 / jnp.sqrt(v1 + eps); sh1 = be1 - m1 * s1
    s2 = g2 / jnp.sqrt(v2 + eps); sh2 = be2 - m2 * s2
    s3 = g3 / jnp.sqrt(v3 + eps); sh3 = be3 - m3 * s3
    return dict(w1=w1, s1=s1, sh1=sh1, wd=wd, s2=s2, sh2=sh2,
                ws=ws, s3=s3, sh3=sh3, wfc=wfc, bfc=bfc)


def prepare_kernel_params(raw, num_classes, chans, samples):
    """Fold eval-mode BN into the weights and reshape into small per-example operands."""
    C = chans
    T1 = samples + 1
    T2 = T1 // 4
    T3 = T2 + 1
    T4 = T3 // 8
    assert T4 == samples // 32, "Samples must make the pooled width match the fc input"
    bf16 = jnp.bfloat16

    # conv1 (bn1 scale folded), block-diagonal over channels so output rows are (f, c);
    # columns ordered tap-major (k, c) to match the in-kernel im2col layout.
    w1s = raw["w1"][:, 0, 0, :] * raw["s1"][:, None]                         # (F1, KW1)
    eye_c = jnp.eye(C, dtype=jnp.float32)
    w1big = (w1s[:, None, :, None] * eye_c[None, :, None, :]).reshape(F1 * C, KW1 * C)
    b1col = jnp.repeat(raw["sh1"], C).reshape(F1 * C, 1)

    # depthwise conv (bn2 scale folded): rows d, cols (f, c), nonzero only where f == d//2.
    wd2 = raw["wd"][:, 0, :, 0] * raw["s2"][:, None]                         # (D2, C)
    onehot = jnp.repeat(jnp.eye(F1, dtype=jnp.float32), 2, axis=0)           # (D2, F1)
    wdfull = (onehot[:, :, None] * wd2[:, None, :]).reshape(D2, F1 * C)
    b2col = raw["sh2"].reshape(D2, 1)

    # pool1 (avg 1x4, floor) + zero-pad(8 each side) as a single per-example operator.
    # NOTE: deliberately drops the last conv1 sample (T1 = S+1 truncated to 4*T2),
    # matching AvgPool2d's floor behaviour in the reference - do not "fix".
    p1op = np.zeros((T1, T2 + KW2), np.float32)
    for j in range(T2):
        p1op[4 * j:4 * j + 4, j + 8] = 0.25

    # separableConv taps (bn3 scale folded), concatenated tap-major along K -> (32, 512).
    ws_k = jnp.transpose(raw["ws"][:, :, 0, :] * raw["s3"][:, None, None], (0, 2, 1))
    ws_cat = ws_k.reshape(D2, KW2 * D2)
    b3col = raw["sh3"].reshape(D2, 1)

    # pool2 (avg 1x8, floor) per-example operator.
    p2op = np.zeros((T3, T4), np.float32)
    for v in range(T4):
        p2op[8 * v:8 * v + 8, v] = 1.0 / 8.0

    # fc weights in channel-major (ncls, D2, T4) layout matching torch's flatten.
    wfc3 = raw["wfc"].reshape(num_classes, D2, T4)
    bfc = raw["bfc"].reshape(num_classes, 1)

    return (w1big.astype(bf16), b1col, wdfull.astype(bf16), b2col,
            jnp.asarray(p1op, bf16), ws_cat.astype(bf16), b3col,
            jnp.asarray(p2op, bf16), wfc3, bfc)


def _eegnet_forward_impl(x, kp):
    # x: (B, 1, Chans, Samples) float32 (NCHW, like PyTorch).
    (w1big, b1col, wdfull, b2col, p1op, ws_cat, b3col, p2op, wfc3, bfc) = kp
    B, _, C, S = x.shape
    T1 = S + 1
    T3 = p2op.shape[0]
    ncls = bfc.shape[0]

    # Zero-pad time by 32 each side (conv1 padding) and stream the RAW input in bf16 -
    # no wrapper-side im2col, so HBM traffic is ~64x lower than before.
    xpad = jnp.pad(x[:, 0], ((0, 0), (0, 0), (32, 32))).astype(jnp.bfloat16)  # (B, C, S+64)

    def const_spec(a):
        # Grid-invariant operand: full block, constant block index -> DMA'd once.
        # (At the real model size these could also be pipeline_mode=pl.Buffered(1).)
        r = a.ndim
        return pl.BlockSpec(a.shape, lambda b, r=r: (0,) * r)

    in_specs = [pl.BlockSpec((1, C, S + KW1), lambda b: (b, 0, 0))]
    in_specs += [const_spec(a) for a in kp]

    out = pl.pallas_call(
        eegnet_kernel,
        out_shape=jax.ShapeDtypeStruct((B, 1, ncls), jnp.float32),
        grid=(B,),                                   # one example per step; B >= 2 -> both v7x TCs
        in_specs=in_specs,
        out_specs=pl.BlockSpec((1, 1, ncls), lambda b: (b, 0, 0)),
        scratch_shapes=[pltpu.VMEM((KW1 * C, T1), jnp.float32),   # in-kernel conv1 im2col
                        pltpu.VMEM((KW2 * D2, T3), jnp.float32)], # stacked sep-conv taps
        compiler_params=pltpu.CompilerParams(
            dimension_semantics=("parallel",),
            vmem_limit_bytes=32 * 1024 * 1024),
    )(xpad, *kp)
    return out[:, 0, :]


eegnet_forward = jax.jit(_eegnet_forward_impl)


def reference_forward(x, raw, samples):
    """Pure-JAX f32 mirror of the PyTorch forward (eval mode) for validation."""
    dn = ("NCHW", "OIHW", "NCHW")
    hp = lax.Precision.HIGHEST
    B = x.shape[0]

    y = lax.conv_general_dilated(x, raw["w1"], (1, 1), [(0, 0), (32, 32)],
                                 dimension_numbers=dn, precision=hp)
    y = y * raw["s1"][None, :, None, None] + raw["sh1"][None, :, None, None]
    y = jax.nn.elu(y)

    y = lax.conv_general_dilated(y, raw["wd"], (1, 1), [(0, 0), (0, 0)],
                                 dimension_numbers=dn, feature_group_count=16, precision=hp)
    y = y * raw["s2"][None, :, None, None] + raw["sh2"][None, :, None, None]
    y = jax.nn.elu(y)

    T1 = samples + 1
    T2 = T1 // 4
    y = y[..., :T2 * 4].reshape(B, 32, 1, T2, 4).mean(-1)

    y = lax.conv_general_dilated(y, raw["ws"], (1, 1), [(0, 0), (8, 8)],
                                 dimension_numbers=dn, precision=hp)
    y = y * raw["s3"][None, :, None, None] + raw["sh3"][None, :, None, None]
    y = jax.nn.elu(y)

    T3 = T2 + 1
    T4 = T3 // 8
    y = y[..., :T4 * 8].reshape(B, 32, 1, T4, 8).mean(-1)

    flat = y.reshape(B, -1)
    return jnp.dot(flat, raw["wfc"].T, precision=hp) + raw["bfc"][None, :]


if __name__ == "__main__":
    # Small shapes consistent with the module's forward: Chans=8, Samples=128, 4 classes.
    B, chans, samples, num_classes = 2, 8, 128, 4

    key = jax.random.PRNGKey(0)
    kx, kparam = jax.random.split(key)
    x = jax.random.normal(kx, (B, 1, chans, samples), jnp.float32)

    raw = init_params(kparam, num_classes, chans, samples)
    kp = prepare_kernel_params(raw, num_classes, chans, samples)

    out = eegnet_forward(x, kp)
    out = jax.block_until_ready(out)

    ref = reference_forward(x, raw, samples)
    # bf16 matmul operands -> slightly looser tolerance vs the f32 reference.
    np.testing.assert_allclose(np.asarray(out), np.asarray(ref), rtol=2e-2, atol=2e-2)

    print("KERNEL_OK")
</pallas_src>

<mosaic_0001>
module attributes {stable_mosaic.version = 11 : i64} {
  func.func @eegnet_kernel(%arg0: i32, %arg1: memref<1x8x192xbf16, #tpu.memory_space<vmem>>, %arg2: memref<128x512xbf16, #tpu.memory_space<vmem>>, %arg3: memref<128x1xf32, #tpu.memory_space<vmem>>, %arg4: memref<32x128xbf16, #tpu.memory_space<vmem>>, %arg5: memref<32x1xf32, #tpu.memory_space<vmem>>, %arg6: memref<129x48xbf16, #tpu.memory_space<vmem>>, %arg7: memref<32x512xbf16, #tpu.memory_space<vmem>>, %arg8: memref<32x1xf32, #tpu.memory_space<vmem>>, %arg9: memref<33x4xbf16, #tpu.memory_space<vmem>>, %arg10: memref<4x32x4xf32, #tpu.memory_space<vmem>>, %arg11: memref<4x1xf32, #tpu.memory_space<vmem>>, %arg12: memref<1x1x4xf32, #tpu.memory_space<vmem>>, %arg13: memref<512x129xf32, #tpu.memory_space<vmem>>, %arg14: memref<512x33xf32, #tpu.memory_space<vmem>>) attributes {dimension_semantics = [#tpu.dimension_semantics<parallel>], iteration_bounds = array<i64: 2>, scalar_prefetch = 0 : i64, scratch_operands = 2 : i64, tpu.core_type = #tpu.core_type<tc>, window_params = [{transform_indices = @transform_0, window_bounds = array<i64: 1, 8, 192>}, {pipeline_mode = #tpu.pipeline_mode<synchronous>, transform_indices = @transform_1, window_bounds = array<i64: 128, 512>}, {pipeline_mode = #tpu.pipeline_mode<synchronous>, transform_indices = @transform_2, window_bounds = array<i64: 128, 1>}, {pipeline_mode = #tpu.pipeline_mode<synchronous>, transform_indices = @transform_3, window_bounds = array<i64: 32, 128>}, {pipeline_mode = #tpu.pipeline_mode<synchronous>, transform_indices = @transform_4, window_bounds = array<i64: 32, 1>}, {pipeline_mode = #tpu.pipeline_mode<synchronous>, transform_indices = @transform_5, window_bounds = array<i64: 129, 48>}, {pipeline_mode = #tpu.pipeline_mode<synchronous>, transform_indices = @transform_6, window_bounds = array<i64: 32, 512>}, {pipeline_mode = #tpu.pipeline_mode<synchronous>, transform_indices = @transform_7, window_bounds = array<i64: 32, 1>}, {pipeline_mode = #tpu.pipeline_mode<synchronous>, transform_indices = @transform_8, window_bounds = array<i64: 33, 4>}, {pipeline_mode = #tpu.pipeline_mode<synchronous>, transform_indices = @transform_9, window_bounds = array<i64: 4, 32, 4>}, {pipeline_mode = #tpu.pipeline_mode<synchronous>, transform_indices = @transform_10, window_bounds = array<i64: 4, 1>}, {transform_indices = @transform_11, window_bounds = array<i64: 1, 1, 4>}]} {
    %c0 = arith.constant 0 : index
    %c0_0 = arith.constant 0 : index
    %c0_1 = arith.constant 0 : index
    %0 = vector.load %arg1[%c0, %c0_0, %c0_1] : memref<1x8x192xbf16, #tpu.memory_space<vmem>>, vector<1x8x192xbf16>
    %1 = vector.shape_cast %0 : vector<1x8x192xbf16> to vector<8x192xbf16>
    %2 = arith.extf %1 : vector<8x192xbf16> to vector<8x192xf32>
    %3 = vector.extract_strided_slice %2 {offsets = [0, 0], sizes = [8, 129], strides = [1, 1]} : vector<8x192xf32> to vector<8x129xf32>
    %c0_2 = arith.constant 0 : index
    %c0_3 = arith.constant 0 : index
    %4 = vector.load %arg13[%c0_2, %c0_3] : memref<512x129xf32, #tpu.memory_space<vmem>>, vector<8x129xf32>
    tpu.vector_store %arg13[%c0_2, %c0_3], %3 {strides = array<i32>} : memref<512x129xf32, #tpu.memory_space<vmem>>, vector<8x129xf32>,
    %5 = vector.extract_strided_slice %2 {offsets = [0, 1], sizes = [8, 129], strides = [1, 1]} : vector<8x192xf32> to vector<8x129xf32>
    %c8 = arith.constant 8 : index
    %c0_4 = arith.constant 0 : index
    %6 = vector.load %arg13[%c8, %c0_4] : memref<512x129xf32, #tpu.memory_space<vmem>>, vector<8x129xf32>
    tpu.vector_store %arg13[%c8, %c0_4], %5 {strides = array<i32>} : memref<512x129xf32, #tpu.memory_space<vmem>>, vector<8x129xf32>,
    %7 = vector.extract_strided_slice %2 {offsets = [0, 2], sizes = [8, 129], strides = [1, 1]} : vector<8x192xf32> to vector<8x129xf32>
    %c16 = arith.constant 16 : index
    %c0_5 = arith.constant 0 : index
    %8 = vector.load %arg13[%c16, %c0_5] : memref<512x129xf32, #tpu.memory_space<vmem>>, vector<8x129xf32>
    tpu.vector_store %arg13[%c16, %c0_5], %7 {strides = array<i32>} : memref<512x129xf32, #tpu.memory_space<vmem>>, vector<8x129xf32>,
    %9 = vector.extract_strided_slice %2 {offsets = [0, 3], sizes = [8, 129], strides = [1, 1]} : vector<8x192xf32> to vector<8x129xf32>
    %c24 = arith.constant 24 : index
    %c0_6 = arith.constant 0 : index
    %10 = vector.load %arg13[%c24, %c0_6] : memref<512x129xf32, #tpu.memory_space<vmem>>, vector<8x129xf32>
    tpu.vector_store %arg13[%c24, %c0_6], %9 {strides = array<i32>} : memref<512x129xf32, #tpu.memory_space<vmem>>, vector<8x129xf32>,
    %11 = vector.extract_strided_slice %2 {offsets = [0, 4], sizes = [8, 129], strides = [1, 1]} : vector<8x192xf32> to vector<8x129xf32>
    %c32 = arith.constant 32 : index
    %c0_7 = arith.constant 0 : index
    %12 = vector.load %arg13[%c32, %c0_7] : memref<512x129xf32, #tpu.memory_space<vmem>>, vector<8x129xf32>
    tpu.vector_store %arg13[%c32, %c0_7], %11 {strides = array<i32>} : memref<512x129xf32, #tpu.memory_space<vmem>>, vector<8x129xf32>,
    %13 = vector.extract_strided_slice %2 {offsets = [0, 5], sizes = [8, 129], strides = [1, 1]} : vector<8x192xf32> to vector<8x129xf32>
    %c40 = arith.constant 40 : index
    %c0_8 = arith.constant 0 : index
    %14 = vector.load %arg13[%c40, %c0_8] : memref<512x129xf32, #tpu.memory_space<vmem>>, vector<8x129xf32>
    tpu.vector_store %arg13[%c40, %c0_8], %13 {strides = array<i32>} : memref<512x129xf32, #tpu.memory_space<vmem>>, vector<8x129xf32>,
    %15 = vector.extract_strided_slice %2 {offsets = [0, 6], sizes = [8, 129], strides = [1, 1]} : vector<8x192xf32> to vector<8x129xf32>
    %c48 = arith.constant 48 : index
    %c0_9 = arith.constant 0 : index
    %16 = vector.load %arg13[%c48, %c0_9] : memref<512x129xf32, #tpu.memory_space<vmem>>, vector<8x129xf32>
    tpu.vector_store %arg13[%c48, %c0_9], %15 {strides = array<i32>} : memref<512x129xf32, #tpu.memory_space<vmem>>, vector<8x129xf32>,
    %17 = vector.extract_strided_slice %2 {offsets = [0, 7], sizes = [8, 129], strides = [1, 1]} : vector<8x192xf32> to vector<8x129xf32>
    %c56 = arith.constant 56 : index
    %c0_10 = arith.constant 0 : index
    %18 = vector.load %arg13[%c56, %c0_10] : memref<512x129xf32, #tpu.memory_space<vmem>>, vector<8x129xf32>
    tpu.vector_store %arg13[%c56, %c0_10], %17 {strides = array<i32>} : memref<512x129xf32, #tpu.memory_space<vmem>>, vector<8x129xf32>,
    %19 = vector.extract_strided_slice %2 {offsets = [0, 8], sizes = [8, 129], strides = [1, 1]} : vector<8x192xf32> to vector<8x129xf32>
    %c64 = arith.constant 64 : index
    %c0_11 = arith.constant 0 : index
    %20 = vector.load %arg13[%c64, %c0_11] : memref<512x129xf32, #tpu.memory_space<vmem>>, vector<8x129xf32>
    tpu.vector_store %arg13[%c64, %c0_11], %19 {strides = array<i32>} : memref<512x129xf32, #tpu.memory_space<vmem>>, vector<8x129xf32>,
    %21 = vector.extract_strided_slice %2 {offsets = [0, 9], sizes = [8, 129], strides = [1, 1]} : vector<8x192xf32> to vector<8x129xf32>
    %c72 = arith.constant 72 : index
    %c0_12 = arith.constant 0 : index
    %22 = vector.load %arg13[%c72, %c0_12] : memref<512x129xf32, #tpu.memory_space<vmem>>, vector<8x129xf32>
    tpu.vector_store %arg13[%c72, %c0_12], %21 {strides = array<i32>} : memref<512x129xf32, #tpu.memory_space<vmem>>, vector<8x129xf32>,
    %23 = vector.extract_strided_slice %2 {offsets = [0, 10], sizes = [8, 129], strides = [1, 1]} : vector<8x192xf32> to vector<8x129xf32>
    %c80 = arith.constant 80 : index
    %c0_13 = arith.constant 0 : index
    %24 = vector.load %arg13[%c80, %c0_13] : memref<512x129xf32, #tpu.memory_space<vmem>>, vector<8x129xf32>
    tpu.vector_store %arg13[%c80, %c0_13], %23 {strides = array<i32>} : memref<512x129xf32, #tpu.memory_space<vmem>>, vector<8x129xf32>,
    %25 = vector.extract_strided_slice %2 {offsets = [0, 11], sizes = [8, 129], strides = [1, 1]} : vector<8x192xf32> to vector<8x129xf32>
    %c88 = arith.constant 88 : index
    %c0_14 = arith.constant 0 : index
    %26 = vector.load %arg13[%c88, %c0_14] : memref<512x129xf32, #tpu.memory_space<vmem>>, vector<8x129xf32>
    tpu.vector_store %arg13[%c88, %c0_14], %25 {strides = array<i32>} : memref<512x129xf32, #tpu.memory_space<vmem>>, vector<8x129xf32>,
    %27 = vector.extract_strided_slice %2 {offsets = [0, 12], sizes = [8, 129], strides = [1, 1]} : vector<8x192xf32> to vector<8x129xf32>
    %c96 = arith.constant 96 : index
    %c0_15 = arith.constant 0 : index
    %28 = vector.load %arg13[%c96, %c0_15] : memref<512x129xf32, #tpu.memory_space<vmem>>, vector<8x129xf32>
    tpu.vector_store %arg13[%c96, %c0_15], %27 {strides = array<i32>} : memref<512x129xf32, #tpu.memory_space<vmem>>, vector<8x129xf32>,
    %29 = vector.extract_strided_slice %2 {offsets = [0, 13], sizes = [8, 129], strides = [1, 1]} : vector<8x192xf32> to vector<8x129xf32>
    %c104 = arith.constant 104 : index
    %c0_16 = arith.constant 0 : index
    %30 = vector.load %arg13[%c104, %c0_16] : memref<512x129xf32, #tpu.memory_space<vmem>>, vector<8x129xf32>
    tpu.vector_store %arg13[%c104, %c0_16], %29 {strides = array<i32>} : memref<512x129xf32, #tpu.memory_space<vmem>>, vector<8x129xf32>,
    %31 = vector.extract_strided_slice %2 {offsets = [0, 14], sizes = [8, 129], strides = [1, 1]} : vector<8x192xf32> to vector<8x129xf32>
    %c112 = arith.constant 112 : index
    %c0_17 = arith.constant 0 : index
    %32 = vector.load %arg13[%c112, %c0_17] : memref<512x129xf32, #tpu.memory_space<vmem>>, vector<8x129xf32>
    tpu.vector_store %arg13[%c112, %c0_17], %31 {strides = array<i32>} : memref<512x129xf32, #tpu.memory_space<vmem>>, vector<8x129xf32>,
    %33 = vector.extract_strided_slice %2 {offsets = [0, 15], sizes = [8, 129], strides = [1, 1]} : vector<8x192xf32> to vector<8x129xf32>
    %c120 = arith.constant 120 : index
    %c0_18 = arith.constant 0 : index
    %34 = vector.load %arg13[%c120, %c0_18] : memref<512x129xf32, #tpu.memory_space<vmem>>, vector<8x129xf32>
    tpu.vector_store %arg13[%c120, %c0_18], %33 {strides = array<i32>} : memref<512x129xf32, #tpu.memory_space<vmem>>, vector<8x129xf32>,
    %35 = vector.extract_strided_slice %2 {offsets = [0, 16], sizes = [8, 129], strides = [1, 1]} : vector<8x192xf32> to vector<8x129xf32>
    %c128 = arith.constant 128 : index
    %c0_19 = arith.constant 0 : index
    %36 = vector.load %arg13[%c128, %c0_19] : memref<512x129xf32, #tpu.memory_space<vmem>>, vector<8x129xf32>
    tpu.vector_store %arg13[%c128, %c0_19], %35 {strides = array<i32>} : memref<512x129xf32, #tpu.memory_space<vmem>>, vector<8x129xf32>,
    %37 = vector.extract_strided_slice %2 {offsets = [0, 17], sizes = [8, 129], strides = [1, 1]} : vector<8x192xf32> to vector<8x129xf32>
    %c136 = arith.constant 136 : index
    %c0_20 = arith.constant 0 : index
    %38 = vector.load %arg13[%c136, %c0_20] : memref<512x129xf32, #tpu.memory_space<vmem>>, vector<8x129xf32>
    tpu.vector_store %arg13[%c136, %c0_20], %37 {strides = array<i32>} : memref<512x129xf32, #tpu.memory_space<vmem>>, vector<8x129xf32>,
    %39 = vector.extract_strided_slice %2 {offsets = [0, 18], sizes = [8, 129], strides = [1, 1]} : vector<8x192xf32> to vector<8x129xf32>
    %c144 = arith.constant 144 : index
    %c0_21 = arith.constant 0 : index
    %40 = vector.load %arg13[%c144, %c0_21] : memref<512x129xf32, #tpu.memory_space<vmem>>, vector<8x129xf32>
    tpu.vector_store %arg13[%c144, %c0_21], %39 {strides = array<i32>} : memref<512x129xf32, #tpu.memory_space<vmem>>, vector<8x129xf32>,
    %41 = vector.extract_strided_slice %2 {offsets = [0, 19], sizes = [8, 129], strides = [1, 1]} : vector<8x192xf32> to vector<8x129xf32>
    %c152 = arith.constant 152 : index
    %c0_22 = arith.constant 0 : index
    %42 = vector.load %arg13[%c152, %c0_22] : memref<512x129xf32, #tpu.memory_space<vmem>>, vector<8x129xf32>
    tpu.vector_store %arg13[%c152, %c0_22], %41 {strides = array<i32>} : memref<512x129xf32, #tpu.memory_space<vmem>>, vector<8x129xf32>,
    %43 = vector.extract_strided_slice %2 {offsets = [0, 20], sizes = [8, 129], strides = [1, 1]} : vector<8x192xf32> to vector<8x129xf32>
    %c160 = arith.constant 160 : index
    %c0_23 = arith.constant 0 : index
    %44 = vector.load %arg13[%c160, %c0_23] : memref<512x129xf32, #tpu.memory_space<vmem>>, vector<8x129xf32>
    tpu.vector_store %arg13[%c160, %c0_23], %43 {strides = array<i32>} : memref<512x129xf32, #tpu.memory_space<vmem>>, vector<8x129xf32>,
    %45 = vector.extract_strided_slice %2 {offsets = [0, 21], sizes = [8, 129], strides = [1, 1]} : vector<8x192xf32> to vector<8x129xf32>
    %c168 = arith.constant 168 : index
    %c0_24 = arith.constant 0 : index
    %46 = vector.load %arg13[%c168, %c0_24] : memref<512x129xf32, #tpu.memory_space<vmem>>, vector<8x129xf32>
    tpu.vector_store %arg13[%c168, %c0_24], %45 {strides = array<i32>} : memref<512x129xf32, #tpu.memory_space<vmem>>, vector<8x129xf32>,
    %47 = vector.extract_strided_slice %2 {offsets = [0, 22], sizes = [8, 129], strides = [1, 1]} : vector<8x192xf32> to vector<8x129xf32>
    %c176 = arith.constant 176 : index
    %c0_25 = arith.constant 0 : index
    %48 = vector.load %arg13[%c176, %c0_25] : memref<512x129xf32, #tpu.memory_space<vmem>>, vector<8x129xf32>
    tpu.vector_store %arg13[%c176, %c0_25], %47 {strides = array<i32>} : memref<512x129xf32, #tpu.memory_space<vmem>>, vector<8x129xf32>,
    %49 = vector.extract_strided_slice %2 {offsets = [0, 23], sizes = [8, 129], strides = [1, 1]} : vector<8x192xf32> to vector<8x129xf32>
    %c184 = arith.constant 184 : index
    %c0_26 = arith.constant 0 : index
    %50 = vector.load %arg13[%c184, %c0_26] : memref<512x129xf32, #tpu.memory_space<vmem>>, vector<8x129xf32>
    tpu.vector_store %arg13[%c184, %c0_26], %49 {strides = array<i32>} : memref<512x129xf32, #tpu.memory_space<vmem>>, vector<8x129xf32>,
    %51 = vector.extract_strided_slice %2 {offsets = [0, 24], sizes = [8, 129], strides = [1, 1]} : vector<8x192xf32> to vector<8x129xf32>
    %c192 = arith.constant 192 : index
    %c0_27 = arith.constant 0 : index
    %52 = vector.load %arg13[%c192, %c0_27] : memref<512x129xf32, #tpu.memory_space<vmem>>, vector<8x129xf32>
    tpu.vector_store %arg13[%c192, %c0_27], %51 {strides = array<i32>} : memref<512x129xf32, #tpu.memory_space<vmem>>, vector<8x129xf32>,
    %53 = vector.extract_strided_slice %2 {offsets = [0, 25], sizes = [8, 129], strides = [1, 1]} : vector<8x192xf32> to vector<8x129xf32>
    %c200 = arith.constant 200 : index
    %c0_28 = arith.constant 0 : index
    %54 = vector.load %arg13[%c200, %c0_28] : memref<512x129xf32, #tpu.memory_space<vmem>>, vector<8x129xf32>
    tpu.vector_store %arg13[%c200, %c0_28], %53 {strides = array<i32>} : memref<512x129xf32, #tpu.memory_space<vmem>>, vector<8x129xf32>,
    %55 = vector.extract_strided_slice %2 {offsets = [0, 26], sizes = [8, 129], strides = [1, 1]} : vector<8x192xf32> to vector<8x129xf32>
    %c208 = arith.constant 208 : index
    %c0_29 = arith.constant 0 : index
    %56 = vector.load %arg13[%c208, %c0_29] : memref<512x129xf32, #tpu.memory_space<vmem>>, vector<8x129xf32>
    tpu.vector_store %arg13[%c208, %c0_29], %55 {strides = array<i32>} : memref<512x129xf32, #tpu.memory_space<vmem>>, vector<8x129xf32>,
    %57 = vector.extract_strided_slice %2 {offsets = [0, 27], sizes = [8, 129], strides = [1, 1]} : vector<8x192xf32> to vector<8x129xf32>
    %c216 = arith.constant 216 : index
    %c0_30 = arith.constant 0 : index
    %58 = vector.load %arg13[%c216, %c0_30] : memref<512x129xf32, #tpu.memory_space<vmem>>, vector<8x129xf32>
    tpu.vector_store %arg13[%c216, %c0_30], %57 {strides = array<i32>} : memref<512x129xf32, #tpu.memory_space<vmem>>, vector<8x129xf32>,
    %59 = vector.extract_strided_slice %2 {offsets = [0, 28], sizes = [8, 129], strides = [1, 1]} : vector<8x192xf32> to vector<8x129xf32>
    %c224 = arith.constant 224 : index
    %c0_31 = arith.constant 0 : index
    %60 = vector.load %arg13[%c224, %c0_31] : memref<512x129xf32, #tpu.memory_space<vmem>>, vector<8x129xf32>
    tpu.vector_store %arg13[%c224, %c0_31], %59 {strides = array<i32>} : memref<512x129xf32, #tpu.memory_space<vmem>>, vector<8x129xf32>,
    %61 = vector.extract_strided_slice %2 {offsets = [0, 29], sizes = [8, 129], strides = [1, 1]} : vector<8x192xf32> to vector<8x129xf32>
    %c232 = arith.constant 232 : index
    %c0_32 = arith.constant 0 : index
    %62 = vector.load %arg13[%c232, %c0_32] : memref<512x129xf32, #tpu.memory_space<vmem>>, vector<8x129xf32>
    tpu.vector_store %arg13[%c232, %c0_32], %61 {strides = array<i32>} : memref<512x129xf32, #tpu.memory_space<vmem>>, vector<8x129xf32>,
    %63 = vector.extract_strided_slice %2 {offsets = [0, 30], sizes = [8, 129], strides = [1, 1]} : vector<8x192xf32> to vector<8x129xf32>
    %c240 = arith.constant 240 : index
    %c0_33 = arith.constant 0 : index
    %64 = vector.load %arg13[%c240, %c0_33] : memref<512x129xf32, #tpu.memory_space<vmem>>, vector<8x129xf32>
    tpu.vector_store %arg13[%c240, %c0_33], %63 {strides = array<i32>} : memref<512x129xf32, #tpu.memory_space<vmem>>, vector<8x129xf32>,
    %65 = vector.extract_strided_slice %2 {offsets = [0, 31], sizes = [8, 129], strides = [1, 1]} : vector<8x192xf32> to vector<8x129xf32>
    %c248 = arith.constant 248 : index
    %c0_34 = arith.constant 0 : index
    %66 = vector.load %arg13[%c248, %c0_34] : memref<512x129xf32, #tpu.memory_space<vmem>>, vector<8x129xf32>
    tpu.vector_store %arg13[%c248, %c0_34], %65 {strides = array<i32>} : memref<512x129xf32, #tpu.memory_space<vmem>>, vector<8x129xf32>,
    %67 = vector.extract_strided_slice %2 {offsets = [0, 32], sizes = [8, 129], strides = [1, 1]} : vector<8x192xf32> to vector<8x129xf32>
    %c256 = arith.constant 256 : index
    %c0_35 = arith.constant 0 : index
    %68 = vector.load %arg13[%c256, %c0_35] : memref<512x129xf32, #tpu.memory_space<vmem>>, vector<8x129xf32>
    tpu.vector_store %arg13[%c256, %c0_35], %67 {strides = array<i32>} : memref<512x129xf32, #tpu.memory_space<vmem>>, vector<8x129xf32>,
    %69 = vector.extract_strided_slice %2 {offsets = [0, 33], sizes = [8, 129], strides = [1, 1]} : vector<8x192xf32> to vector<8x129xf32>
    %c264 = arith.constant 264 : index
    %c0_36 = arith.constant 0 : index
    %70 = vector.load %arg13[%c264, %c0_36] : memref<512x129xf32, #tpu.memory_space<vmem>>, vector<8x129xf32>
    tpu.vector_store %arg13[%c264, %c0_36], %69 {strides = array<i32>} : memref<512x129xf32, #tpu.memory_space<vmem>>, vector<8x129xf32>,
    %71 = vector.extract_strided_slice %2 {offsets = [0, 34], sizes = [8, 129], strides = [1, 1]} : vector<8x192xf32> to vector<8x129xf32>
    %c272 = arith.constant 272 : index
    %c0_37 = arith.constant 0 : index
    %72 = vector.load %arg13[%c272, %c0_37] : memref<512x129xf32, #tpu.memory_space<vmem>>, vector<8x129xf32>
    tpu.vector_store %arg13[%c272, %c0_37], %71 {strides = array<i32>} : memref<512x129xf32, #tpu.memory_space<vmem>>, vector<8x129xf32>,
    %73 = vector.extract_strided_slice %2 {offsets = [0, 35], sizes = [8, 129], strides = [1, 1]} : vector<8x192xf32> to vector<8x129xf32>
    %c280 = arith.constant 280 : index
    %c0_38 = arith.constant 0 : index
    %74 = vector.load %arg13[%c280, %c0_38] : memref<512x129xf32, #tpu.memory_space<vmem>>, vector<8x129xf32>
    tpu.vector_store %arg13[%c280, %c0_38], %73 {strides = array<i32>} : memref<512x129xf32, #tpu.memory_space<vmem>>, vector<8x129xf32>,
    %75 = vector.extract_strided_slice %2 {offsets = [0, 36], sizes = [8, 129], strides = [1, 1]} : vector<8x192xf32> to vector<8x129xf32>
    %c288 = arith.constant 288 : index
    %c0_39 = arith.constant 0 : index
    %76 = vector.load %arg13[%c288, %c0_39] : memref<512x129xf32, #tpu.memory_space<vmem>>, vector<8x129xf32>
    tpu.vector_store %arg13[%c288, %c0_39], %75 {strides = array<i32>} : memref<512x129xf32, #tpu.memory_space<vmem>>, vector<8x129xf32>,
    %77 = vector.extract_strided_slice %2 {offsets = [0, 37], sizes = [8, 129], strides = [1, 1]} : vector<8x192xf32> to vector<8x129xf32>
    %c296 = arith.constant 296 : index
    %c0_40 = arith.constant 0 : index
    %78 = vector.load %arg13[%c296, %c0_40] : memref<512x129xf32, #tpu.memory_space<vmem>>, vector<8x129xf32>
    tpu.vector_store %arg13[%c296, %c0_40], %77 {strides = array<i32>} : memref<512x129xf32, #tpu.memory_space<vmem>>, vector<8x129xf32>,
    %79 = vector.extract_strided_slice %2 {offsets = [0, 38], sizes = [8, 129], strides = [1, 1]} : vector<8x192xf32> to vector<8x129xf32>
    %c304 = arith.constant 304 : index
    %c0_41 = arith.constant 0 : index
    %80 = vector.load %arg13[%c304, %c0_41] : memref<512x129xf32, #tpu.memory_space<vmem>>, vector<8x129xf32>
    tpu.vector_store %arg13[%c304, %c0_41], %79 {strides = array<i32>} : memref<512x129xf32, #tpu.memory_space<vmem>>, vector<8x129xf32>,
    %81 = vector.extract_strided_slice %2 {offsets = [0, 39], sizes = [8, 129], strides = [1, 1]} : vector<8x192xf32> to vector<8x129xf32>
    %c312 = arith.constant 312 : index
    %c0_42 = arith.constant 0 : index
    %82 = vector.load %arg13[%c312, %c0_42] : memref<512x129xf32, #tpu.memory_space<vmem>>, vector<8x129xf32>
    tpu.vector_store %arg13[%c312, %c0_42], %81 {strides = array<i32>} : memref<512x129xf32, #tpu.memory_space<vmem>>, vector<8x129xf32>,
    %83 = vector.extract_strided_slice %2 {offsets = [0, 40], sizes = [8, 129], strides = [1, 1]} : vector<8x192xf32> to vector<8x129xf32>
    %c320 = arith.constant 320 : index
    %c0_43 = arith.constant 0 : index
    %84 = vector.load %arg13[%c320, %c0_43] : memref<512x129xf32, #tpu.memory_space<vmem>>, vector<8x129xf32>
    tpu.vector_store %arg13[%c320, %c0_43], %83 {strides = array<i32>} : memref<512x129xf32, #tpu.memory_space<vmem>>, vector<8x129xf32>,
    %85 = vector.extract_strided_slice %2 {offsets = [0, 41], sizes = [8, 129], strides = [1, 1]} : vector<8x192xf32> to vector<8x129xf32>
    %c328 = arith.constant 328 : index
    %c0_44 = arith.constant 0 : index
    %86 = vector.load %arg13[%c328, %c0_44] : memref<512x129xf32, #tpu.memory_space<vmem>>, vector<8x129xf32>
    tpu.vector_store %arg13[%c328, %c0_44], %85 {strides = array<i32>} : memref<512x129xf32, #tpu.memory_space<vmem>>, vector<8x129xf32>,
    %87 = vector.extract_strided_slice %2 {offsets = [0, 42], sizes = [8, 129], strides = [1, 1]} : vector<8x192xf32> to vector<8x129xf32>
    %c336 = arith.constant 336 : index
    %c0_45 = arith.constant 0 : index
    %88 = vector.load %arg13[%c336, %c0_45] : memref<512x129xf32, #tpu.memory_space<vmem>>, vector<8x129xf32>
    tpu.vector_store %arg13[%c336, %c0_45], %87 {strides = array<i32>} : memref<512x129xf32, #tpu.memory_space<vmem>>, vector<8x129xf32>,
    %89 = vector.extract_strided_slice %2 {offsets = [0, 43], sizes = [8, 129], strides = [1, 1]} : vector<8x192xf32> to vector<8x129xf32>
    %c344 = arith.constant 344 : index
    %c0_46 = arith.constant 0 : index
    %90 = vector.load %arg13[%c344, %c0_46] : memref<512x129xf32, #tpu.memory_space<vmem>>, vector<8x129xf32>
    tpu.vector_store %arg13[%c344, %c0_46], %89 {strides = array<i32>} : memref<512x129xf32, #tpu.memory_space<vmem>>, vector<8x129xf32>,
    %91 = vector.extract_strided_slice %2 {offsets = [0, 44], sizes = [8, 129], strides = [1, 1]} : vector<8x192xf32> to vector<8x129xf32>
    %c352 = arith.constant 352 : index
    %c0_47 = arith.constant 0 : index
    %92 = vector.load %arg13[%c352, %c0_47] : memref<512x129xf32, #tpu.memory_space<vmem>>, vector<8x129xf32>
    tpu.vector_store %arg13[%c352, %c0_47], %91 {strides = array<i32>} : memref<512x129xf32, #tpu.memory_space<vmem>>, vector<8x129xf32>,
    %93 = vector.extract_strided_slice %2 {offsets = [0, 45], sizes = [8, 129], strides = [1, 1]} : vector<8x192xf32> to vector<8x129xf32>
    %c360 = arith.constant 360 : index
    %c0_48 = arith.constant 0 : index
    %94 = vector.load %arg13[%c360, %c0_48] : memref<512x129xf32, #tpu.memory_space<vmem>>, vector<8x129xf32>
    tpu.vector_store %arg13[%c360, %c0_48], %93 {strides = array<i32>} : memref<512x129xf32, #tpu.memory_space<vmem>>, vector<8x129xf32>,
    %95 = vector.extract_strided_slice %2 {offsets = [0, 46], sizes = [8, 129], strides = [1, 1]} : vector<8x192xf32> to vector<8x129xf32>
    %c368 = arith.constant 368 : index
    %c0_49 = arith.constant 0 : index
    %96 = vector.load %arg13[%c368, %c0_49] : memref<512x129xf32, #tpu.memory_space<vmem>>, vector<8x129xf32>
    tpu.vector_store %arg13[%c368, %c0_49], %95 {strides = array<i32>} : memref<512x129xf32, #tpu.memory_space<vmem>>, vector<8x129xf32>,
    %97 = vector.extract_strided_slice %2 {offsets = [0, 47], sizes = [8, 129], strides = [1, 1]} : vector<8x192xf32> to vector<8x129xf32>
    %c376 = arith.constant 376 : index
    %c0_50 = arith.constant 0 : index
    %98 = vector.load %arg13[%c376, %c0_50] : memref<512x129xf32, #tpu.memory_space<vmem>>, vector<8x129xf32>
    tpu.vector_store %arg13[%c376, %c0_50], %97 {strides = array<i32>} : memref<512x129xf32, #tpu.memory_space<vmem>>, vector<8x129xf32>,
    %99 = vector.extract_strided_slice %2 {offsets = [0, 48], sizes = [8, 129], strides = [1, 1]} : vector<8x192xf32> to vector<8x129xf32>
    %c384 = arith.constant 384 : index
    %c0_51 = arith.constant 0 : index
    %100 = vector.load %arg13[%c384, %c0_51] : memref<512x129xf32, #tpu.memory_space<vmem>>, vector<8x129xf32>
    tpu.vector_store %arg13[%c384, %c0_51], %99 {strides = array<i32>} : memref<512x129xf32, #tpu.memory_space<vmem>>, vector<8x129xf32>,
    %101 = vector.extract_strided_slice %2 {offsets = [0, 49], sizes = [8, 129], strides = [1, 1]} : vector<8x192xf32> to vector<8x129xf32>
    %c392 = arith.constant 392 : index
    %c0_52 = arith.constant 0 : index
    %102 = vector.load %arg13[%c392, %c0_52] : memref<512x129xf32, #tpu.memory_space<vmem>>, vector<8x129xf32>
    tpu.vector_store %arg13[%c392, %c0_52], %101 {strides = array<i32>} : memref<512x129xf32, #tpu.memory_space<vmem>>, vector<8x129xf32>,
    %103 = vector.extract_strided_slice %2 {offsets = [0, 50], sizes = [8, 129], strides = [1, 1]} : vector<8x192xf32> to vector<8x129xf32>
    %c400 = arith.constant 400 : index
    %c0_53 = arith.constant 0 : index
    %104 = vector.load %arg13[%c400, %c0_53] : memref<512x129xf32, #tpu.memory_space<vmem>>, vector<8x129xf32>
    tpu.vector_store %arg13[%c400, %c0_53], %103 {strides = array<i32>} : memref<512x129xf32, #tpu.memory_space<vmem>>, vector<8x129xf32>,
    %105 = vector.extract_strided_slice %2 {offsets = [0, 51], sizes = [8, 129], strides = [1, 1]} : vector<8x192xf32> to vector<8x129xf32>
    %c408 = arith.constant 408 : index
    %c0_54 = arith.constant 0 : index
    %106 = vector.load %arg13[%c408, %c0_54] : memref<512x129xf32, #tpu.memory_space<vmem>>, vector<8x129xf32>
    tpu.vector_store %arg13[%c408, %c0_54], %105 {strides = array<i32>} : memref<512x129xf32, #tpu.memory_space<vmem>>, vector<8x129xf32>,
    %107 = vector.extract_strided_slice %2 {offsets = [0, 52], sizes = [8, 129], strides = [1, 1]} : vector<8x192xf32> to vector<8x129xf32>
    %c416 = arith.constant 416 : index
    %c0_55 = arith.constant 0 : index
    %108 = vector.load %arg13[%c416, %c0_55] : memref<512x129xf32, #tpu.memory_space<vmem>>, vector<8x129xf32>
    tpu.vector_store %arg13[%c416, %c0_55], %107 {strides = array<i32>} : memref<512x129xf32, #tpu.memory_space<vmem>>, vector<8x129xf32>,
    %109 = vector.extract_strided_slice %2 {offsets = [0, 53], sizes = [8, 129], strides = [1, 1]} : vector<8x192xf32> to vector<8x129xf32>
    %c424 = arith.constant 424 : index
    %c0_56 = arith.constant 0 : index
    %110 = vector.load %arg13[%c424, %c0_56] : memref<512x129xf32, #tpu.memory_space<vmem>>, vector<8x129xf32>
    tpu.vector_store %arg13[%c424, %c0_56], %109 {strides = array<i32>} : memref<512x129xf32, #tpu.memory_space<vmem>>, vector<8x129xf32>,
    %111 = vector.extract_strided_slice %2 {offsets = [0, 54], sizes = [8, 129], strides = [1, 1]} : vector<8x192xf32> to vector<8x129xf32>
    %c432 = arith.constant 432 : index
    %c0_57 = arith.constant 0 : index
    %112 = vector.load %arg13[%c432, %c0_57] : memref<512x129xf32, #tpu.memory_space<vmem>>, vector<8x129xf32>
    tpu.vector_store %arg13[%c432, %c0_57], %111 {strides = array<i32>} : memref<512x129xf32, #tpu.memory_space<vmem>>, vector<8x129xf32>,
    %113 = vector.extract_strided_slice %2 {offsets = [0, 55], sizes = [8, 129], strides = [1, 1]} : vector<8x192xf32> to vector<8x129xf32>
    %c440 = arith.constant 440 : index
    %c0_58 = arith.constant 0 : index
    %114 = vector.load %arg13[%c440, %c0_58] : memref<512x129xf32, #tpu.memory_space<vmem>>, vector<8x129xf32>
    tpu.vector_store %arg13[%c440, %c0_58], %113 {strides = array<i32>} : memref<512x129xf32, #tpu.memory_space<vmem>>, vector<8x129xf32>,
    %115 = vector.extract_strided_slice %2 {offsets = [0, 56], sizes = [8, 129], strides = [1, 1]} : vector<8x192xf32> to vector<8x129xf32>
    %c448 = arith.constant 448 : index
    %c0_59 = arith.constant 0 : index
    %116 = vector.load %arg13[%c448, %c0_59] : memref<512x129xf32, #tpu.memory_space<vmem>>, vector<8x129xf32>
    tpu.vector_store %arg13[%c448, %c0_59], %115 {strides = array<i32>} : memref<512x129xf32, #tpu.memory_space<vmem>>, vector<8x129xf32>,
    %117 = vector.extract_strided_slice %2 {offsets = [0, 57], sizes = [8, 129], strides = [1, 1]} : vector<8x192xf32> to vector<8x129xf32>
    %c456 = arith.constant 456 : index
    %c0_60 = arith.constant 0 : index
    %118 = vector.load %arg13[%c456, %c0_60] : memref<512x129xf32, #tpu.memory_space<vmem>>, vector<8x129xf32>
    tpu.vector_store %arg13[%c456, %c0_60], %117 {strides = array<i32>} : memref<512x129xf32, #tpu.memory_space<vmem>>, vector<8x129xf32>,
    %119 = vector.extract_strided_slice %2 {offsets = [0, 58], sizes = [8, 129], strides = [1, 1]} : vector<8x192xf32> to vector<8x129xf32>
    %c464 = arith.constant 464 : index
    %c0_61 = arith.constant 0 : index
    %120 = vector.load %arg13[%c464, %c0_61] : memref<512x129xf32, #tpu.memory_space<vmem>>, vector<8x129xf32>
    tpu.vector_store %arg13[%c464, %c0_61], %119 {strides = array<i32>} : memref<512x129xf32, #tpu.memory_space<vmem>>, vector<8x129xf32>,
    %121 = vector.extract_strided_slice %2 {offsets = [0, 59], sizes = [8, 129], strides = [1, 1]} : vector<8x192xf32> to vector<8x129xf32>
    %c472 = arith.constant 472 : index
    %c0_62 = arith.constant 0 : index
    %122 = vector.load %arg13[%c472, %c0_62] : memref<512x129xf32, #tpu.memory_space<vmem>>, vector<8x129xf32>
    tpu.vector_store %arg13[%c472, %c0_62], %121 {strides = array<i32>} : memref<512x129xf32, #tpu.memory_space<vmem>>, vector<8x129xf32>,
    %123 = vector.extract_strided_slice %2 {offsets = [0, 60], sizes = [8, 129], strides = [1, 1]} : vector<8x192xf32> to vector<8x129xf32>
    %c480 = arith.constant 480 : index
    %c0_63 = arith.constant 0 : index
    %124 = vector.load %arg13[%c480, %c0_63] : memref<512x129xf32, #tpu.memory_space<vmem>>, vector<8x129xf32>
    tpu.vector_store %arg13[%c480, %c0_63], %123 {strides = array<i32>} : memref<512x129xf32, #tpu.memory_space<vmem>>, vector<8x129xf32>,
    %125 = vector.extract_strided_slice %2 {offsets = [0, 61], sizes = [8, 129], strides = [1, 1]} : vector<8x192xf32> to vector<8x129xf32>
    %c488 = arith.constant 488 : index
    %c0_64 = arith.constant 0 : index
    %126 = vector.load %arg13[%c488, %c0_64] : memref<512x129xf32, #tpu.memory_space<vmem>>, vector<8x129xf32>
    tpu.vector_store %arg13[%c488, %c0_64], %125 {strides = array<i32>} : memref<512x129xf32, #tpu.memory_space<vmem>>, vector<8x129xf32>,
    %127 = vector.extract_strided_slice %2 {offsets = [0, 62], sizes = [8, 129], strides = [1, 1]} : vector<8x192xf32> to vector<8x129xf32>
    %c496 = arith.constant 496 : index
    %c0_65 = arith.constant 0 : index
    %128 = vector.load %arg13[%c496, %c0_65] : memref<512x129xf32, #tpu.memory_space<vmem>>, vector<8x129xf32>
    tpu.vector_store %arg13[%c496, %c0_65], %127 {strides = array<i32>} : memref<512x129xf32, #tpu.memory_space<vmem>>, vector<8x129xf32>,
    %129 = vector.extract_strided_slice %2 {offsets = [0, 63], sizes = [8, 129], strides = [1, 1]} : vector<8x192xf32> to vector<8x129xf32>
    %c504 = arith.constant 504 : index
    %c0_66 = arith.constant 0 : index
    %130 = vector.load %arg13[%c504, %c0_66] : memref<512x129xf32, #tpu.memory_space<vmem>>, vector<8x129xf32>
    tpu.vector_store %arg13[%c504, %c0_66], %129 {strides = array<i32>} : memref<512x129xf32, #tpu.memory_space<vmem>>, vector<8x129xf32>,
    %c0_67 = arith.constant 0 : index
    %c0_68 = arith.constant 0 : index
    %131 = vector.load %arg2[%c0_67, %c0_68] : memref<128x512xbf16, #tpu.memory_space<vmem>>, vector<128x512xbf16>
    %c0_69 = arith.constant 0 : index
    %c0_70 = arith.constant 0 : index
    %132 = vector.load %arg13[%c0_69, %c0_70] : memref<512x129xf32, #tpu.memory_space<vmem>>, vector<512x129xf32>
    %133 = arith.truncf %132 : vector<512x129xf32> to vector<512x129xbf16>
    %cst = arith.constant dense<0.000000e+00> : vector<128x129xf32>
    %134 = tpu.matmul %131, %133, %cst {dimension_numbers = #tpu.dot_dimension_numbers<[1], [0], [0], [1], [0, 0, 1, 1], [], []>} : vector<128x512xbf16>, vector<512x129xbf16>, vector<128x129xf32> -> vector<128x129xf32>
    %c0_71 = arith.constant 0 : index
    %c0_72 = arith.constant 0 : index
    %135 = vector.load %arg3[%c0_71, %c0_72] : memref<128x1xf32, #tpu.memory_space<vmem>>, vector<128x1xf32>
    %136 = vector.broadcast %135 : vector<128x1xf32> to vector<128x129xf32>
    %137 = arith.addf %134, %136 : vector<128x129xf32>
    %cst_73 = arith.constant 0.000000e+00 : f32
    %138 = vector.broadcast %cst_73 : f32 to vector<128x129xf32>
    %139 = arith.cmpf ogt, %137, %138 : vector<128x129xf32>
    %cst_74 = arith.constant 0.000000e+00 : f32
    %140 = vector.broadcast %cst_74 : f32 to vector<128x129xf32>
    %141 = arith.minimumf %137, %140 : vector<128x129xf32>
    %142 = math.exp %141 : vector<128x129xf32>
    %cst_75 = arith.constant 1.000000e+00 : f32
    %143 = vector.broadcast %cst_75 : f32 to vector<128x129xf32>
    %144 = arith.subf %142, %143 : vector<128x129xf32>
    %145 = arith.select %139, %137, %144 : vector<128x129xi1>, vector<128x129xf32>
    %c0_76 = arith.constant 0 : index
    %c0_77 = arith.constant 0 : index
    %146 = vector.load %arg4[%c0_76, %c0_77] : memref<32x128xbf16, #tpu.memory_space<vmem>>, vector<32x128xbf16>
    %147 = arith.truncf %145 : vector<128x129xf32> to vector<128x129xbf16>
    %cst_78 = arith.constant dense<0.000000e+00> : vector<32x129xf32>
    %148 = tpu.matmul %146, %147, %cst_78 {dimension_numbers = #tpu.dot_dimension_numbers<[1], [0], [0], [1], [0, 0, 1, 1], [], []>} : vector<32x128xbf16>, vector<128x129xbf16>, vector<32x129xf32> -> vector<32x129xf32>
    %c0_79 = arith.constant 0 : index
    %c0_80 = arith.constant 0 : index
    %149 = vector.load %arg5[%c0_79, %c0_80] : memref<32x1xf32, #tpu.memory_space<vmem>>, vector<32x1xf32>
    %150 = vector.broadcast %149 : vector<32x1xf32> to vector<32x129xf32>
    %151 = arith.addf %148, %150 : vector<32x129xf32>
    %cst_81 = arith.constant 0.000000e+00 : f32
    %152 = vector.broadcast %cst_81 : f32 to vector<32x129xf32>
    %153 = arith.cmpf ogt, %151, %152 : vector<32x129xf32>
    %cst_82 = arith.constant 0.000000e+00 : f32
    %154 = vector.broadcast %cst_82 : f32 to vector<32x129xf32>
    %155 = arith.minimumf %151, %154 : vector<32x129xf32>
    %156 = math.exp %155 : vector<32x129xf32>
    %cst_83 = arith.constant 1.000000e+00 : f32
    %157 = vector.broadcast %cst_83 : f32 to vector<32x129xf32>
    %158 = arith.subf %156, %157 : vector<32x129xf32>
    %159 = arith.select %153, %151, %158 : vector<32x129xi1>, vector<32x129xf32>
    %160 = arith.truncf %159 : vector<32x129xf32> to vector<32x129xbf16>
    %c0_84 = arith.constant 0 : index
    %c0_85 = arith.constant 0 : index
    %161 = vector.load %arg6[%c0_84, %c0_85] : memref<129x48xbf16, #tpu.memory_space<vmem>>, vector<129x48xbf16>
    %cst_86 = arith.constant dense<0.000000e+00> : vector<32x48xf32>
    %162 = tpu.matmul %160, %161, %cst_86 {dimension_numbers = #tpu.dot_dimension_numbers<[1], [0], [0], [1], [0, 0, 1, 1], [], []>} : vector<32x129xbf16>, vector<129x48xbf16>, vector<32x48xf32> -> vector<32x48xf32>
    %163 = vector.extract_strided_slice %162 {offsets = [0, 0], sizes = [32, 33], strides = [1, 1]} : vector<32x48xf32> to vector<32x33xf32>
    %c0_87 = arith.constant 0 : index
    %c0_88 = arith.constant 0 : index
    %164 = vector.load %arg14[%c0_87, %c0_88] : memref<512x33xf32, #tpu.memory_space<vmem>>, vector<32x33xf32>
    tpu.vector_store %arg14[%c0_87, %c0_88], %163 {strides = array<i32>} : memref<512x33xf32, #tpu.memory_space<vmem>>, vector<32x33xf32>,
    %165 = vector.extract_strided_slice %162 {offsets = [0, 1], sizes = [32, 33], strides = [1, 1]} : vector<32x48xf32> to vector<32x33xf32>
    %c32_89 = arith.constant 32 : index
    %c0_90 = arith.constant 0 : index
    %166 = vector.load %arg14[%c32_89, %c0_90] : memref<512x33xf32, #tpu.memory_space<vmem>>, vector<32x33xf32>
    tpu.vector_store %arg14[%c32_89, %c0_90], %165 {strides = array<i32>} : memref<512x33xf32, #tpu.memory_space<vmem>>, vector<32x33xf32>,
    %167 = vector.extract_strided_slice %162 {offsets = [0, 2], sizes = [32, 33], strides = [1, 1]} : vector<32x48xf32> to vector<32x33xf32>
    %c64_91 = arith.constant 64 : index
    %c0_92 = arith.constant 0 : index
    %168 = vector.load %arg14[%c64_91, %c0_92] : memref<512x33xf32, #tpu.memory_space<vmem>>, vector<32x33xf32>
    tpu.vector_store %arg14[%c64_91, %c0_92], %167 {strides = array<i32>} : memref<512x33xf32, #tpu.memory_space<vmem>>, vector<32x33xf32>,
    %169 = vector.extract_strided_slice %162 {offsets = [0, 3], sizes = [32, 33], strides = [1, 1]} : vector<32x48xf32> to vector<32x33xf32>
    %c96_93 = arith.constant 96 : index
    %c0_94 = arith.constant 0 : index
    %170 = vector.load %arg14[%c96_93, %c0_94] : memref<512x33xf32, #tpu.memory_space<vmem>>, vector<32x33xf32>
    tpu.vector_store %arg14[%c96_93, %c0_94], %169 {strides = array<i32>} : memref<512x33xf32, #tpu.memory_space<vmem>>, vector<32x33xf32>,
    %171 = vector.extract_strided_slice %162 {offsets = [0, 4], sizes = [32, 33], strides = [1, 1]} : vector<32x48xf32> to vector<32x33xf32>
    %c128_95 = arith.constant 128 : index
    %c0_96 = arith.constant 0 : index
    %172 = vector.load %arg14[%c128_95, %c0_96] : memref<512x33xf32, #tpu.memory_space<vmem>>, vector<32x33xf32>
    tpu.vector_store %arg14[%c128_95, %c0_96], %171 {strides = array<i32>} : memref<512x33xf32, #tpu.memory_space<vmem>>, vector<32x33xf32>,
    %173 = vector.extract_strided_slice %162 {offsets = [0, 5], sizes = [32, 33], strides = [1, 1]} : vector<32x48xf32> to vector<32x33xf32>
    %c160_97 = arith.constant 160 : index
    %c0_98 = arith.constant 0 : index
    %174 = vector.load %arg14[%c160_97, %c0_98] : memref<512x33xf32, #tpu.memory_space<vmem>>, vector<32x33xf32>
    tpu.vector_store %arg14[%c160_97, %c0_98], %173 {strides = array<i32>} : memref<512x33xf32, #tpu.memory_space<vmem>>, vector<32x33xf32>,
    %175 = vector.extract_strided_slice %162 {offsets = [0, 6], sizes = [32, 33], strides = [1, 1]} : vector<32x48xf32> to vector<32x33xf32>
    %c192_99 = arith.constant 192 : index
    %c0_100 = arith.constant 0 : index
    %176 = vector.load %arg14[%c192_99, %c0_100] : memref<512x33xf32, #tpu.memory_space<vmem>>, vector<32x33xf32>
    tpu.vector_store %arg14[%c192_99, %c0_100], %175 {strides = array<i32>} : memref<512x33xf32, #tpu.memory_space<vmem>>, vector<32x33xf32>,
    %177 = vector.extract_strided_slice %162 {offsets = [0, 7], sizes = [32, 33], strides = [1, 1]} : vector<32x48xf32> to vector<32x33xf32>
    %c224_101 = arith.constant 224 : index
    %c0_102 = arith.constant 0 : index
    %178 = vector.load %arg14[%c224_101, %c0_102] : memref<512x33xf32, #tpu.memory_space<vmem>>, vector<32x33xf32>
    tpu.vector_store %arg14[%c224_101, %c0_102], %177 {strides = array<i32>} : memref<512x33xf32, #tpu.memory_space<vmem>>, vector<32x33xf32>,
    %179 = vector.extract_strided_slice %162 {offsets = [0, 8], sizes = [32, 33], strides = [1, 1]} : vector<32x48xf32> to vector<32x33xf32>
    %c256_103 = arith.constant 256 : index
    %c0_104 = arith.constant 0 : index
    %180 = vector.load %arg14[%c256_103, %c0_104] : memref<512x33xf32, #tpu.memory_space<vmem>>, vector<32x33xf32>
    tpu.vector_store %arg14[%c256_103, %c0_104], %179 {strides = array<i32>} : memref<512x33xf32, #tpu.memory_space<vmem>>, vector<32x33xf32>,
    %181 = vector.extract_strided_slice %162 {offsets = [0, 9], sizes = [32, 33], strides = [1, 1]} : vector<32x48xf32> to vector<32x33xf32>
    %c288_105 = arith.constant 288 : index
    %c0_106 = arith.constant 0 : index
    %182 = vector.load %arg14[%c288_105, %c0_106] : memref<512x33xf32, #tpu.memory_space<vmem>>, vector<32x33xf32>
    tpu.vector_store %arg14[%c288_105, %c0_106], %181 {strides = array<i32>} : memref<512x33xf32, #tpu.memory_space<vmem>>, vector<32x33xf32>,
    %183 = vector.extract_strided_slice %162 {offsets = [0, 10], sizes = [32, 33], strides = [1, 1]} : vector<32x48xf32> to vector<32x33xf32>
    %c320_107 = arith.constant 320 : index
    %c0_108 = arith.constant 0 : index
    %184 = vector.load %arg14[%c320_107, %c0_108] : memref<512x33xf32, #tpu.memory_space<vmem>>, vector<32x33xf32>
    tpu.vector_store %arg14[%c320_107, %c0_108], %183 {strides = array<i32>} : memref<512x33xf32, #tpu.memory_space<vmem>>, vector<32x33xf32>,
    %185 = vector.extract_strided_slice %162 {offsets = [0, 11], sizes = [32, 33], strides = [1, 1]} : vector<32x48xf32> to vector<32x33xf32>
    %c352_109 = arith.constant 352 : index
    %c0_110 = arith.constant 0 : index
    %186 = vector.load %arg14[%c352_109, %c0_110] : memref<512x33xf32, #tpu.memory_space<vmem>>, vector<32x33xf32>
    tpu.vector_store %arg14[%c352_109, %c0_110], %185 {strides = array<i32>} : memref<512x33xf32, #tpu.memory_space<vmem>>, vector<32x33xf32>,
    %187 = vector.extract_strided_slice %162 {offsets = [0, 12], sizes = [32, 33], strides = [1, 1]} : vector<32x48xf32> to vector<32x33xf32>
    %c384_111 = arith.constant 384 : index
    %c0_112 = arith.constant 0 : index
    %188 = vector.load %arg14[%c384_111, %c0_112] : memref<512x33xf32, #tpu.memory_space<vmem>>, vector<32x33xf32>
    tpu.vector_store %arg14[%c384_111, %c0_112], %187 {strides = array<i32>} : memref<512x33xf32, #tpu.memory_space<vmem>>, vector<32x33xf32>,
    %189 = vector.extract_strided_slice %162 {offsets = [0, 13], sizes = [32, 33], strides = [1, 1]} : vector<32x48xf32> to vector<32x33xf32>
    %c416_113 = arith.constant 416 : index
    %c0_114 = arith.constant 0 : index
    %190 = vector.load %arg14[%c416_113, %c0_114] : memref<512x33xf32, #tpu.memory_space<vmem>>, vector<32x33xf32>
    tpu.vector_store %arg14[%c416_113, %c0_114], %189 {strides = array<i32>} : memref<512x33xf32, #tpu.memory_space<vmem>>, vector<32x33xf32>,
    %191 = vector.extract_strided_slice %162 {offsets = [0, 14], sizes = [32, 33], strides = [1, 1]} : vector<32x48xf32> to vector<32x33xf32>
    %c448_115 = arith.constant 448 : index
    %c0_116 = arith.constant 0 : index
    %192 = vector.load %arg14[%c448_115, %c0_116] : memref<512x33xf32, #tpu.memory_space<vmem>>, vector<32x33xf32>
    tpu.vector_store %arg14[%c448_115, %c0_116], %191 {strides = array<i32>} : memref<512x33xf32, #tpu.memory_space<vmem>>, vector<32x33xf32>,
    %193 = vector.extract_strided_slice %162 {offsets = [0, 15], sizes = [32, 33], strides = [1, 1]} : vector<32x48xf32> to vector<32x33xf32>
    %c480_117 = arith.constant 480 : index
    %c0_118 = arith.constant 0 : index
    %194 = vector.load %arg14[%c480_117, %c0_118] : memref<512x33xf32, #tpu.memory_space<vmem>>, vector<32x33xf32>
    tpu.vector_store %arg14[%c480_117, %c0_118], %193 {strides = array<i32>} : memref<512x33xf32, #tpu.memory_space<vmem>>, vector<32x33xf32>,
    %c0_119 = arith.constant 0 : index
    %c0_120 = arith.constant 0 : index
    %195 = vector.load %arg7[%c0_119, %c0_120] : memref<32x512xbf16, #tpu.memory_space<vmem>>, vector<32x512xbf16>
    %c0_121 = arith.constant 0 : index
    %c0_122 = arith.constant 0 : index
    %196 = vector.load %arg14[%c0_121, %c0_122] : memref<512x33xf32, #tpu.memory_space<vmem>>, vector<512x33xf32>
    %197 = arith.truncf %196 : vector<512x33xf32> to vector<512x33xbf16>
    %cst_123 = arith.constant dense<0.000000e+00> : vector<32x33xf32>
    %198 = tpu.matmul %195, %197, %cst_123 {dimension_numbers = #tpu.dot_dimension_numbers<[1], [0], [0], [1], [0, 0, 1, 1], [], []>} : vector<32x512xbf16>, vector<512x33xbf16>, vector<32x33xf32> -> vector<32x33xf32>
    %c0_124 = arith.constant 0 : index
    %c0_125 = arith.constant 0 : index
    %199 = vector.load %arg8[%c0_124, %c0_125] : memref<32x1xf32, #tpu.memory_space<vmem>>, vector<32x1xf32>
    %200 = vector.broadcast %199 : vector<32x1xf32> to vector<32x33xf32>
    %201 = arith.addf %198, %200 : vector<32x33xf32>
    %cst_126 = arith.constant 0.000000e+00 : f32
    %202 = vector.broadcast %cst_126 : f32 to vector<32x33xf32>
    %203 = arith.cmpf ogt, %201, %202 : vector<32x33xf32>
    %cst_127 = arith.constant 0.000000e+00 : f32
    %204 = vector.broadcast %cst_127 : f32 to vector<32x33xf32>
    %205 = arith.minimumf %201, %204 : vector<32x33xf32>
    %206 = math.exp %205 : vector<32x33xf32>
    %cst_128 = arith.constant 1.000000e+00 : f32
    %207 = vector.broadcast %cst_128 : f32 to vector<32x33xf32>
    %208 = arith.subf %206, %207 : vector<32x33xf32>
    %209 = arith.select %203, %201, %208 : vector<32x33xi1>, vector<32x33xf32>
    %210 = arith.truncf %209 : vector<32x33xf32> to vector<32x33xbf16>
    %c0_129 = arith.constant 0 : index
    %c0_130 = arith.constant 0 : index
    %211 = vector.load %arg9[%c0_129, %c0_130] : memref<33x4xbf16, #tpu.memory_space<vmem>>, vector<33x4xbf16>
    %cst_131 = arith.constant dense<0.000000e+00> : vector<32x4xf32>
    %212 = tpu.matmul %210, %211, %cst_131 {dimension_numbers = #tpu.dot_dimension_numbers<[1], [0], [0], [1], [0, 0, 1, 1], [], []>} : vector<32x33xbf16>, vector<33x4xbf16>, vector<32x4xf32> -> vector<32x4xf32>
    %c0_132 = arith.constant 0 : index
    %c0_133 = arith.constant 0 : index
    %c0_134 = arith.constant 0 : index
    %213 = vector.load %arg10[%c0_132, %c0_133, %c0_134] : memref<4x32x4xf32, #tpu.memory_space<vmem>>, vector<4x32x4xf32>
    %214 = vector.shape_cast %212 : vector<32x4xf32> to vector<1x32x4xf32>
    %215 = vector.broadcast %214 : vector<1x32x4xf32> to vector<4x32x4xf32>
    %216 = arith.mulf %213, %215 : vector<4x32x4xf32>
    %cst_135 = arith.constant dense<0.000000e+00> : vector<4x4xf32>
    %217 = vector.multi_reduction <add>, %216, %cst_135 [1] : vector<4x32x4xf32> to vector<4x4xf32>
    %cst_136 = arith.constant dense<0.000000e+00> : vector<4xf32>
    %218 = vector.multi_reduction <add>, %217, %cst_136 [1] : vector<4x4xf32> to vector<4xf32>
    %c0_137 = arith.constant 0 : index
    %c0_138 = arith.constant 0 : index
    %219 = vector.load %arg11[%c0_137, %c0_138] : memref<4x1xf32, #tpu.memory_space<vmem>>, vector<4x1xf32>
    %220 = vector.shape_cast %219 : vector<4x1xf32> to vector<4xf32>
    %221 = arith.addf %218, %220 : vector<4xf32>
    %c0_139 = arith.constant 0 : index
    %c0_140 = arith.constant 0 : index
    %c0_141 = arith.constant 0 : index
    %222 = vector.load %arg12[%c0_139, %c0_140, %c0_141] : memref<1x1x4xf32, #tpu.memory_space<vmem>>, vector<1x1x4xf32>
    %223 = vector.shape_cast %222 : vector<1x1x4xf32> to vector<4xf32>
    %224 = vector.shape_cast %221 : vector<4xf32> to vector<1x1x4xf32>
    tpu.vector_store %arg12[%c0_139, %c0_140, %c0_141], %224 {strides = array<i32>} : memref<1x1x4xf32, #tpu.memory_space<vmem>>, vector<1x1x4xf32>,
    return
  }
  func.func @transform_0(%arg0: i32) -> (i32, i32, i32) {
    %c0_i32 = arith.constant 0 : i32
    %c0_i32_0 = arith.constant 0 : i32
    %c0_i32_1 = arith.constant 0 : i32
    return %arg0, %c0_i32, %c0_i32_0 : i32, i32, i32
  }
  func.func @transform_1(%arg0: i32) -> (i32, i32) {
    %c0_i32 = arith.constant 0 : i32
    %c0_i32_0 = arith.constant 0 : i32
    %c0_i32_1 = arith.constant 0 : i32
    return %c0_i32, %c0_i32_0 : i32, i32
  }
  func.func @transform_2(%arg0: i32) -> (i32, i32) {
    %c0_i32 = arith.constant 0 : i32
    %c0_i32_0 = arith.constant 0 : i32
    %c0_i32_1 = arith.constant 0 : i32
    return %c0_i32, %c0_i32_0 : i32, i32
  }
  func.func @transform_3(%arg0: i32) -> (i32, i32) {
    %c0_i32 = arith.constant 0 : i32
    %c0_i32_0 = arith.constant 0 : i32
    %c0_i32_1 = arith.constant 0 : i32
    return %c0_i32, %c0_i32_0 : i32, i32
  }
  func.func @transform_4(%arg0: i32) -> (i32, i32) {
    %c0_i32 = arith.constant 0 : i32
    %c0_i32_0 = arith.constant 0 : i32
    %c0_i32_1 = arith.constant 0 : i32
    return %c0_i32, %c0_i32_0 : i32, i32
  }
  func.func @transform_5(%arg0: i32) -> (i32, i32) {
    %c0_i32 = arith.constant 0 : i32
    %c0_i32_0 = arith.constant 0 : i32
    %c0_i32_1 = arith.constant 0 : i32
    return %c0_i32, %c0_i32_0 : i32, i32
  }
  func.func @transform_6(%arg0: i32) -> (i32, i32) {
    %c0_i32 = arith.constant 0 : i32
    %c0_i32_0 = arith.constant 0 : i32
    %c0_i32_1 = arith.constant 0 : i32
    return %c0_i32, %c0_i32_0 : i32, i32
  }
  func.func @transform_7(%arg0: i32) -> (i32, i32) {
    %c0_i32 = arith.constant 0 : i32
    %c0_i32_0 = arith.constant 0 : i32
    %c0_i32_1 = arith.constant 0 : i32
    return %c0_i32, %c0_i32_0 : i32, i32
  }
  func.func @transform_8(%arg0: i32) -> (i32, i32) {
    %c0_i32 = arith.constant 0 : i32
    %c0_i32_0 = arith.constant 0 : i32
    %c0_i32_1 = arith.constant 0 : i32
    return %c0_i32, %c0_i32_0 : i32, i32
  }
  func.func @transform_9(%arg0: i32) -> (i32, i32, i32) {
    %c0_i32 = arith.constant 0 : i32
    %c0_i32_0 = arith.constant 0 : i32
    %c0_i32_1 = arith.constant 0 : i32
    %c0_i32_2 = arith.constant 0 : i32
    return %c0_i32, %c0_i32_0, %c0_i32_1 : i32, i32, i32
  }
  func.func @transform_10(%arg0: i32) -> (i32, i32) {
    %c0_i32 = arith.constant 0 : i32
    %c0_i32_0 = arith.constant 0 : i32
    %c0_i32_1 = arith.constant 0 : i32
    return %c0_i32, %c0_i32_0 : i32, i32
  }
  func.func @transform_11(%arg0: i32) -> (i32, i32, i32) {
    %c0_i32 = arith.constant 0 : i32
    %c0_i32_0 = arith.constant 0 : i32
    %c0_i32_1 = arith.constant 0 : i32
    return %arg0, %c0_i32, %c0_i32_0 : i32, i32, i32
  }
}

</mosaic_0001>

<bundles_post_ra>
// kernel: _eegnet_forward_impl.1
= control target key start
LH: loop header
LB: loop body
LE: loop exit
PB: predicated region body
PF: predicated region fallthrough
CT: control target
= control target key end

     0   :  { %s5383_s0 = inlined_call_operand.vmem [shape: bf16[2,8,192], index: 0, kind: input, shape index: {}]   ;;  %s5384_s1 = inlined_call_operand.vmem [shape: bf16[128,512], index: 1, kind: input, shape index: {}]   ;;  %s5385_s2 = inlined_call_operand.vmem [shape: f32[128,1], index: 2, kind: input, shape index: {}]   ;;  %s5386_s3 = inlined_call_operand.vmem [shape: bf16[32,128], index: 3, kind: input, shape index: {}]   ;;  %s5387_s4 = inlined_call_operand.vmem [shape: f32[32,1], index: 4, kind: input, shape index: {}]   ;;  %s5388_s5 = inlined_call_operand.vmem [shape: bf16[129,48], index: 5, kind: input, shape index: {}]   ;;  %s5389_s6 = inlined_call_operand.vmem [shape: bf16[32,512], index: 6, kind: input, shape index: {}]   ;;  %s5390_s7 = inlined_call_operand.vmem [shape: f32[32,1], index: 7, kind: input, shape index: {}]   ;;  %s5391_s8 = inlined_call_operand.vmem [shape: bf16[33,4], index: 8, kind: input, shape index: {}]   ;;  %s5392_s9 = inlined_call_operand.vmem [shape: f32[4,32,4], index: 9, kind: input, shape index: {}]   ;;  %s5393_s10 = inlined_call_operand.vmem [shape: f32[4,1], index: 10, kind: input, shape index: {}]   ;;  %s5394_s11 = inlined_call_operand.hbm [shape: f32[2,1,4], index: 11, kind: output, shape index: {}]  }
   0x1   :  { %5426 = sst [smem:[#allocation7_spill]] %s5383_s0 }
   0x2   :  { %5427 = sst [smem:[#allocation8_spill]] %s5384_s1 }
   0x3   :  { %5428 = sst [smem:[#allocation9_spill]] %s5385_s2 }
   0x4   :  { %5429 = sst [smem:[#allocation10_spill]] %s5386_s3 }
   0x5   :  { %5430 = sst [smem:[#allocation11_spill]] %s5387_s4 }
   0x6   :  { %16 = vsyncpa [#allocation5], 0 }
   0x7   :  { %18 = vsyncpa [#allocation5 + $0x1], 0  ;;  %s4115_s17 = smov 0   ;;  %s4117_s18 = smov 0  }
   0x8   :  { %s4119_s19 = smov 0   ;;  %s4121_s20 = smov 0  }
   0x9 LB: > { %s4136_s21 = sadd.s32 4294967295, %s3989_s20   ;;  %s3098_s22 = sadd.s32 4294967294, %s3989_s20   ;;  %s3989_s20 = sphi %s4121_s20, %s5460_s20   ;;  %s3985_s19 = sphi %s4119_s19, %s5459_s19   ;;  %s3981_s18 = sphi %s4117_s18, %s5458_s18   ;;  %s3977_s17 = sphi %s4115_s17, %s5457_s17  }
   0xa   : > { %s4140_s23 = sadd.s32 1, %s3989_s20   ;;  %s267_s24 = sadd.s32 1, %s3985_s19 }
   0xb   : > { %s264_s25 = ssub.s32 %s3989_s20, %s4140_s23  ;;  %p277_p0 = scmp.ne.s32.totalorder %s3985_s19, %s3981_s18 }
   0xc   : > { %p265_p1 = scmp.eq.s32.totalorder %s264_s25, 0  ;;  %p278_p2 = scmp.eq.s32.totalorder %s4136_s21, 1 }
   0xd   : > { %p283_p3 = scmp.ne.s32.totalorder %s3981_s18, %s3977_s17  ;;  %p284_p4 = scmp.eq.s32.totalorder %s3098_s22, 1 }
   0xe   : > { %s4151_s26 = scalar_select %p265_p1, %s3985_s19, %s267_s24  }
   0xf   : > { %p4153_p5 = por %p278_p2, %p277_p0  ;;  %p4157_p6 = por %p284_p4, %p283_p3 }
  0x10   : > { %p3101_p7 = scmp.ge.s32.totalorder %s3989_s20, 1  ;;  %p340_p8 = scmp.lt.s32.totalorder %s3989_s20, 3 }
  0x12   : > { %p341_p9 = pnand %p3101_p7, %p340_p8 }
  0x13   : > { %p379_p10 = scmp.lt.s32.totalorder (!%p341_p9), %s4136_s21, 1  ;;  %s5433_s0 = sld [smem:[#allocation7_spill]] (!%p341_p9) }
  0x14   : > { %344 = sbr.rel (%p341_p9) target bundleno = 1858 (0x742), region = 64  ;;  %s5399_s15 = smov (!%p341_p9), 114  }
  0x15   : > { %s3992_s16 = smov (!%p341_p9), 82   ;;  %s3993_s22 = smov (!%p341_p9), 66  }
  0x16   : > { %s5423_s24 = smov (!%p341_p9), 113   ;;  %s3995_s25 = smov (!%p341_p9), 81  }
  0x17   : > { %s3998_s12 = smov (!%p341_p9), 98   ;;  %s3999_s13 = smov (!%p341_p9), 84  }
  0x18   : > { %s5434_s2 = sld [smem:[#allocation9_spill]] (!%p341_p9) }
  0x19   : > { %s380_s29 = scalar_select %p379_p10, %s4136_s21, 1  ;;  %vm389_vm0 = vcmask 7168   ;;  %vm1007_vm1 = vcmask 539648   ;;  %vm1017_vm2 = vcmask 531456   ;;  %vm827_vm3 = vcmask 687104  }
  0x1a   : > { %vm527_vm4 = vcmask 932864   ;;  %vm847_vm5 = vcmask 670720   ;;  %vm517_vm6 = vcmask 941056   ;;  %vm537_vm7 = vcmask 924672   ;;  %s5435_s1 = sld [smem:[#allocation8_spill]] }
  0x1b   : > { %s3362_s30 = sshll.u32 %s380_s29, 3  ;;  %s3996_s29 = smov 65   ;;  %vm857_vm8 = vcmask 662528   ;;  %vm667_vm9 = vcmask 818176   ;;  %vm697_vm10 = vcmask 793600   ;;  %vm687_vm11 = vcmask 801792  }
  0x1c   : > { %s383_s14 = scalar_lea.vmem %s5433_s0, %s3362_s30  ;;  %s3997_s30 = smov 97   ;;  %vm817_vm12 = vcmask 695296   ;;  %vm507_vm13 = vcmask 949248   ;;  %vm837_vm14 = vcmask 678912   ;;  %vm967_vm15 = vcmask 572416  }
  0x1d   : > { %v4168_v0 = vld [vmem:[%s383_s14] sm:$0xff]  ;;  %s5395_s14 = smov 116   ;;  %s5436_s4 = sld [smem:[#allocation11_spill]] }
  0x1e   : > { %v386_v1 = vunpack.c.l.bf16 %v4168_v0  ;;  %v387_v2 = vunpack.c.h.bf16 %v4168_v0  ;;  %s5439_s3 = sld [smem:[#allocation10_spill]]  ;;  %s5452_s0 = smov 123  }
  0x20   : > { %v4174_v3 = vpack.i.bf16 %v387_v2, %v386_v1  ;;  %388 = vst [vmem:[#allocation2] sm:$0xff] %v386_v1 }
  0x21   : > { %390 = vst.msk [vmem:[#allocation2 + $0x8] sm:$0xff] %vm389_vm0, %v387_v2 }
  0x22   : > { %3532 = vrot.lane.b32.xlu1 %v4174_v3, %s5399_s15  ;;  %3522 = vrot.lane.b32.xlu0 %v4174_v3, %s3992_s16  ;;  %s4001_s16 = smov 83   ;;  %s5401_s15 = smov 120  }
  0x23   : > { %3542 = vrot.lane.b32.xlu2 %v4174_v3, %s3993_s22  ;;  %s5397_s22 = smov 115  }
  0x2a   : > { %3537 = vrot.lane.b32.xlu1 %v4174_v3, %s5423_s24  ;;  %3527 = vrot.lane.b32.xlu0 %v4174_v3, %s3995_s25  ;;  %s4003_s25 = smov 67   ;;  %s5444_s24 = smov 117  }
  0x2b   : > { %3547 = vrot.lane.b32.xlu2 %v4174_v3, %s3996_s29  ;;  %s4004_s29 = smov 68  }
  0x32   : > { %3557 = vrot.lane.b32.xlu1 %v4174_v3, %s3997_s30  ;;  %3552 = vrot.lane.b32.xlu0 %v4174_v3, %s3998_s12  ;;  %s4005_s30 = smov 100   ;;  %s4006_s12 = smov 86  }
  0x33   : > { %3562 = vrot.lane.b32.xlu2 %v4174_v3, %s3999_s13  ;;  %s4007_s13 = smov 99  }
  0x3a   : > { %3572 = vrot.lane.b32.xlu1 %v4174_v3, %s5395_s14  ;;  %3567 = vrot.lane.b32.xlu0 %v4174_v3, %s4001_s16  ;;  %s4008_s16 = smov 85   ;;  %s5419_s14 = smov 117  }
  0x3b   : > { %3577 = vrot.lane.b32.xlu2 %v4174_v3, %s5397_s22  ;;  %s4016_s22 = smov 88  }
  0x42   : > { %3587 = vrot.lane.b32.xlu1 %v4174_v3, %s4003_s25  ;;  %3582 = vrot.lane.b32.xlu0 %v4174_v3, %s4004_s29  ;;  %s5417_s25 = smov 118   ;;  %s4011_s29 = smov 70  }
  0x43   : > { %3592 = vrot.lane.b32.xlu2 %v4174_v3, %s4005_s30  ;;  %s4012_s30 = smov 102  }
  0x4a   : > { %3602 = vrot.lane.b32.xlu1 %v4174_v3, %s4006_s12  ;;  %3597 = vrot.lane.b32.xlu0 %v4174_v3, %s4007_s13  ;;  %s4013_s12 = smov 69   ;;  %s4014_s13 = smov 101  }
  0x4b   : > { %3607 = vrot.lane.b32.xlu2 %v4174_v3, %s4008_s16  ;;  %s4015_s16 = smov 87  }
  0x52   : > { %3617 = vrot.lane.b32.xlu1 %v4174_v3, %s5419_s14  ;;  %3612 = vrot.lane.b32.xlu0 %v4174_v3, %s5417_s25  ;;  %s5442_s14 = smov 113   ;;  %s5443_s25 = smov 125  }
  0x53   : > { %3622 = vrot.lane.b32.xlu2 %v4174_v3, %s4011_s29  ;;  %s4018_s29 = smov 72  }
  0x5a   : > { %3632 = vrot.lane.b32.xlu1 %v4174_v3, %s4012_s30  ;;  %3627 = vrot.lane.b32.xlu0 %v4174_v3, %s4013_s12  ;;  %s5403_s30 = smov 119   ;;  %s4020_s12 = smov 71  }
  0x5b   : > { %3637 = vrot.lane.b32.xlu2 %v4174_v3, %s4014_s13  ;;  %s4022_s13 = smov 104  }
  0x62   : > { %3647 = vrot.lane.b32.xlu1 %v4174_v3, %s4015_s16  ;;  %3642 = vrot.lane.b32.xlu0 %v4174_v3, %s4016_s22  ;;  %s4021_s22 = smov 103   ;;  %s4023_s16 = smov 90  }
  0x63   : > { %3652 = vrot.lane.b32.xlu2 %v4174_v3, %s5401_s15  ;;  %s4025_s15 = smov 89  }
  0x6a   : > { %3662 = vrot.lane.b32.xlu1 %v4174_v3, %s4018_s29  ;;  %3657 = vrot.lane.b32.xlu0 %v4174_v3, %s5403_s30  ;;  %s5413_s29 = smov 122   ;;  %s4031_s30 = smov 105  }
  0x6b   : > { %3667 = vrot.lane.b32.xlu2 %v4174_v3, %s4020_s12  ;;  %s5415_s12 = smov 121  }
  0x72   : > { %3677 = vrot.lane.b32.xlu1 %v4174_v3, %s4021_s22  ;;  %3672 = vrot.lane.b32.xlu0 %v4174_v3, %s4022_s13  ;;  %s4027_s22 = smov 73   ;;  %s4028_s13 = smov 74  }
  0x73   : > { %3682 = vrot.lane.b32.xlu2 %v4174_v3, %s4023_s16  ;;  %s4029_s16 = smov 106  }
  0x7a   : > { %3692 = vrot.lane.b32.xlu1 %v4174_v3, %s5413_s29  ;;  %3687 = vrot.lane.b32.xlu0 %v4174_v3, %s4025_s15  ;;  %s4030_s15 = smov 92   ;;  %s5446_s29 = smov 114  }
  0x7b   : > { %3697 = vrot.lane.b32.xlu2 %v4174_v3, %s5415_s12  ;;  %s5447_s12 = smov 121  }
  0x7d   : > { %v3543_v4 = vpop.permute.xlu2 %3542 }
  0x7e   : > { %v3545_v5 = vunpack.i.h.bf16 %v3543_v4  ;;  %v3544_v6 = vunpack.i.l.bf16 %v3543_v4 }
  0x80   : > { %1012 = vst.msk [vmem:[#allocation2 + $0x3e8] sm:$0xff] %vm389_vm0, %v3545_v5  ;;  %v1008_v7 = vsel %vm1007_vm1, %v3544_v6, %v3545_v5  ;;  %vm997_vm1 = vcmask 547840  }
  0x82   : > { %3707 = vrot.lane.b32.xlu1 %v4174_v3, %s4027_s22  ;;  %3702 = vrot.lane.b32.xlu0 %v4174_v3, %s4028_s13  ;;  %s4032_s22 = smov 91   ;;  %s5407_s13 = smov 123  }
  0x83   : > { %3712 = vrot.lane.b32.xlu2 %v4174_v3, %s4029_s16  ;;  %s5405_s16 = smov 124  }
  0x85   : > { %v3548_v8 = vpop.permute.xlu2 %3547 }
  0x86   : > { %v3550_v9 = vunpack.i.h.bf16 %v3548_v8  ;;  %v3549_v10 = vunpack.i.l.bf16 %v3548_v8 }
  0x88   : > { %1022 = vst.msk [vmem:[#allocation2 + $0x3f8] sm:$0xff] %vm389_vm0, %v3550_v9  ;;  %v1018_v11 = vsel %vm1017_vm2, %v3549_v10, %v3550_v9  ;;  %vm987_vm2 = vcmask 556032  }
  0x89   : > { %v1245_v12 = vpack.c.bf16 %v1018_v11, %v1008_v7 }
  0x8a   : > { %3722 = vrot.lane.b32.xlu1 %v4174_v3, %s4030_s15  ;;  %3717 = vrot.lane.b32.xlu0 %v4174_v3, %s4031_s30  ;;  %s4035_s30 = smov 76   ;;  %s4036_s15 = smov 108  }
  0x8b   : > { %3727 = vrot.lane.b32.xlu2 %v4174_v3, %s4032_s22  ;;  %1650 = vmatpush.bf16.msra.mxu3 %v1245_v12  ;;  %s4037_s22 = smov 75  }
  0x8d   : > { %v3563_v13 = vpop.permute.xlu2 %3562 }
  0x8e   : > { %v3565_v14 = vunpack.i.h.bf16 %v3563_v13  ;;  %v3564_v15 = vunpack.i.l.bf16 %v3563_v13 }
  0x90   : > { %832 = vst.msk [vmem:[#allocation2 + $0x2c8] sm:$0xff] %vm389_vm0, %v3565_v14  ;;  %v4234_v16 = vsel %vm827_vm3, %v3564_v15, %v3565_v14  ;;  %vm657_vm3 = vcmask 826368  }
  0x92   : > { %3737 = vrot.lane.b32.xlu1 %v4174_v3, %s5407_s13  ;;  %3732 = vrot.lane.b32.xlu0 %v4174_v3, %s5405_s16  ;;  %s4044_s16 = smov 77   ;;  %s4047_s13 = smov 96  }
  0x93   : > { %3742 = vrot.lane.b32.xlu2 %v4174_v3, %s4035_s30  ;;  %s4038_s30 = smov 107  }
  0x94   : > { %v3533_v17 = vpop.permute.xlu1 %3532  ;;  %v3523_v18 = vpop.permute.xlu0 %3522 }
  0x95   : > { %v3535_v19 = vunpack.i.h.bf16 %v3533_v17  ;;  %v3534_v20 = vunpack.i.l.bf16 %v3533_v17  ;;  %v3525_v21 = vunpack.i.h.bf16 %v3523_v18  ;;  %v3524_v22 = vunpack.i.l.bf16 %v3523_v18  ;;  %v3578_v23 = vpop.permute.xlu2 %3577 }
  0x96   : > { %v3580_v24 = vunpack.i.h.bf16 %v3578_v23  ;;  %v3579_v25 = vunpack.i.l.bf16 %v3578_v23 }
  0x97   : > { %532 = vst.msk [vmem:[#allocation2 + $0xe8] sm:$0xff] %vm389_vm0, %v3535_v19  ;;  %v528_v26 = vsel %vm527_vm4, %v3534_v20, %v3535_v19  ;;  %v848_v27 = vsel %vm847_vm5, %v3524_v22, %v3525_v21  ;;  %vm807_vm4 = vcmask 703488   ;;  %vm677_vm5 = vcmask 809984  }
  0x98   : > { %852 = vst.msk [vmem:[#allocation2 + $0x2e8] sm:$0xff] %vm389_vm0, %v3525_v21  ;;  %v4243_v28 = vsel %vm517_vm6, %v3579_v25, %v3580_v24  ;;  %vm467_vm6 = vcmask 982016  }
  0x99   : > { %522 = vst.msk [vmem:[#allocation2 + $0xd8] sm:$0xff] %vm389_vm0, %v3580_v24 }
  0x9a   : > { %3752 = vrot.lane.b32.xlu1 %v4174_v3, %s4036_s15  ;;  %3747 = vrot.lane.b32.xlu0 %v4174_v3, %s4037_s22  ;;  %s4039_s15 = smov 93   ;;  %s4040_s22 = smov 94  }
  0x9b   : > { %3757 = vrot.lane.b32.xlu2 %v4174_v3, %s4038_s30  ;;  %s5411_s30 = smov 126  }
  0x9c   : > { %v3538_v29 = vpop.permute.xlu1 %3537  ;;  %v3528_v30 = vpop.permute.xlu0 %3527 }
  0x9d   : > { %v3540_v31 = vunpack.i.h.bf16 %v3538_v29  ;;  %v3539_v32 = vunpack.i.l.bf16 %v3538_v29  ;;  %v3530_v33 = vunpack.i.h.bf16 %v3528_v30  ;;  %v3529_v34 = vunpack.i.l.bf16 %v3528_v30  ;;  %v3593_v35 = vpop.permute.xlu2 %3592 }
  0x9e   : > { %v3595_v36 = vunpack.i.h.bf16 %v3593_v35  ;;  %v3594_v37 = vunpack.i.l.bf16 %v3593_v35 }
  0x9f   : > { %542 = vst.msk [vmem:[#allocation2 + $0xf8] sm:$0xff] %vm389_vm0, %v3540_v31  ;;  %v538_v38 = vsel %vm537_vm7, %v3539_v32, %v3540_v31  ;;  %v858_v39 = vsel %vm857_vm8, %v3529_v34, %v3530_v33  ;;  %vm497_vm7 = vcmask 957440   ;;  %vm487_vm8 = vcmask 965632  }
  0xa0   : > { %v1197_v40 = vpack.c.bf16 %v538_v38, %v528_v26  ;;  %v1229_v41 = vpack.c.bf16 %v858_v39, %v848_v27  ;;  %862 = vst.msk [vmem:[#allocation2 + $0x2f8] sm:$0xff] %vm389_vm0, %v3530_v33  ;;  %v4251_v42 = vsel %vm667_vm9, %v3594_v37, %v3595_v36  ;;  %vm957_vm9 = vcmask 580608  }
  0xa1   : > { %672 = vst.msk [vmem:[#allocation2 + $0x1c8] sm:$0xff] %vm389_vm0, %v3595_v36 }
  0xa2   : > { %3767 = vrot.lane.b32.xlu1 %v4174_v3, %s4039_s15  ;;  %3762 = vrot.lane.b32.xlu0 %v4174_v3, %s4040_s22  ;;  %s4042_s15 = smov 78   ;;  %s5421_s22 = smov 125  }
  0xa3   : > { %1503 = vmatpush.bf16.msra.mxu0 %v1197_v40  ;;  %1601 = vmatpush.bf16.msra.mxu2 %v1229_v41 }
  0xa4   : > { %v3558_v43 = vpop.permute.xlu1 %3557  ;;  %v3553_v44 = vpop.permute.xlu0 %3552  ;;  %3772 = vrot.lane.b32.xlu2 %v4174_v3, %s5411_s30  ;;  %s5450_s30 = smov 126  }
  0xa5   : > { %v3560_v45 = vunpack.i.h.bf16 %v3558_v43  ;;  %v3559_v46 = vunpack.i.l.bf16 %v3558_v43  ;;  %v3555_v47 = vunpack.i.h.bf16 %v3553_v44  ;;  %v3554_v48 = vunpack.i.l.bf16 %v3553_v44  ;;  %v3608_v49 = vpop.permute.xlu2 %3607 }
  0xa6   : > { %v3610_v50 = vunpack.i.h.bf16 %v3608_v49  ;;  %v3609_v51 = vunpack.i.l.bf16 %v3608_v49 }
  0xa7   : > { %702 = vst.msk [vmem:[#allocation2 + $0x1f8] sm:$0xff] %vm389_vm0, %v3560_v45  ;;  %v698_v52 = vsel %vm697_vm10, %v3559_v46, %v3560_v45  ;;  %v688_v53 = vsel %vm687_vm11, %v3554_v48, %v3555_v47  ;;  %vm647_vm10 = vcmask 834560   ;;  %vm977_vm11 = vcmask 564224  }
  0xa8   : > { %v1213_v54 = vpack.c.bf16 %v698_v52, %v688_v53  ;;  %692 = vst.msk [vmem:[#allocation2 + $0x1e8] sm:$0xff] %vm389_vm0, %v3555_v47  ;;  %v4260_v55 = vsel %vm817_vm12, %v3609_v51, %v3610_v50  ;;  %vm767_vm12 = vcmask 736256  }
  0xa9   : > { %822 = vst.msk [vmem:[#allocation2 + $0x2b8] sm:$0xff] %vm389_vm0, %v3610_v50 }
  0xaa   : > { %3782 = vrot.lane.b32.xlu1 %v4174_v3, %s4042_s15  ;;  %3777 = vrot.lane.b32.xlu0 %v4174_v3, %s5421_s22  ;;  %s4046_s15 = smov 110   ;;  %s5445_s22 = smov 118  }
  0xab   : > { %1552 = vmatpush.bf16.msra.mxu1 %v1213_v54 }
  0xac   : > { %v3573_v56 = vpop.permute.xlu1 %3572  ;;  %v3568_v57 = vpop.permute.xlu0 %3567  ;;  %3787 = vrot.lane.b32.xlu2 %v4174_v3, %s4044_s16  ;;  %s4045_s16 = smov 109  }
  0xad   : > { %v3575_v58 = vunpack.i.h.bf16 %v3573_v56  ;;  %v3574_v59 = vunpack.i.l.bf16 %v3573_v56  ;;  %v3570_v60 = vunpack.i.h.bf16 %v3568_v57  ;;  %v3569_v61 = vunpack.i.l.bf16 %v3568_v57  ;;  %v3623_v62 = vpop.permute.xlu2 %3622 }
  0xae   : > { %v3625_v63 = vunpack.i.h.bf16 %v3623_v62  ;;  %v3624_v0 = vunpack.i.l.bf16 %v3623_v62 }
  0xaf   : > { %512 = vst.msk [vmem:[#allocation2 + $0xc8] sm:$0xff] %vm389_vm0, %v3575_v58  ;;  %v508_v1 = vsel %vm507_vm13, %v3574_v59, %v3575_v58  ;;  %v838_v2 = vsel %vm837_vm14, %v3569_v61, %v3570_v60  ;;  %vm797_vm13 = vcmask 711680   ;;  %vm787_vm14 = vcmask 719872  }
  0xb0   : > { %v1227_v4 = vpack.c.bf16 %v838_v2, %v4234_v16  ;;  %v1195_v5 = vpack.c.bf16 %v4243_v28, %v508_v1  ;;  %842 = vst.msk [vmem:[#allocation2 + $0x2d8] sm:$0xff] %vm389_vm0, %v3570_v60  ;;  %v4271_v6 = vsel %vm967_vm15, %v3624_v0, %v3625_v63  ;;  %vm457_vm15 = vcmask 990208  }
  0xb1   : > { %972 = vst.msk [vmem:[#allocation2 + $0x3a8] sm:$0xff] %vm389_vm0, %v3625_v63 }
  0xb2   : > { %3797 = vrot.lane.b32.xlu1 %v4174_v3, %s4045_s16  ;;  %3792 = vrot.lane.b32.xlu0 %v4174_v3, %s4046_s15  ;;  %s5409_s16 = smov 127   ;;  %s4050_s15 = smov 80  }
  0xb3   : > { %1602 = vmatpush.bf16.msra.mxu2 %v1227_v4  ;;  %1504 = vmatpush.bf16.msra.mxu0 %v1195_v5 }
  0xb4   : > { %v3588_v7 = vpop.permute.xlu1 %3587  ;;  %v3583_v8 = vpop.permute.xlu0 %3582  ;;  %3802 = vrot.lane.b32.xlu2 %v4174_v3, %s4047_s13  ;;  %s4049_s13 = smov 95  }
  0xb5   : > { %v3590_v9 = vunpack.i.h.bf16 %v3588_v7  ;;  %v3589_v10 = vunpack.i.l.bf16 %v3588_v7  ;;  %v3585_v11 = vunpack.i.h.bf16 %v3583_v8  ;;  %v3584_v12 = vunpack.i.l.bf16 %v3583_v8  ;;  %v3638_v13 = vpop.permute.xlu2 %3637 }
  0xb6   : > { %v3640_v14 = vunpack.i.h.bf16 %v3638_v13  ;;  %v3639_v15 = vunpack.i.l.bf16 %v3638_v13 }
  0xb7   : > { %1002 = vst.msk [vmem:[#allocation2 + $0x3d8] sm:$0xff] %vm389_vm0, %v3590_v9  ;;  %v998_v16 = vsel %vm997_vm1, %v3589_v10, %v3590_v9  ;;  %v988_v17 = vsel %vm987_vm2, %v3584_v12, %v3585_v11  ;;  %vm947_vm1 = vcmask 588800   ;;  %vm477_vm2 = vcmask 973824  }
  0xb8   : > { %v1243_v18 = vpack.c.bf16 %v998_v16, %v988_v17  ;;  %992 = vst.msk [vmem:[#allocation2 + $0x3c8] sm:$0xff] %vm389_vm0, %v3585_v11  ;;  %v4279_v19 = vsel %vm657_vm3, %v3639_v15, %v3640_v14  ;;  %vm607_vm3 = vcmask 867328  }
  0xb9   : > { %662 = vst.msk [vmem:[#allocation2 + $0x1b8] sm:$0xff] %vm389_vm0, %v3640_v14 }
  0xba   : > { %3812 = vrot.lane.b32.xlu1 %v4174_v3, %s5409_s16  ;;  %3807 = vrot.lane.b32.xlu0 %v4174_v3, %s4049_s13  ;;  %s4051_s13 = smov 112   ;;  %s4053_s16 = smov 111  }
  0xbb   : > { %1651 = vmatpush.bf16.msra.mxu3 %v1243_v18 }
  0xbc   : > { %v3603_v20 = vpop.permute.xlu1 %3602  ;;  %v3598_v21 = vpop.permute.xlu0 %3597  ;;  %3817 = vrot.lane.b32.xlu2 %v4174_v3, %s4050_s15  ;;  %s4052_s15 = smov 79  }
  0xbd   : > { %v3605_v22 = vunpack.i.h.bf16 %v3603_v20  ;;  %v3604_v23 = vunpack.i.l.bf16 %v3603_v20  ;;  %v3600_v24 = vunpack.i.h.bf16 %v3598_v21  ;;  %v3599_v25 = vunpack.i.l.bf16 %v3598_v21  ;;  %v3653_v26 = vpop.permute.xlu2 %3652 }
  0xbe   : > { %v3655_v27 = vunpack.i.h.bf16 %v3653_v26  ;;  %v3654_v28 = vunpack.i.l.bf16 %v3653_v26 }
  0xbf   : > { %812 = vst.msk [vmem:[#allocation2 + $0x2a8] sm:$0xff] %vm389_vm0, %v3605_v22  ;;  %v808_v29 = vsel %vm807_vm4, %v3604_v23, %v3605_v22  ;;  %v678_v30 = vsel %vm677_vm5, %v3599_v25, %v3600_v24  ;;  %vm637_vm4 = vcmask 842752   ;;  %vm627_vm5 = vcmask 850944  }
  0xc0   : > { %v1211_v31 = vpack.c.bf16 %v678_v30, %v4251_v42  ;;  %v1225_v32 = vpack.c.bf16 %v4260_v55, %v808_v29  ;;  %682 = vst.msk [vmem:[#allocation2 + $0x1d8] sm:$0xff] %vm389_vm0, %v3600_v24  ;;  %v4290_v33 = vsel %vm467_vm6, %v3654_v28, %v3655_v27  ;;  %vm757_vm6 = vcmask 744448  }
  0xc1   : > { %472 = vst.msk [vmem:[#allocation2 + $0x88] sm:$0xff] %vm389_vm0, %v3655_v27 }
  0xc2   : > { %3827 = vrot.lane.b32.xlu1 %v4174_v3, %s4051_s13  ;;  %3822 = vrot.lane.b32.xlu0 %v4174_v3, %s4052_s15  ;;  %s5449_s13 = smov 119   ;;  %s5451_s15 = smov 127  }
  0xc3   : > { %1553 = vmatpush.bf16.msra.mxu1 %v1211_v31  ;;  %1603 = vmatpush.bf16.msra.mxu2 %v1225_v32 }
  0xc4   : > { %v3618_v34 = vpop.permute.xlu1 %3617  ;;  %v3613_v35 = vpop.permute.xlu0 %3612  ;;  %3832 = vrot.lane.b32.xlu2 %v4174_v3, %s4053_s16  ;;  %s5448_s16 = smov 122  }
  0xc5   : > { %v3620_v36 = vunpack.i.h.bf16 %v3618_v34  ;;  %v3619_v37 = vunpack.i.l.bf16 %v3618_v34  ;;  %v3615_v38 = vunpack.i.h.bf16 %v3613_v35  ;;  %v3614_v39 = vunpack.i.l.bf16 %v3613_v35  ;;  %v3668_v40 = vpop.permute.xlu2 %3667 }
  0xc6   : > { %v3670_v41 = vunpack.i.h.bf16 %v3668_v40  ;;  %v3669_v42 = vunpack.i.l.bf16 %v3668_v40 }
  0xc7   : > { %502 = vst.msk [vmem:[#allocation2 + $0xb8] sm:$0xff] %vm389_vm0, %v3620_v36  ;;  %v498_v43 = vsel %vm497_vm7, %v3619_v37, %v3620_v36  ;;  %v488_v44 = vsel %vm487_vm8, %v3614_v39, %v3615_v38  ;;  %vm447_vm7 = vcmask 998400   ;;  %vm777_vm8 = vcmask 728064  }
  0xc8   : > { %v1193_v45 = vpack.c.bf16 %v498_v43, %v488_v44  ;;  %492 = vst.msk [vmem:[#allocation2 + $0xa8] sm:$0xff] %vm389_vm0, %v3615_v38  ;;  %v4298_v46 = vsel %vm957_vm9, %v3669_v42, %v3670_v41  ;;  %vm907_vm9 = vcmask 621568  }
  0xc9   : > { %962 = vst.msk [vmem:[#allocation2 + $0x398] sm:$0xff] %vm389_vm0, %v3670_v41 }
  0xca   : > { %1505 = vmatpush.bf16.msra.mxu0 %v1193_v45 }
  0xcc   : > { %v3633_v3 = vpop.permute.xlu1 %3632  ;;  %v3628_v47 = vpop.permute.xlu0 %3627 }
  0xcd   : > { %v3635_v48 = vunpack.i.h.bf16 %v3633_v3  ;;  %v3634_v49 = vunpack.i.l.bf16 %v3633_v3  ;;  %v3630_v50 = vunpack.i.h.bf16 %v3628_v47  ;;  %v3629_v51 = vunpack.i.l.bf16 %v3628_v47  ;;  %v3683_v52 = vpop.permute.xlu2 %3682 }
  0xce   : > { %v3685_v53 = vunpack.i.h.bf16 %v3683_v52  ;;  %v3684_v54 = vunpack.i.l.bf16 %v3683_v52 }
  0xcf   : > { %652 = vst.msk [vmem:[#allocation2 + $0x1a8] sm:$0xff] %vm389_vm0, %v3635_v48  ;;  %v648_v55 = vsel %vm647_vm10, %v3634_v49, %v3635_v48  ;;  %v978_v56 = vsel %vm977_vm11, %v3629_v51, %v3630_v50  ;;  %vm937_vm10 = vcmask 596992   ;;  %vm927_vm11 = vcmask 605184  }
  0xd0   : > { %v1241_v57 = vpack.c.bf16 %v978_v56, %v4271_v6  ;;  %v1209_v58 = vpack.c.bf16 %v4279_v19, %v648_v55  ;;  %982 = vst.msk [vmem:[#allocation2 + $0x3b8] sm:$0xff] %vm389_vm0, %v3630_v50  ;;  %v4305_v59 = vsel %vm767_vm12, %v3684_v54, %v3685_v53  ;;  %vm597_vm12 = vcmask 875520  }
  0xd1   : > { %772 = vst.msk [vmem:[#allocation2 + $0x268] sm:$0xff] %vm389_vm0, %v3685_v53 }
  0xd2   : > { %1652 = vmatpush.bf16.msra.mxu3 %v1241_v57  ;;  %1554 = vmatpush.bf16.msra.mxu1 %v1209_v58 }
  0xd4   : > { %v3648_v60 = vpop.permute.xlu1 %3647  ;;  %v3643_v61 = vpop.permute.xlu0 %3642 }
  0xd5   : > { %v3650_v62 = vunpack.i.h.bf16 %v3648_v60  ;;  %v3649_v63 = vunpack.i.l.bf16 %v3648_v60  ;;  %v3645_v0 = vunpack.i.h.bf16 %v3643_v61  ;;  %v3644_v1 = vunpack.i.l.bf16 %v3643_v61  ;;  %v3698_v2 = vpop.permute.xlu2 %3697 }
  0xd6   : > { %v3700_v4 = vunpack.i.h.bf16 %v3698_v2  ;;  %v3699_v5 = vunpack.i.l.bf16 %v3698_v2 }
  0xd7   : > { %802 = vst.msk [vmem:[#allocation2 + $0x298] sm:$0xff] %vm389_vm0, %v3650_v62  ;;  %v798_v6 = vsel %vm797_vm13, %v3649_v63, %v3650_v62  ;;  %v788_v7 = vsel %vm787_vm14, %v3644_v1, %v3645_v0  ;;  %vm747_vm13 = vcmask 752640   ;;  %vm617_vm14 = vcmask 859136  }
  0xd8   : > { %v1223_v8 = vpack.c.bf16 %v798_v6, %v788_v7  ;;  %792 = vst.msk [vmem:[#allocation2 + $0x288] sm:$0xff] %vm389_vm0, %v3645_v0  ;;  %v4310_v9 = vsel %vm457_vm15, %v3699_v5, %v3700_v4  ;;  %vm407_vm15 = vcmask 1031168  }
  0xd9   : > { %462 = vst.msk [vmem:[#allocation2 + $0x78] sm:$0xff] %vm389_vm0, %v3700_v4 }
  0xda   : > { %1604 = vmatpush.bf16.msra.mxu2 %v1223_v8 }
  0xdc   : > { %v3663_v10 = vpop.permute.xlu1 %3662  ;;  %v3658_v11 = vpop.permute.xlu0 %3657 }
  0xdd   : > { %v3665_v12 = vunpack.i.h.bf16 %v3663_v10  ;;  %v3664_v13 = vunpack.i.l.bf16 %v3663_v10  ;;  %v3660_v14 = vunpack.i.h.bf16 %v3658_v11  ;;  %v3659_v15 = vunpack.i.l.bf16 %v3658_v11  ;;  %v3713_v16 = vpop.permute.xlu2 %3712 }
  0xde   : > { %v3715_v17 = vunpack.i.h.bf16 %v3713_v16  ;;  %v3714_v18 = vunpack.i.l.bf16 %v3713_v16 }
  0xdf   : > { %952 = vst.msk [vmem:[#allocation2 + $0x388] sm:$0xff] %vm389_vm0, %v3665_v12  ;;  %v948_v19 = vsel %vm947_vm1, %v3664_v13, %v3665_v12  ;;  %v478_v20 = vsel %vm477_vm2, %v3659_v15, %v3660_v14  ;;  %v1262_v15 = vld [vmem:[%s5434_s2 + $0x78] sm:$0xff]  ;;  %vm437_vm1 = vcmask 1006592   ;;  %vm427_vm2 = vcmask 1014784  }
  0xe0   : > { %v1191_v21 = vpack.c.bf16 %v478_v20, %v4290_v33  ;;  %v1239_v22 = vpack.c.bf16 %v4298_v46, %v948_v19  ;;  %482 = vst.msk [vmem:[#allocation2 + $0x98] sm:$0xff] %vm389_vm0, %v3660_v14  ;;  %v4317_v23 = vsel %vm607_vm3, %v3714_v18, %v3715_v17  ;;  %v5425_v14 = vmov 0  }
  0xe1   : > { %612 = vst.msk [vmem:[#allocation2 + $0x168] sm:$0xff] %vm389_vm0, %v3715_v17  ;;  %3837 = vset.pattern.permute.xlu1 %v5425_v14  ;;  %3836 = vset.pattern.permute.xlu0 %v5425_v14  ;;  %vm897_vm3 = vcmask 629760  }
  0xe2   : > { %1506 = vmatpush.bf16.msra.mxu0 %v1191_v21  ;;  %1653 = vmatpush.bf16.msra.mxu3 %v1239_v22 }
  0xe3   : > { %1340 = vperm.xlu1 %3837, %v1262_v15   ;;  %3838 = vset.pattern.permute.xlu2 %v5425_v14 }
  0xe4   : > { %v3678_v24 = vpop.permute.xlu1 %3677  ;;  %v3673_v25 = vpop.permute.xlu0 %3672 }
  0xe5   : > { %v3680_v26 = vunpack.i.h.bf16 %v3678_v24  ;;  %v3679_v27 = vunpack.i.l.bf16 %v3678_v24  ;;  %v3675_v28 = vunpack.i.h.bf16 %v3673_v25  ;;  %v3674_v29 = vunpack.i.l.bf16 %v3673_v25  ;;  %v3728_v30 = vpop.permute.xlu2 %3727 }
  0xe6   : > { %v3730_v31 = vunpack.i.h.bf16 %v3728_v30  ;;  %v3729_v32 = vunpack.i.l.bf16 %v3728_v30  ;;  %v1261_v30 = vld [vmem:[%s5434_s2 + $0x70] sm:$0xff] }
  0xe7   : > { %642 = vst.msk [vmem:[#allocation2 + $0x198] sm:$0xff] %vm389_vm0, %v3680_v26  ;;  %v638_v33 = vsel %vm637_vm4, %v3679_v27, %v3680_v26  ;;  %v628_v34 = vsel %vm627_vm5, %v3674_v29, %v3675_v28  ;;  %v1260_v29 = vld [vmem:[%s5434_s2 + $0x68] sm:$0xff]  ;;  %1335 = vperm.xlu0 %3836, %v1261_v30   ;;  %vm587_vm4 = vcmask 883712   ;;  %vm917_vm5 = vcmask 613376  }
  0xe8   : > { %v1207_v35 = vpack.c.bf16 %v638_v33, %v628_v34  ;;  %632 = vst.msk [vmem:[#allocation2 + $0x188] sm:$0xff] %vm389_vm0, %v3675_v28  ;;  %v4322_v36 = vsel %vm757_vm6, %v3729_v32, %v3730_v31  ;;  %vm707_vm6 = vcmask 785408  }
  0xe9   : > { %762 = vst.msk [vmem:[#allocation2 + $0x258] sm:$0xff] %vm389_vm0, %v3730_v31 }
  0xea   : > { %1555 = vmatpush.bf16.msra.mxu1 %v1207_v35 }
  0xeb   : > { %1330 = vperm.xlu1 %3837, %v1260_v29  }
  0xec   : > { %v3693_v37 = vpop.permute.xlu1 %3692  ;;  %v3688_v38 = vpop.permute.xlu0 %3687 }
  0xed   : > { %v3695_v39 = vunpack.i.h.bf16 %v3693_v37  ;;  %v3694_v40 = vunpack.i.l.bf16 %v3693_v37  ;;  %v3690_v41 = vunpack.i.h.bf16 %v3688_v38  ;;  %v3689_v42 = vunpack.i.l.bf16 %v3688_v38  ;;  %v3743_v43 = vpop.permute.xlu2 %3742 }
  0xee   : > { %v3745_v44 = vunpack.i.h.bf16 %v3743_v43  ;;  %v3744_v45 = vunpack.i.l.bf16 %v3743_v43 }
  0xef   : > { %452 = vst.msk [vmem:[#allocation2 + $0x68] sm:$0xff] %vm389_vm0, %v3695_v39  ;;  %v448_v46 = vsel %vm447_vm7, %v3694_v40, %v3695_v39  ;;  %v778_v3 = vsel %vm777_vm8, %v3689_v42, %v3690_v41  ;;  %vm737_vm7 = vcmask 760832   ;;  %vm727_vm8 = vcmask 769024  }
  0xf0   : > { %v1221_v47 = vpack.c.bf16 %v778_v3, %v4305_v59  ;;  %v1189_v48 = vpack.c.bf16 %v4310_v9, %v448_v46  ;;  %782 = vst.msk [vmem:[#allocation2 + $0x278] sm:$0xff] %vm389_vm0, %v3690_v41  ;;  %v4329_v49 = vsel %vm907_vm9, %v3744_v45, %v3745_v44  ;;  %v1255_v45 = vld [vmem:[%s5434_s2 + $0x40] sm:$0xff]  ;;  %v1258_v46 = vld [vmem:[%s5434_s2 + $0x58] sm:$0xff]  ;;  %vm867_vm9 = vcmask 654336  }
  0xf1   : > { %912 = vst.msk [vmem:[#allocation2 + $0x348] sm:$0xff] %vm389_vm0, %v3745_v44  ;;  %1320 = vperm.xlu0 %3836, %v1258_v46   ;;  %v1148_v46 = vld [vmem:[#allocation2 + $0x2e8] sm:$0xff] }
  0xf2   : > { %1605 = vmatpush.bf16.msra.mxu2 %v1221_v47  ;;  %1507 = vmatpush.bf16.msra.mxu0 %v1189_v48 }
  0xf3   : > { %1305 = vperm.xlu1 %3837, %v1255_v45  }
  0xf4   : > { %v3708_v50 = vpop.permute.xlu1 %3707  ;;  %v3703_v51 = vpop.permute.xlu0 %3702 }
  0xf5   : > { %v3710_v52 = vunpack.i.h.bf16 %v3708_v50  ;;  %v3709_v53 = vunpack.i.l.bf16 %v3708_v50  ;;  %v3705_v54 = vunpack.i.h.bf16 %v3703_v51  ;;  %v3704_v55 = vunpack.i.l.bf16 %v3703_v51  ;;  %v3758_v56 = vpop.permute.xlu2 %3757 }
  0xf6   : > { %v3760_v57 = vunpack.i.h.bf16 %v3758_v56  ;;  %v3759_v58 = vunpack.i.l.bf16 %v3758_v56 }
  0xf7   : > { %942 = vst.msk [vmem:[#allocation2 + $0x378] sm:$0xff] %vm389_vm0, %v3710_v52  ;;  %v938_v59 = vsel %vm937_vm10, %v3709_v53, %v3710_v52  ;;  %v928_v60 = vsel %vm927_vm11, %v3704_v55, %v3705_v54  ;;  %vm887_vm10 = vcmask 637952   ;;  %vm417_vm11 = vcmask 1022976  }
  0xf8   : > { %v1237_v61 = vpack.c.bf16 %v938_v59, %v928_v60  ;;  %932 = vst.msk [vmem:[#allocation2 + $0x368] sm:$0xff] %vm389_vm0, %v3705_v54  ;;  %v4334_v62 = vsel %vm597_vm12, %v3759_v58, %v3760_v57  ;;  %v1254_v59 = vld [vmem:[%s5434_s2 + $0x38] sm:$0xff]  ;;  %v1253_v60 = vld [vmem:[%s5434_s2 + $0x30] sm:$0xff]  ;;  %vm557_vm12 = vcmask 908288  }
  0xf9   : > { %602 = vst.msk [vmem:[#allocation2 + $0x158] sm:$0xff] %vm389_vm0, %v3760_v57  ;;  %1295 = vperm.xlu0 %3836, %v1253_v60  }
  0xfa   : > { %1654 = vmatpush.bf16.msra.mxu3 %v1237_v61 }
  0xfb   : > { %1300 = vperm.xlu1 %3837, %v1254_v59   ;;  %v1118_v59 = vld [vmem:[#allocation2 + $0x1f8] sm:$0xff] }
  0xfc   : > { %v3723_v63 = vpop.permute.xlu1 %3722  ;;  %v3718_v0 = vpop.permute.xlu0 %3717 }
  0xfd   : > { %v3725_v1 = vunpack.i.h.bf16 %v3723_v63  ;;  %v3724_v2 = vunpack.i.l.bf16 %v3723_v63  ;;  %v3720_v4 = vunpack.i.h.bf16 %v3718_v0  ;;  %v3719_v5 = vunpack.i.l.bf16 %v3718_v0 }
  0xfe   : > { %v3773_v6 = vpop.permute.xlu2 %3772 }
  0xff   : > { %752 = vst.msk [vmem:[#allocation2 + $0x248] sm:$0xff] %vm389_vm0, %v3725_v1  ;;  %v748_v7 = vsel %vm747_vm13, %v3724_v2, %v3725_v1  ;;  %v618_v8 = vsel %vm617_vm14, %v3719_v5, %v3720_v4  ;;  %v3775_v9 = vunpack.i.h.bf16 %v3773_v6  ;;  %v3774_v10 = vunpack.i.l.bf16 %v3773_v6 }
 0x100   : > { %v1205_v11 = vpack.c.bf16 %v618_v8, %v4317_v23  ;;  %v1219_v12 = vpack.c.bf16 %v4322_v36, %v748_v7  ;;  %622 = vst.msk [vmem:[#allocation2 + $0x178] sm:$0xff] %vm389_vm0, %v3720_v4  ;;  %vm577_vm13 = vcmask 891904   ;;  %vm567_vm14 = vcmask 900096  }
 0x101   : > { %v4341_v13 = vsel %vm407_vm15, %v3774_v10, %v3775_v9  ;;  %412 = vst.msk [vmem:[#allocation2 + $0x28] sm:$0xff] %vm389_vm0, %v3775_v9  ;;  %vm397_vm15 = vcmask 1039360  }
 0x102   : > { %1556 = vmatpush.bf16.msra.mxu1 %v1205_v11  ;;  %1606 = vmatpush.bf16.msra.mxu2 %v1219_v12  ;;  %v1249_v11 = vld [vmem:[%s5434_s2 + $0x10] sm:$0xff]  ;;  %v1252_v12 = vld [vmem:[%s5434_s2 + $0x28] sm:$0xff] }
 0x103   : > { %1275 = vperm.xlu1 %3837, %v1249_v11   ;;  %1290 = vperm.xlu0 %3836, %v1252_v12   ;;  %v1142_v11 = vld [vmem:[#allocation2 + $0x2b8] sm:$0xff] }
 0x104   : > { %v3738_v16 = vpop.permute.xlu1 %3737  ;;  %v3733_v17 = vpop.permute.xlu0 %3732  ;;  %v1182_v12 = vld [vmem:[#allocation2 + $0x3f8] sm:$0xff] }
 0x105   : > { %v3740_v18 = vunpack.i.h.bf16 %v3738_v16  ;;  %v3739_v19 = vunpack.i.l.bf16 %v3738_v16  ;;  %v3735_v20 = vunpack.i.h.bf16 %v3733_v17  ;;  %v3734_v21 = vunpack.i.l.bf16 %v3733_v17 }
 0x106   : > { %v3788_v22 = vpop.permute.xlu2 %3787 }
 0x107   : > { %442 = vst.msk [vmem:[#allocation2 + $0x58] sm:$0xff] %vm389_vm0, %v3740_v18  ;;  %v438_v23 = vsel %vm437_vm1, %v3739_v19, %v3740_v18  ;;  %v428_v24 = vsel %vm427_vm2, %v3734_v21, %v3735_v20  ;;  %v3790_v25 = vunpack.i.h.bf16 %v3788_v22  ;;  %v3789_v26 = vunpack.i.l.bf16 %v3788_v22 }
 0x108   : > { %v1187_v27 = vpack.c.bf16 %v438_v23, %v428_v24  ;;  %432 = vst.msk [vmem:[#allocation2 + $0x48] sm:$0xff] %vm389_vm0, %v3735_v20  ;;  %v1248_v24 = vld [vmem:[%s5434_s2 + $0x8] sm:$0xff]  ;;  %vm717_vm1 = vcmask 777216   ;;  %vm547_vm2 = vcmask 916480  }
 0x109   : > { %v4352_v28 = vsel %vm897_vm3, %v3789_v26, %v3790_v25  ;;  %902 = vst.msk [vmem:[#allocation2 + $0x338] sm:$0xff] %vm389_vm0, %v3790_v25  ;;  %v1247_v25 = vld [vmem:[%s5434_s2] sm:$0xff]  ;;  %vm877_vm3 = vcmask 646144  }
 0x10a   : > { %1508 = vmatpush.bf16.msra.mxu0 %v1187_v27 }
 0x10b   : > { %1270 = vperm.xlu1 %3837, %v1248_v24   ;;  %1265 = vperm.xlu0 %3836, %v1247_v25   ;;  %v1112_v24 = vld [vmem:[#allocation2 + $0x1c8] sm:$0xff]  ;;  %v1178_v25 = vld [vmem:[#allocation2 + $0x3d8] sm:$0xff] }
 0x10c   : > { %v3753_v31 = vpop.permute.xlu1 %3752  ;;  %v3748_v32 = vpop.permute.xlu0 %3747 }
 0x10d   : > { %v3755_v33 = vunpack.i.h.bf16 %v3753_v31  ;;  %v3754_v34 = vunpack.i.l.bf16 %v3753_v31  ;;  %v3750_v35 = vunpack.i.h.bf16 %v3748_v32  ;;  %v3749_v36 = vunpack.i.l.bf16 %v3748_v32 }
 0x10e   : > { %v3803_v37 = vpop.permute.xlu2 %3802 }
 0x10f   : > { %592 = vst.msk [vmem:[#allocation2 + $0x148] sm:$0xff] %vm389_vm0, %v3755_v33  ;;  %v588_v38 = vsel %vm587_vm4, %v3754_v34, %v3755_v33  ;;  %v918_v39 = vsel %vm917_vm5, %v3749_v36, %v3750_v35  ;;  %v3805_v40 = vunpack.i.h.bf16 %v3803_v37  ;;  %v3804_v41 = vunpack.i.l.bf16 %v3803_v37  ;;  %v1055_v33 = vld [vmem:[#allocation2] sm:$0xff]  ;;  %v1150_v34 = vld [vmem:[#allocation2 + $0x2f8] sm:$0xff]  ;;  %v3365_v36 = vld [vmem:[%s5435_s1 + $0xc] sm:$0xf0] }
 0x110   : > { %v1235_v42 = vpack.c.bf16 %v918_v39, %v4329_v49  ;;  %v1203_v43 = vpack.c.bf16 %v4334_v62, %v588_v38  ;;  %922 = vst.msk [vmem:[#allocation2 + $0x358] sm:$0xff] %vm389_vm0, %v3750_v35  ;;  %v3106_v35 = vld [vmem:[%s5435_s1] sm:$0xf]  ;;  %v3114_v37 = vld [vmem:[%s5435_s1 + $0x8] sm:$0xf] }
 0x111   : > { %v4365_v44 = vsel %vm707_vm6, %v3804_v41, %v3805_v40  ;;  %712 = vst.msk [vmem:[#allocation2 + $0x208] sm:$0xff] %vm389_vm0, %v3805_v40  ;;  %v3366_v38 = vld [vmem:[%s5435_s1 + $0x14] sm:$0xf0]  ;;  %v1084_v41 = vld [vmem:[#allocation2 + $0xe8] sm:$0xff] }
 0x112   : > { %1655 = vmatpush.bf16.msra.mxu3 %v1235_v42  ;;  %1557 = vmatpush.bf16.msra.mxu1 %v1203_v43 }
 0x114   : > { %v3768_v3 = vpop.permute.xlu1 %3767  ;;  %v3763_v47 = vpop.permute.xlu0 %3762 }
 0x115   : > { %v3770_v48 = vunpack.i.h.bf16 %v3768_v3  ;;  %v3769_v49 = vunpack.i.l.bf16 %v3768_v3  ;;  %v3765_v50 = vunpack.i.h.bf16 %v3763_v47  ;;  %v3764_v51 = vunpack.i.l.bf16 %v3763_v47  ;;  %v1259_v3 = vld [vmem:[%s5434_s2 + $0x60] sm:$0xff] }
 0x116   : > { %v3818_v52 = vpop.permute.xlu2 %3817  ;;  %v1230_v47 = vpack.c.bf16 %v1150_v34, %v1148_v46  ;;  %1325 = vperm.xlu2 %3838, %v1259_v3   ;;  %v1172_v46 = vld [vmem:[#allocation2 + $0x3a8] sm:$0xff] }
 0x117   : > { %742 = vst.msk [vmem:[#allocation2 + $0x238] sm:$0xff] %vm389_vm0, %v3770_v48  ;;  %v738_v53 = vsel %vm737_vm7, %v3769_v49, %v3770_v48  ;;  %v728_v54 = vsel %vm727_vm8, %v3764_v51, %v3765_v50  ;;  %v3820_v55 = vunpack.i.h.bf16 %v3818_v52  ;;  %v3819_v56 = vunpack.i.l.bf16 %v3818_v52  ;;  %v1082_v51 = vld [vmem:[#allocation2 + $0xd8] sm:$0xff] }
 0x118   : > { %v1217_v57 = vpack.c.bf16 %v738_v53, %v728_v54  ;;  %732 = vst.msk [vmem:[#allocation2 + $0x228] sm:$0xff] %vm389_vm0, %v3765_v50  ;;  %v4425_v48 = vor.u32 %v3365_v36, %v3106_v35  ;;  %v4427_v49 = vor.u32 %v3366_v38, %v3114_v37  ;;  %v1080_v50 = vld [vmem:[#allocation2 + $0xc8] sm:$0xff]  ;;  %v1146_v52 = vld [vmem:[#allocation2 + $0x2d8] sm:$0xff]  ;;  %v3122_v36 = vld [vmem:[%s5435_s1 + $0x20] sm:$0xf] }
 0x119   : > { %v4376_v58 = vsel %vm867_vm9, %v3819_v56, %v3820_v55  ;;  %872 = vst.msk [vmem:[#allocation2 + $0x308] sm:$0xff] %vm389_vm0, %v3820_v55  ;;  %v1196_v55 = vpack.c.bf16 %v1082_v51, %v1080_v50  ;;  %v1068_v35 = vld [vmem:[#allocation2 + $0x68] sm:$0xff]  ;;  %v3369_v37 = vld [vmem:[%s5435_s1 + $0x2c] sm:$0xf0] }
 0x11a   : > { %1607 = vmatpush.bf16.msra.mxu2 %v1217_v57  ;;  %v1116_v57 = vld [vmem:[#allocation2 + $0x1e8] sm:$0xff]  ;;  %v4473_v51 = vor.u32 %v3369_v37, %v3122_v36  ;;  %v3138_v37 = vld [vmem:[%s5435_s1 + $0x40] sm:$0xf] }
 0x11b   : > { %v1132_v50 = vld [vmem:[#allocation2 + $0x268] sm:$0xff] }
 0x11c   : > { %v3783_v61 = vpop.permute.xlu1 %3782  ;;  %v3778_v62 = vpop.permute.xlu0 %3777 }
 0x11d   : > { %v3785_v63 = vunpack.i.h.bf16 %v3783_v61  ;;  %v3784_v0 = vunpack.i.l.bf16 %v3783_v61  ;;  %v3780_v1 = vunpack.i.h.bf16 %v3778_v62  ;;  %v3779_v2 = vunpack.i.l.bf16 %v3778_v62 }
 0x11e   : > { %v3833_v4 = vpop.permute.xlu2 %3832 }
 0x11f   : > { %892 = vst.msk [vmem:[#allocation2 + $0x328] sm:$0xff] %vm389_vm0, %v3785_v63  ;;  %v888_v5 = vsel %vm887_vm10, %v3784_v0, %v3785_v63  ;;  %v418_v6 = vsel %vm417_vm11, %v3779_v2, %v3780_v1  ;;  %v3835_v7 = vunpack.i.h.bf16 %v3833_v4  ;;  %v3834_v8 = vunpack.i.l.bf16 %v3833_v4  ;;  %v1076_v0 = vld [vmem:[#allocation2 + $0xa8] sm:$0xff]  ;;  %v3363_v4 = vld [vmem:[%s5435_s1 + $0x4] sm:$0xf] }
 0x120   : > { %v1185_v9 = vpack.c.bf16 %v418_v6, %v4341_v13  ;;  %v1233_v10 = vpack.c.bf16 %v4352_v28, %v888_v5  ;;  %422 = vst.msk [vmem:[#allocation2 + $0x38] sm:$0xff] %vm389_vm0, %v3780_v1  ;;  %v1086_v28 = vld [vmem:[#allocation2 + $0xf8] sm:$0xff]  ;;  %v1180_v2 = vld [vmem:[#allocation2 + $0x3e8] sm:$0xff]  ;;  %v3108_v5 = vld [vmem:[%s5435_s1 + $0x10] sm:$0xf0] }
 0x121   : > { %562 = vst.msk [vmem:[#allocation2 + $0x118] sm:$0xff] %vm389_vm0, %v3835_v7  ;;  %v4396_v15 = vsel %vm557_vm12, %v3834_v8, %v3835_v7  ;;  %v1198_v45 = vpack.c.bf16 %v1086_v28, %v1084_v41  ;;  %v1078_v1 = vld [vmem:[#allocation2 + $0xb8] sm:$0xff]  ;;  %v3364_v6 = vld [vmem:[%s5435_s1 + $0xc] sm:$0xf] }
 0x122   : > { %1509 = vmatpush.bf16.msra.mxu0 %v1185_v9  ;;  %1656 = vmatpush.bf16.msra.mxu3 %v1233_v10  ;;  %v3116_v7 = vld [vmem:[%s5435_s1 + $0x18] sm:$0xf0]  ;;  %v1140_v10 = vld [vmem:[#allocation2 + $0x2a8] sm:$0xff]  ;;  %v3370_v41 = vld [vmem:[%s5435_s1 + $0x34] sm:$0xf0] }
 0x123   : > { %v1176_v28 = vld [vmem:[#allocation2 + $0x3c8] sm:$0xff] }
 0x124   : > { %v3798_v13 = vpop.permute.xlu1 %3797  ;;  %v3793_v16 = vpop.permute.xlu0 %3792 }
 0x125   : > { %v3800_v17 = vunpack.i.h.bf16 %v3798_v13  ;;  %v3799_v18 = vunpack.i.l.bf16 %v3798_v13  ;;  %v3795_v19 = vunpack.i.h.bf16 %v3793_v16  ;;  %v3794_v20 = vunpack.i.l.bf16 %v3793_v16 }
 0x127   : > { %582 = vst.msk [vmem:[#allocation2 + $0x138] sm:$0xff] %vm389_vm0, %v3800_v17  ;;  %v578_v21 = vsel %vm577_vm13, %v3799_v18, %v3800_v17  ;;  %v568_v22 = vsel %vm567_vm14, %v3794_v20, %v3795_v19  ;;  %v1214_v17 = vpack.c.bf16 %v1118_v59, %v1116_v57  ;;  %v1257_v18 = vld [vmem:[%s5434_s2 + $0x50] sm:$0xff]  ;;  %v4452_v20 = vor.u32 %v3363_v4, %v3108_v5  ;;  %v1066_v57 = vld [vmem:[#allocation2 + $0x58] sm:$0xff]  ;;  %v1104_v59 = vld [vmem:[#allocation2 + $0x188] sm:$0xff] }
 0x128   : > { %v1201_v23 = vpack.c.bf16 %v578_v21, %v568_v22  ;;  %572 = vst.msk [vmem:[#allocation2 + $0x128] sm:$0xff] %vm389_vm0, %v3795_v19  ;;  %v1194_v19 = vpack.c.bf16 %v1078_v1, %v1076_v0  ;;  %v4454_v21 = vor.u32 %v3364_v6, %v3116_v7  ;;  %1315 = vperm.xlu2 %3838, %v1257_v18   ;;  %v1166_v4 = vld [vmem:[#allocation2 + $0x378] sm:$0xff]  ;;  %v3367_v5 = vld [vmem:[%s5435_s1 + $0x24] sm:$0xf]  ;;  %v3124_v6 = vld [vmem:[%s5435_s1 + $0x30] sm:$0xf0] }
 0x129   : > { %v1226_v22 = vpack.c.bf16 %v1142_v11, %v1140_v10  ;;  %v3132_v10 = vld [vmem:[%s5435_s1 + $0x38] sm:$0xf0]  ;;  %v1251_v11 = vld [vmem:[%s5434_s2 + $0x20] sm:$0xff]  ;;  %v1100_v18 = vld [vmem:[#allocation2 + $0x168] sm:$0xff] }
 0x12a   : > { %1558 = vmatpush.bf16.msra.mxu1 %v1201_v23  ;;  %v1246_v23 = vpack.c.bf16 %v1182_v12, %v1180_v2  ;;  %v1062_v2 = vld [vmem:[#allocation2 + $0x38] sm:$0xff]  ;;  %v1124_v12 = vld [vmem:[#allocation2 + $0x228] sm:$0xff] }
 0x12c   : > { %v3813_v26 = vpop.permute.xlu1 %3812  ;;  %v3808_v27 = vpop.permute.xlu0 %3807 }
 0x12d   : > { %v3815_v29 = vunpack.i.h.bf16 %v3813_v26  ;;  %v3814_v30 = vunpack.i.l.bf16 %v3813_v26  ;;  %v3810_v31 = vunpack.i.h.bf16 %v3808_v27  ;;  %v3809_v32 = vunpack.i.l.bf16 %v3808_v27  ;;  %v1136_v26 = vld [vmem:[#allocation2 + $0x288] sm:$0xff]  ;;  %v1138_v27 = vld [vmem:[#allocation2 + $0x298] sm:$0xff] }
 0x12e   : > { %v1224_v38 = vpack.c.bf16 %v1138_v27, %v1136_v26  ;;  %v1056_v26 = vld [vmem:[#allocation2 + $0x8] sm:$0xff] }
 0x12f   : > { %402 = vst.msk [vmem:[#allocation2 + $0x18] sm:$0xff] %vm389_vm0, %v3815_v29  ;;  %v398_v39 = vsel %vm397_vm15, %v3814_v30, %v3815_v29  ;;  %v718_v40 = vsel %vm717_vm1, %v3809_v32, %v3810_v31  ;;  %v1072_v29 = vld [vmem:[#allocation2 + $0x88] sm:$0xff]  ;;  %v1070_v30 = vld [vmem:[#allocation2 + $0x78] sm:$0xff] }
 0x130   : > { %v1183_v42 = vpack.c.bf16 %v398_v39, %v1055_v33  ;;  %v1215_v43 = vpack.c.bf16 %v718_v40, %v4365_v44  ;;  %722 = vst.msk [vmem:[#allocation2 + $0x218] sm:$0xff] %vm389_vm0, %v3810_v31  ;;  %v1144_v44 = vld [vmem:[#allocation2 + $0x2c8] sm:$0xff]  ;;  %v1110_v32 = vld [vmem:[#allocation2 + $0x1b8] sm:$0xff]  ;;  %v1244_v39 = vpack.c.bf16 %v1178_v25, %v1176_v28  ;;  %v1190_v3 = vpack.c.bf16 %v1070_v30, %v1068_v35 }
 0x131   : > { %v1228_v56 = vpack.c.bf16 %v1146_v52, %v1144_v44  ;;  %v1108_v31 = vld [vmem:[#allocation2 + $0x1a8] sm:$0xff]  ;;  %v1106_v44 = vld [vmem:[#allocation2 + $0x198] sm:$0xff] }
 0x132   : > { %1510 = vmatpush.bf16.msra.mxu0 %v1183_v42  ;;  %1608 = vmatpush.bf16.msra.mxu2 %v1215_v43  ;;  %v3130_v40 = vld [vmem:[%s5435_s1 + $0x28] sm:$0xf]  ;;  %v1134_v43 = vld [vmem:[#allocation2 + $0x278] sm:$0xff]  ;;  %v1208_v1 = vpack.c.bf16 %v1106_v44, %v1104_v59  ;;  %v3371_v59 = vld [vmem:[%s5435_s1 + $0x44] sm:$0xf] }
 0x133   : > { %v1256_v42 = vld [vmem:[%s5434_s2 + $0x48] sm:$0xff]  ;;  %v4475_v52 = vor.u32 %v3370_v41, %v3130_v40  ;;  %v1162_v30 = vld [vmem:[#allocation2 + $0x358] sm:$0xff] }
 0x134   : > { %v3828_v53 = vpop.permute.xlu1 %3827  ;;  %v3823_v54 = vpop.permute.xlu0 %3822  ;;  %1310 = vperm.xlu2 %3838, %v1256_v42   ;;  %v1096_v28 = vld [vmem:[#allocation2 + $0x148] sm:$0xff]  ;;  %v3374_v42 = vld [vmem:[%s5435_s1 + $0x54] sm:$0xf0] }
 0x135   : > { %v3830_v60 = vunpack.i.h.bf16 %v3828_v53  ;;  %v3829_v61 = vunpack.i.l.bf16 %v3828_v53  ;;  %v3825_v62 = vunpack.i.h.bf16 %v3823_v54  ;;  %v3824_v63 = vunpack.i.l.bf16 %v3823_v54  ;;  %1511 = vmatmul.bf16.vlgmr.msra.gmra.mxu0 %v4425_v48  ;;  %1609 = vmatmul.bf16.vlgmr.msra.gmra.mxu2 %v4427_v49  ;;  %v1170_v53 = vld [vmem:[#allocation2 + $0x398] sm:$0xff]  ;;  %v1092_v36 = vld [vmem:[#allocation2 + $0x128] sm:$0xff] }
 0x136   : > { %1699 = vmatpush.bf16.msrb.mxu0 %v1198_v45  ;;  %1797 = vmatpush.bf16.msrb.mxu2 %v1230_v47  ;;  %v1174_v45 = vld [vmem:[#allocation2 + $0x3b8] sm:$0xff]  ;;  %v1210_v47 = vpack.c.bf16 %v1110_v32, %v1108_v31  ;;  %v1222_v54 = vpack.c.bf16 %v1134_v43, %v1132_v50  ;;  %v1120_v31 = vld [vmem:[#allocation2 + $0x208] sm:$0xff] }
 0x137   : > { %552 = vst.msk [vmem:[#allocation2 + $0x108] sm:$0xff] %vm389_vm0, %v3830_v60  ;;  %v548_v8 = vsel %vm547_vm2, %v3829_v61, %v3830_v60  ;;  %v878_v9 = vsel %vm877_vm3, %v3824_v63, %v3825_v62  ;;  %v1128_v60 = vld [vmem:[#allocation2 + $0x248] sm:$0xff]  ;;  %v1130_v61 = vld [vmem:[#allocation2 + $0x258] sm:$0xff] }
 0x138   : > { %v1199_v13 = vpack.c.bf16 %v4396_v15, %v548_v8  ;;  %v1231_v16 = vpack.c.bf16 %v878_v9, %v4376_v58  ;;  %882 = vst.msk [vmem:[#allocation2 + $0x318] sm:$0xff] %vm389_vm0, %v3825_v62  ;;  %v1074_v15 = vld [vmem:[#allocation2 + $0x98] sm:$0xff]  ;;  %v1168_v62 = vld [vmem:[#allocation2 + $0x388] sm:$0xff]  ;;  %v1220_v7 = vpack.c.bf16 %v1130_v61, %v1128_v60  ;;  %v3140_v61 = vld [vmem:[%s5435_s1 + $0x50] sm:$0xf0] }
 0x139   : > { %v1114_v58 = vld [vmem:[#allocation2 + $0x1d8] sm:$0xff]  ;;  %v1192_v33 = vpack.c.bf16 %v1074_v15, %v1072_v29  ;;  %v1240_v8 = vpack.c.bf16 %v1170_v53, %v1168_v62  ;;  %v3368_v9 = vld [vmem:[%s5435_s1 + $0x2c] sm:$0xf]  ;;  %v3146_v41 = vld [vmem:[%s5435_s1 + $0x48] sm:$0xf] }
 0x13a   : > { %1700 = vmatpush.bf16.msrb.mxu0 %v1196_v55  ;;  %1798 = vmatpush.bf16.msrb.mxu2 %v1228_v56  ;;  %v1212_v34 = vpack.c.bf16 %v1114_v58, %v1112_v24  ;;  %v1242_v55 = vpack.c.bf16 %v1174_v45, %v1172_v46  ;;  %v1064_v56 = vld [vmem:[#allocation2 + $0x48] sm:$0xff]  ;;  %v1102_v63 = vld [vmem:[#allocation2 + $0x178] sm:$0xff]  ;;  %v4496_v15 = vor.u32 %v3368_v9, %v3132_v10  ;;  %v3375_v9 = vld [vmem:[%s5435_s1 + $0x64] sm:$0xf] }
 0x13b   : > { %1559 = vmatpush.bf16.msra.mxu1 %v1199_v13  ;;  %1657 = vmatpush.bf16.msra.mxu3 %v1231_v16  ;;  %v1188_v0 = vpack.c.bf16 %v1066_v57, %v1064_v56  ;;  %v1126_v13 = vld [vmem:[#allocation2 + $0x238] sm:$0xff]  ;;  %v1164_v16 = vld [vmem:[#allocation2 + $0x368] sm:$0xff]  ;;  %v4517_v50 = vor.u32 %v3374_v42, %v3146_v41  ;;  %v3156_v10 = vld [vmem:[%s5435_s1 + $0x70] sm:$0xf0] }
 0x13c   : > { %v1098_v24 = vld [vmem:[#allocation2 + $0x158] sm:$0xff]  ;;  %1285 = vperm.xlu2 %3838, %v1251_v11   ;;  %v1218_v58 = vpack.c.bf16 %v1126_v13, %v1124_v12  ;;  %v1238_v25 = vpack.c.bf16 %v1166_v4, %v1164_v16  ;;  %v1160_v32 = vld [vmem:[#allocation2 + $0x348] sm:$0xff]  ;;  %v3377_v4 = vld [vmem:[%s5435_s1 + $0x6c] sm:$0xf0]  ;;  %v4569_v13 = vor.u32 %v3375_v9, %v3156_v10 }
 0x13d   : > { %v1058_v27 = vld [vmem:[#allocation2 + $0x18] sm:$0xff]  ;;  %v1204_v35 = vpack.c.bf16 %v1098_v24, %v1096_v28  ;;  %v1236_v40 = vpack.c.bf16 %v1162_v30, %v1160_v32  ;;  %v1156_v45 = vld [vmem:[#allocation2 + $0x328] sm:$0xff]  ;;  %v3385_v32 = vld [vmem:[%s5435_s1 + $0xac] sm:$0xf0] }
 0x13e   : > { %1701 = vmatpush.bf16.msrb.mxu0 %v1194_v19  ;;  %1799 = vmatpush.bf16.msrb.mxu2 %v1226_v22  ;;  %v1206_v22 = vpack.c.bf16 %v1102_v63, %v1100_v18  ;;  %v1122_v29 = vld [vmem:[#allocation2 + $0x218] sm:$0xff]  ;;  %v1088_v53 = vld [vmem:[#allocation2 + $0x108] sm:$0xff]  ;;  %v3381_v18 = vld [vmem:[%s5435_s1 + $0x8c] sm:$0xf0] }
 0x13f   : > { %1748 = vmatpush.bf16.msrb.mxu1 %v1214_v17  ;;  %1846 = vmatpush.bf16.msrb.mxu3 %v1246_v23  ;;  %v1060_v17 = vld [vmem:[#allocation2 + $0x28] sm:$0xff]  ;;  %v4494_v23 = vor.u32 %v3367_v5, %v3124_v6  ;;  %v1250_v43 = vld [vmem:[%s5434_s2 + $0x18] sm:$0xff]  ;;  %s5454_s2 = smov 120  }
 0x140   : > { %1560 = vmatmul.bf16.vlgmr.msra.gmra.mxu1 %v4452_v20  ;;  %1658 = vmatmul.bf16.vlgmr.msra.gmra.mxu3 %v4454_v21  ;;  %v1186_v19 = vpack.c.bf16 %v1062_v2, %v1060_v17  ;;  %v1158_v46 = vld [vmem:[#allocation2 + $0x338] sm:$0xff]  ;;  %v1152_v57 = vld [vmem:[#allocation2 + $0x308] sm:$0xff]  ;;  %v3154_v2 = vld [vmem:[%s5435_s1 + $0x60] sm:$0xf] }
 0x141   : > { %v1234_v44 = vpack.c.bf16 %v1158_v46, %v1156_v45  ;;  %v3372_v62 = vld [vmem:[%s5435_s1 + $0x4c] sm:$0xf]  ;;  %v3148_v63 = vld [vmem:[%s5435_s1 + $0x58] sm:$0xf0]  ;;  %v3162_v5 = vld [vmem:[%s5435_s1 + $0x68] sm:$0xf] }
 0x142   : > { %1702 = vmatpush.bf16.msrb.mxu0 %v1192_v33  ;;  %1800 = vmatpush.bf16.msrb.mxu2 %v1224_v38  ;;  %v1094_v33 = vld [vmem:[#allocation2 + $0x138] sm:$0xff]  ;;  %v3373_v38 = vld [vmem:[%s5435_s1 + $0x4c] sm:$0xf0]  ;;  %v3376_v11 = vld [vmem:[%s5435_s1 + $0x6c] sm:$0xf] }
 0x143   : > { %1749 = vmatpush.bf16.msrb.mxu1 %v1212_v34  ;;  %1847 = vmatpush.bf16.msrb.mxu3 %v1244_v39  ;;  %v1184_v34 = vpack.c.bf16 %v1058_v27, %v1056_v26  ;;  %v1216_v39 = vpack.c.bf16 %v1122_v29, %v1120_v31  ;;  %v3378_v6 = vld [vmem:[%s5435_s1 + $0x74] sm:$0xf0]  ;;  %v3164_v12 = vld [vmem:[%s5435_s1 + $0x78] sm:$0xf0]  ;;  %v3170_v17 = vld [vmem:[%s5435_s1 + $0x80] sm:$0xf] }
 0x144   : > { %1280 = vperm.xlu2 %3838, %v1250_v43   ;;  %v4571_v16 = vor.u32 %v3376_v11, %v3164_v12  ;;  %v4587_v24 = vor.u32 %v3381_v18, %v3170_v17  ;;  %v3172_v26 = vld [vmem:[%s5435_s1 + $0x90] sm:$0xf0]  ;;  %v3380_v27 = vld [vmem:[%s5435_s1 + $0x8c] sm:$0xf]  ;;  %v3180_v28 = vld [vmem:[%s5435_s1 + $0x98] sm:$0xf0] }
 0x145   : > { %1516 = vmatmul.bf16.gmra.mxu0 %v4473_v51  ;;  %1614 = vmatmul.bf16.gmra.mxu2 %v4475_v52  ;;  %v4607_v30 = vor.u32 %v3380_v27, %v3180_v28  ;;  %v3186_v31 = vld [vmem:[%s5435_s1 + $0xa0] sm:$0xf]  ;;  %v3394_v9 = vld [vmem:[%s5435_s1 + $0xf4] sm:$0xf0] }
 0x146   : > { %1703 = vmatpush.bf16.msrb.mxu0 %v1190_v3  ;;  %1801 = vmatpush.bf16.msrb.mxu2 %v1222_v54  ;;  %v1202_v3 = vpack.c.bf16 %v1094_v33, %v1092_v36  ;;  %v1090_v54 = vld [vmem:[#allocation2 + $0x118] sm:$0xff]  ;;  %v3194_v33 = vld [vmem:[%s5435_s1 + $0xa8] sm:$0xf]  ;;  %v3202_v46 = vld [vmem:[%s5435_s1 + $0xc0] sm:$0xf] }
 0x147   : > { %1750 = vmatpush.bf16.msrb.mxu1 %v1210_v47  ;;  %1848 = vmatpush.bf16.msrb.mxu3 %v1242_v55  ;;  %v4515_v47 = vor.u32 %v3373_v38, %v3138_v37  ;;  %v1154_v55 = vld [vmem:[#allocation2 + $0x318] sm:$0xff]  ;;  %v1200_v56 = vpack.c.bf16 %v1090_v54, %v1088_v53  ;;  %v3383_v37 = vld [vmem:[%s5435_s1 + $0xa4] sm:$0xf]  ;;  %v3188_v38 = vld [vmem:[%s5435_s1 + $0xb0] sm:$0xf0] }
 0x148   : > { %v1232_v60 = vpack.c.bf16 %v1154_v55, %v1152_v57  ;;  %v4641_v41 = vor.u32 %v3383_v37, %v3188_v38  ;;  %v3390_v53 = vld [vmem:[%s5435_s1 + $0xd4] sm:$0xf0] }
 0x14a   : > { %1704 = vmatpush.bf16.msrb.mxu0 %v1188_v0  ;;  %1802 = vmatpush.bf16.msrb.mxu2 %v1220_v7  ;;  %v4533_v0 = vor.u32 %v3371_v59, %v3140_v61  ;;  %v4551_v7 = vor.u32 %v3377_v4, %v3154_v2  ;;  %v3204_v59 = vld [vmem:[%s5435_s1 + $0xd0] sm:$0xf0]  ;;  %v3212_v61 = vld [vmem:[%s5435_s1 + $0xd8] sm:$0xf0]  ;;  %v3218_v4 = vld [vmem:[%s5435_s1 + $0xe0] sm:$0xf] }
 0x14b   : > { %1751 = vmatpush.bf16.msrb.mxu1 %v1208_v1  ;;  %1849 = vmatpush.bf16.msrb.mxu3 %v1240_v8  ;;  %v4535_v1 = vor.u32 %v3372_v62, %v3148_v63  ;;  %v4553_v8 = vor.u32 %v3378_v6, %v3162_v5  ;;  %v3393_v5 = vld [vmem:[%s5435_s1 + $0xec] sm:$0xf0]  ;;  %v3226_v6 = vld [vmem:[%s5435_s1 + $0xe8] sm:$0xf] }
 0x14c   : > { %v4707_v12 = vor.u32 %v3393_v5, %v3218_v4  ;;  %v4709_v17 = vor.u32 %v3394_v9, %v3226_v6 }
 0x14e   : > { %1705 = vmatpush.bf16.msrb.mxu0 %v1186_v19  ;;  %1803 = vmatpush.bf16.msrb.mxu2 %v1218_v58  ;;  %v3178_v19 = vld [vmem:[%s5435_s1 + $0x88] sm:$0xf] }
 0x14f   : > { %1752 = vmatpush.bf16.msrb.mxu1 %v1206_v22  ;;  %1850 = vmatpush.bf16.msrb.mxu3 %v1238_v25  ;;  %v3382_v22 = vld [vmem:[%s5435_s1 + $0x94] sm:$0xf0]  ;;  %v3379_v25 = vld [vmem:[%s5435_s1 + $0x84] sm:$0xf] }
 0x150   : > { %1565 = vmatmul.bf16.gmra.mxu1 %v4494_v23  ;;  %1663 = vmatmul.bf16.gmra.mxu3 %v4496_v15  ;;  %v4589_v58 = vor.u32 %v3382_v22, %v3178_v19  ;;  %v4605_v29 = vor.u32 %v3379_v25, %v3172_v26  ;;  %v3391_v19 = vld [vmem:[%s5435_s1 + $0xe4] sm:$0xf]  ;;  %v3220_v22 = vld [vmem:[%s5435_s1 + $0xf0] sm:$0xf0]  ;;  %v3392_v25 = vld [vmem:[%s5435_s1 + $0xec] sm:$0xf] }
 0x151   : > { %v3228_v26 = vld [vmem:[%s5435_s1 + $0xf8] sm:$0xf0]  ;;  %v4727_v27 = vor.u32 %v3391_v19, %v3220_v22 }
 0x152   : > { %1706 = vmatpush.bf16.msrb.mxu0 %v1184_v34  ;;  %1804 = vmatpush.bf16.msrb.mxu2 %v1216_v39  ;;  %v3386_v34 = vld [vmem:[%s5435_s1 + $0xb4] sm:$0xf0]  ;;  %v3384_v39 = vld [vmem:[%s5435_s1 + $0xac] sm:$0xf]  ;;  %v4729_v28 = vor.u32 %v3392_v25, %v3228_v26 }
 0x153   : > { %1753 = vmatpush.bf16.msrb.mxu1 %v1204_v35  ;;  %1851 = vmatpush.bf16.msrb.mxu3 %v1236_v40  ;;  %v4623_v35 = vor.u32 %v3385_v32, %v3186_v31  ;;  %v4625_v36 = vor.u32 %v3386_v34, %v3194_v33  ;;  %v3196_v40 = vld [vmem:[%s5435_s1 + $0xb8] sm:$0xf0] }
 0x154   : > { %v4643_v42 = vor.u32 %v3384_v39, %v3196_v40 }
 0x155   : > { %1521 = vmatmul.bf16.gmra.mxu0 %v4515_v47  ;;  %1619 = vmatmul.bf16.gmra.mxu2 %v4517_v50  ;;  %v4645_v43 = vpop.permute.xlu1 %1340 }
 0x157   : > { %1754 = vmatpush.bf16.msrb.mxu1 %v1202_v3  ;;  %1852 = vmatpush.bf16.msrb.mxu3 %v1234_v44  ;;  %v3389_v3 = vld [vmem:[%s5435_s1 + $0xcc] sm:$0xf0]  ;;  %v3210_v44 = vld [vmem:[%s5435_s1 + $0xc8] sm:$0xf] }
 0x158   : > { %v4663_v54 = vor.u32 %v3389_v3, %v3202_v46  ;;  %v4665_v55 = vor.u32 %v3390_v53, %v3210_v44 }
 0x159   : > { %v4647_v45 = vpop.permute.xlu0 %1335 }
 0x15b   : > { %1755 = vmatpush.bf16.msrb.mxu1 %v1200_v56  ;;  %1853 = vmatpush.bf16.msrb.mxu3 %v1232_v60  ;;  %v3387_v56 = vld [vmem:[%s5435_s1 + $0xc4] sm:$0xf]  ;;  %v3388_v60 = vld [vmem:[%s5435_s1 + $0xcc] sm:$0xf]  ;;  %s5453_s1 = smov 115  }
 0x15c   : > { %v4685_v63 = vor.u32 %v3387_v56, %v3204_v59  ;;  %v4687_v2 = vor.u32 %v3388_v60, %v3212_v61 }
 0x15d   : > { %v4672_v57 = vpop.permute.xlu1 %1330 }
 0x160   : > { %1570 = vmatmul.bf16.gmra.mxu1 %v4533_v0  ;;  %1668 = vmatmul.bf16.gmra.mxu3 %v4535_v1 }
 0x163   : > { %v4683_v62 = vpop.permute.xlu0 %1320 }
 0x165   : > { %1526 = vmatmul.bf16.gmra.mxu0 %v4551_v7  ;;  %1624 = vmatmul.bf16.gmra.mxu2 %v4553_v8  ;;  %v4703_v10 = vpop.permute.xlu1 %1305 }
 0x16b   : > { %v4705_v11 = vpop.permute.xlu0 %1295 }
 0x16d   : > { %v4731_v31 = vpop.permute.xlu1 %1300 }
 0x170   : > { %1575 = vmatmul.bf16.gmra.mxu1 %v4569_v13  ;;  %1673 = vmatmul.bf16.gmra.mxu3 %v4571_v16  ;;  %v4713_v18 = vpop.permute.xlu2 %1325 }
 0x175   : > { %1531 = vmatmul.bf16.gmra.mxu0 %v4587_v24  ;;  %1629 = vmatmul.bf16.gmra.mxu2 %v4589_v58  ;;  %v4733_v32 = vpop.permute.xlu0 %1290  ;;  %v4739_v37 = vpop.permute.xlu1 %1275 }
 0x17d   : > { %v4741_v38 = vpop.permute.xlu0 %1265  ;;  %v4750_v59 = vpop.permute.xlu1 %1270 }
 0x180   : > { %1580 = vmatmul.bf16.gmra.mxu1 %v4605_v29  ;;  %1678 = vmatmul.bf16.gmra.mxu3 %v4607_v30 }
 0x182   : > { %v4737_v33 = vpop.permute.xlu2 %1315 }
 0x185   : > { %1536 = vmatmul.bf16.gmra.mxu0 %v4623_v35  ;;  %1634 = vmatmul.bf16.gmra.mxu2 %v4625_v36 }
 0x18e   : > { %v4746_v46 = vpop.permute.xlu2 %1310 }
 0x190   : > { %1585 = vmatmul.bf16.gmra.mxu1 %v4641_v41  ;;  %1683 = vmatmul.bf16.gmra.mxu3 %v4643_v42 }
 0x195   : > { %1541 = vmatmul.bf16.gmra.mxu0 %v4663_v54  ;;  %1639 = vmatmul.bf16.gmra.mxu2 %v4665_v55 }
 0x196   : > { %v4753_v19 = vpop.permute.xlu2 %1285 }
 0x1a0   : > { %1590 = vmatmul.bf16.gmra.mxu1 %v4685_v63  ;;  %1688 = vmatmul.bf16.gmra.mxu3 %v4687_v2 }
 0x1a5   : > { %1546 = vmatmul.bf16.gmra.mxu0 %v4707_v12  ;;  %1644 = vmatmul.bf16.gmra.mxu2 %v4709_v17 }
 0x1b0   : > { %1595 = vmatmul.bf16.gmra.mxu1 %v4727_v27  ;;  %1693 = vmatmul.bf16.gmra.mxu3 %v4729_v28 }
 0x1b2   : > { %v1512_v34 = vpop.f32.mrf.mxu0 }
 0x1b3   : > { %v1513_v39 = vadd.f32 %v1512_v34, %v4741_v38 }
 0x1b5   : > { %1707 = vmatmul.bf16.vlgmr.msrb.gmra.mxu0 %v4425_v48  ;;  %1805 = vmatmul.bf16.vlgmr.msrb.gmra.mxu2 %v4427_v49 }
 0x1b8   : > { %v1610_v40 = vpop.f32.mrf.mxu2 }
 0x1ba   : > { %v1514_v3 = vpop.f32.mrf.mxu0 }
 0x1bb   : > { %v1515_v48 = vadd.f32 %v1514_v3, %v4750_v59 }
 0x1bd   : > { %v1561_v44 = vpop.f32.mrf.mxu1 }
 0x1be   : > { %v1562_v53 = vadd.f32 %v1561_v44, %v1513_v39 }
 0x1c0   : > { %1756 = vmatmul.bf16.vlgmr.msrb.gmra.mxu1 %v4452_v20  ;;  %1854 = vmatmul.bf16.vlgmr.msrb.gmra.mxu3 %v4454_v21  ;;  %v1611_v56 = vadd.f32 %v1610_v40, %v1562_v53  ;;  %v1612_v60 = vpop.f32.mrf.mxu2 }
 0x1c2   : > { %v1517_v4 = vpop.f32.mrf.mxu0 }
 0x1c3   : > { %v1659_v61 = vpop.f32.mrf.mxu3  ;;  %v1518_v22 = vadd.f32 %v1517_v4, %v4739_v37 }
 0x1c4   : > { %v1660_v49 = vadd.f32 %v1659_v61, %v1611_v56  ;;  %v4760_v56 = vpop.permute.xlu2 %1280 }
 0x1c5   : > { %v1563_v5 = vpop.f32.mrf.mxu1  ;;  %1712 = vmatmul.bf16.gmra.mxu0 %v4473_v51  ;;  %1810 = vmatmul.bf16.gmra.mxu2 %v4475_v52 }
 0x1c6   : > { %v1927_v6 = vmin.f32 %v1660_v49, 0.0  ;;  %v1564_v9 = vadd.f32 %v1563_v5, %v1515_v48  ;;  %vm1895_vm4 = vcmp.gt.f32.partialorder %v1660_v49, 0.0 }
 0x1c8   : > { %v1613_v20 = vadd.f32 %v1612_v60, %v1564_v9  ;;  %v1959_v21 = vmul.f32 1.442695, %v1927_v6  ;;  %v1615_v25 = vpop.f32.mrf.mxu2 }
 0x1ca   : > { %v1519_v39 = vpop.f32.mrf.mxu0  ;;  %3839 = vpow2.f32 %v1959_v21 }
 0x1cb   : > { %v1661_v26 = vpop.f32.mrf.mxu3  ;;  %v1520_v48 = vadd.f32 %v1519_v39, %v4760_v56 }
 0x1cc   : > { %v1662_v34 = vadd.f32 %v1661_v26, %v1613_v20 }
 0x1cd   : > { %v1566_v40 = vpop.f32.mrf.mxu1 }
 0x1ce   : > { %v1929_v3 = vmin.f32 %v1662_v34, 0.0  ;;  %v1567_v44 = vadd.f32 %v1566_v40, %v1518_v22  ;;  %vm1897_vm5 = vcmp.gt.f32.partialorder %v1662_v34, 0.0 }
 0x1d0   : > { %v1963_v53 = vmul.f32 1.442695, %v1929_v3  ;;  %1761 = vmatmul.bf16.gmra.mxu1 %v4494_v23  ;;  %1859 = vmatmul.bf16.gmra.mxu3 %v4496_v15  ;;  %v1616_v51 = vadd.f32 %v1615_v25, %v1567_v44  ;;  %v1617_v52 = vpop.f32.mrf.mxu2  ;;  %v3840_v61 = vpop.eup %3839 }
 0x1d1   : > { %v3232_v21 = vadd.f32 -1.0, %v3840_v61 }
 0x1d2   : > { %3841 = vpow2.f32 %v1963_v53  ;;  %v1522_v5 = vpop.f32.mrf.mxu0 }
 0x1d3   : > { %v1664_v60 = vpop.f32.mrf.mxu3  ;;  %v1523_v26 = vadd.f32 %v1522_v5, %v4753_v19  ;;  %v4766_v3 = vsel %vm1895_vm4, %v1660_v49, %v3232_v21 }
 0x1d4   : > { %v1665_v4 = vadd.f32 %v1664_v60, %v1616_v51 }
 0x1d5   : > { %v1568_v6 = vpop.f32.mrf.mxu1  ;;  %1717 = vmatmul.bf16.gmra.mxu0 %v4515_v47  ;;  %1815 = vmatmul.bf16.gmra.mxu2 %v4517_v50 }
 0x1d6   : > { %v1931_v9 = vmin.f32 %v1665_v4, 0.0  ;;  %v1569_v20 = vadd.f32 %v1568_v6, %v1520_v48  ;;  %vm1899_vm6 = vcmp.gt.f32.partialorder %v1665_v4, 0.0 }
 0x1d8   : > { %v3842_v22 = vpop.eup %3841  ;;  %v1618_v23 = vadd.f32 %v1617_v52, %v1569_v20  ;;  %v1967_v25 = vmul.f32 1.442695, %v1931_v9  ;;  %v1620_v40 = vpop.f32.mrf.mxu2 }
 0x1d9   : > { %v3234_v15 = vadd.f32 -1.0, %v3842_v22 }
 0x1da   : > { %v1524_v47 = vpop.f32.mrf.mxu0  ;;  %3843 = vpow2.f32 %v1967_v25 }
 0x1db   : > { %v1666_v39 = vpop.f32.mrf.mxu3  ;;  %v4768_v44 = vsel %vm1897_vm5, %v1662_v34, %v3234_v15  ;;  %v1525_v6 = vadd.f32 %v1524_v47, %v4733_v32 }
 0x1dc   : > { %v1667_v53 = vadd.f32 %v1666_v39, %v1618_v23 }
 0x1dd   : > { %v1571_v60 = vpop.f32.mrf.mxu1 }
 0x1de   : > { %v1933_v50 = vmin.f32 %v1667_v53, 0.0  ;;  %v1572_v52 = vadd.f32 %v1571_v60, %v1523_v26  ;;  %vm1901_vm7 = vcmp.gt.f32.partialorder %v1667_v53, 0.0 }
 0x1e0   : > { %v1971_v61 = vmul.f32 1.442695, %v1933_v50  ;;  %1766 = vmatmul.bf16.gmra.mxu1 %v4533_v0  ;;  %1864 = vmatmul.bf16.gmra.mxu3 %v4535_v1  ;;  %v1621_v48 = vadd.f32 %v1620_v40, %v1572_v52  ;;  %v1622_v49 = vpop.f32.mrf.mxu2  ;;  %v3844_v34 = vpop.eup %3843 }
 0x1e1   : > { %v3236_v15 = vadd.f32 -1.0, %v3844_v34 }
 0x1e2   : > { %3845 = vpow2.f32 %v1971_v61  ;;  %v1527_v20 = vpop.f32.mrf.mxu0 }
 0x1e3   : > { %v1669_v5 = vpop.f32.mrf.mxu3  ;;  %v1528_v40 = vadd.f32 %v1527_v20, %v4705_v11  ;;  %v4778_v60 = vsel %vm1899_vm6, %v1665_v4, %v3236_v15 }
 0x1e4   : > { %v1670_v9 = vadd.f32 %v1669_v5, %v1621_v48 }
 0x1e5   : > { %v1573_v21 = vpop.f32.mrf.mxu1  ;;  %1722 = vmatmul.bf16.gmra.mxu0 %v4551_v7  ;;  %1820 = vmatmul.bf16.gmra.mxu2 %v4553_v8 }
 0x1e6   : > { %v1935_v22 = vmin.f32 %v1670_v9, 0.0  ;;  %v1574_v23 = vadd.f32 %v1573_v21, %v1525_v6  ;;  %vm1903_vm8 = vcmp.gt.f32.partialorder %v1670_v9, 0.0 }
 0x1e8   : > { %v3846_v25 = vpop.eup %3845  ;;  %v1623_v0 = vadd.f32 %v1622_v49, %v1574_v23  ;;  %v1975_v26 = vmul.f32 1.442695, %v1935_v22  ;;  %v1625_v39 = vpop.f32.mrf.mxu2 }
 0x1e9   : > { %v3238_v1 = vadd.f32 -1.0, %v3846_v25 }
 0x1ea   : > { %v1529_v7 = vpop.f32.mrf.mxu0  ;;  %3847 = vpow2.f32 %v1975_v26 }
 0x1eb   : > { %v1671_v47 = vpop.f32.mrf.mxu3  ;;  %v4780_v50 = vsel %vm1901_vm7, %v1667_v53, %v3238_v1  ;;  %v1530_v20 = vadd.f32 %v1529_v7, %v4731_v31 }
 0x1ec   : > { %v1672_v52 = vadd.f32 %v1671_v47, %v1623_v0 }
 0x1ed   : > { %v1576_v48 = vpop.f32.mrf.mxu1 }
 0x1ee   : > { %v1937_v8 = vmin.f32 %v1672_v52, 0.0  ;;  %v1577_v49 = vadd.f32 %v1576_v48, %v1528_v40  ;;  %vm1905_vm9 = vcmp.gt.f32.partialorder %v1672_v52, 0.0 }
 0x1f0   : > { %v1979_v5 = vmul.f32 1.442695, %v1937_v8  ;;  %1771 = vmatmul.bf16.gmra.mxu1 %v4569_v13  ;;  %1869 = vmatmul.bf16.gmra.mxu3 %v4571_v16  ;;  %v1626_v34 = vadd.f32 %v1625_v39, %v1577_v49  ;;  %v1627_v4 = vpop.f32.mrf.mxu2  ;;  %v3848_v53 = vpop.eup %3847 }
 0x1f1   : > { %v3240_v0 = vadd.f32 -1.0, %v3848_v53 }
 0x1f2   : > { %3849 = vpow2.f32 %v1979_v5  ;;  %v1532_v22 = vpop.f32.mrf.mxu0 }
 0x1f3   : > { %v1674_v6 = vpop.f32.mrf.mxu3  ;;  %v1533_v40 = vadd.f32 %v1532_v22, %v4703_v10  ;;  %v4790_v7 = vsel %vm1903_vm8, %v1670_v9, %v3240_v0 }
 0x1f4   : > { %v1675_v21 = vadd.f32 %v1674_v6, %v1626_v34 }
 0x1f5   : > { %v1578_v23 = vpop.f32.mrf.mxu1  ;;  %1727 = vmatmul.bf16.gmra.mxu0 %v4587_v24  ;;  %1825 = vmatmul.bf16.gmra.mxu2 %v4589_v58 }
 0x1f6   : > { %v1939_v15 = vmin.f32 %v1675_v21, 0.0  ;;  %v1579_v25 = vadd.f32 %v1578_v23, %v1530_v20  ;;  %vm1907_vm10 = vcmp.gt.f32.partialorder %v1675_v21, 0.0 }
 0x1f8   : > { %v3850_v1 = vpop.eup %3849  ;;  %v1628_v13 = vadd.f32 %v1627_v4, %v1579_v25  ;;  %v1983_v26 = vmul.f32 1.442695, %v1939_v15  ;;  %v1630_v39 = vpop.f32.mrf.mxu2 }
 0x1f9   : > { %v3242_v16 = vadd.f32 -1.0, %v3850_v1 }
 0x1fa   : > { %v4796_v24 = vpop.f32.mrf.mxu0  ;;  %3851 = vpow2.f32 %v1983_v26 }
 0x1fb   : > { %v1676_v47 = vpop.f32.mrf.mxu3  ;;  %v4792_v48 = vsel %vm1905_vm9, %v1672_v52, %v3242_v16 }
 0x1fc   : > { %v1677_v8 = vadd.f32 %v1676_v47, %v1628_v13 }
 0x1fd   : > { %v1581_v58 = vpop.f32.mrf.mxu1 }
 0x1fe   : > { %v1941_v5 = vmin.f32 %v1677_v8, 0.0  ;;  %v1582_v34 = vadd.f32 %v1581_v58, %v1533_v40  ;;  %vm1909_vm11 = vcmp.gt.f32.partialorder %v1677_v8, 0.0 }
 0x200   : > { %v1987_v4 = vmul.f32 1.442695, %v1941_v5  ;;  %1776 = vmatmul.bf16.gmra.mxu1 %v4605_v29  ;;  %1874 = vmatmul.bf16.gmra.mxu3 %v4607_v30  ;;  %v1631_v6 = vadd.f32 %v1630_v39, %v1582_v34  ;;  %v4800_v9 = vpop.f32.mrf.mxu2  ;;  %v3852_v53 = vpop.eup %3851 }
 0x201   : > { %v3244_v15 = vadd.f32 -1.0, %v3852_v53 }
 0x202   : > { %3853 = vpow2.f32 %v1987_v4  ;;  %v1537_v22 = vpop.f32.mrf.mxu0 }
 0x203   : > { %v1679_v52 = vpop.f32.mrf.mxu3  ;;  %v4812_v1 = vsel %vm1907_vm10, %v1675_v21, %v3244_v15  ;;  %v2109_v21 = vld [vmem:[%s5436_s4 + $0x10] sm:$0xff]  ;;  %v2107_v15 = vld [vmem:[%s5436_s4] sm:$0xff] }
 0x204   : > { %v4802_v20 = vadd.f32 %v1679_v52, %v1631_v6  ;;  %2123 = vperm.xlu1 %3837, %v2109_v21   ;;  %2113 = vperm.xlu2 %3838, %v2107_v15  }
 0x205   : > { %v4804_v23 = vpop.f32.mrf.mxu1  ;;  %1732 = vmatmul.bf16.gmra.mxu0 %v4623_v35  ;;  %1830 = vmatmul.bf16.gmra.mxu2 %v4625_v36 }
 0x206   : > { %vm1911_vm4 = vcmp.gt.f32.partialorder %v4802_v20, 0.0 }
 0x208   : > { %v3854_v25 = vpop.eup %3853  ;;  %v4808_v30 = vpop.f32.mrf.mxu2 }
 0x209   : > { %v3246_v29 = vadd.f32 -1.0, %v3854_v25 }
 0x20a   : > { %v1539_v26 = vpop.f32.mrf.mxu0 }
 0x20b   : > { %v4810_v0 = vpop.f32.mrf.mxu3  ;;  %v4814_v13 = vsel %vm1909_vm11, %v1677_v8, %v3246_v29 }
 0x20c   : > { %v2097_v16 = vpack.c.bf16 %v4814_v13, %v4812_v1  ;;  %v5438_v1 = vpack.c.bf16 %v4780_v50, %v4778_v60 }
 0x20d   : > { %v1586_v40 = vpop.f32.mrf.mxu1 }
 0x210   : > { %1781 = vmatmul.bf16.gmra.mxu1 %v4641_v41  ;;  %1879 = vmatmul.bf16.gmra.mxu3 %v4643_v42  ;;  %v1637_v35 = vpop.f32.mrf.mxu2  ;;  %v2108_v41 = vld [vmem:[%s5436_s4 + $0x8] sm:$0xff] }
 0x211   : > { %2118 = vperm.xlu0 %3836, %v2108_v41  }
 0x212   : > { %v1542_v39 = vpop.f32.mrf.mxu0 }
 0x213   : > { %v1684_v36 = vpop.f32.mrf.mxu3  ;;  %v1543_v6 = vadd.f32 %v1542_v39, %v4713_v18  ;;  %v1540_v39 = vadd.f32 %v1539_v26, %v4683_v62 }
 0x215   : > { %v1588_v47 = vpop.f32.mrf.mxu1  ;;  %1737 = vmatmul.bf16.gmra.mxu0 %v4663_v54  ;;  %1835 = vmatmul.bf16.gmra.mxu2 %v4665_v55 }
 0x216   : > { %v1589_v51 = vadd.f32 %v1588_v47, %v1540_v39 }
 0x218   : > { %v1640_v8 = vpop.f32.mrf.mxu2 }
 0x21a   : > { %v1544_v5 = vpop.f32.mrf.mxu0 }
 0x21b   : > { %v1686_v58 = vpop.f32.mrf.mxu3 }
 0x21d   : > { %v1591_v34 = vpop.f32.mrf.mxu1 }
 0x21e   : > { %v1592_v25 = vadd.f32 %v1591_v34, %v1543_v6  ;;  %v1535_v34 = vadd.f32 %v4796_v24, %v4746_v46 }
 0x220   : > { %1786 = vmatmul.bf16.gmra.mxu1 %v4685_v63  ;;  %1884 = vmatmul.bf16.gmra.mxu3 %v4687_v2  ;;  %v1642_v42 = vpop.f32.mrf.mxu2  ;;  %v1545_v2 = vadd.f32 %v1544_v5, %v4672_v57  ;;  %v1641_v5 = vadd.f32 %v1640_v8, %v1592_v25  ;;  %v1638_v8 = vadd.f32 %v1637_v35, %v1589_v51 }
 0x222   : > { %v1547_v55 = vpop.f32.mrf.mxu0 }
 0x223   : > { %v1689_v54 = vpop.f32.mrf.mxu3  ;;  %v1548_v52 = vadd.f32 %v1547_v55, %v4647_v45 }
 0x224   : > { %v4853_v26 = vadd.f32 %v1689_v54, %v1641_v5 }
 0x225   : > { %v1593_v4 = vpop.f32.mrf.mxu1  ;;  %1742 = vmatmul.bf16.gmra.mxu0 %v4707_v12  ;;  %1840 = vmatmul.bf16.gmra.mxu2 %v4709_v17  ;;  %v1538_v12 = vadd.f32 %v1537_v22, %v4737_v33 }
 0x226   : > { %v1594_v41 = vadd.f32 %v1593_v4, %v1545_v2  ;;  %v1951_v2 = vmin.f32 %v4853_v26, 0.0  ;;  %vm1919_vm15 = vcmp.gt.f32.partialorder %v4853_v26, 0.0 }
 0x227   : > { %v1587_v14 = vadd.f32 %v1586_v40, %v1538_v12 }
 0x228   : > { %v1645_v63 = vpop.f32.mrf.mxu2  ;;  %v1643_v61 = vadd.f32 %v1642_v42, %v1594_v41  ;;  %v2007_v12 = vmul.f32 1.442695, %v1951_v2 }
 0x229   : > { %v1636_v24 = vadd.f32 %v4808_v30, %v1587_v14 }
 0x22a   : > { %v1549_v29 = vpop.f32.mrf.mxu0 }
 0x22b   : > { %v1691_v53 = vpop.f32.mrf.mxu3  ;;  %v1550_v22 = vadd.f32 %v1549_v29, %v4645_v43 }
 0x22c   : > { %v4844_v49 = vadd.f32 %v1691_v53, %v1643_v61 }
 0x22d   : > { %v1596_v21 = vpop.f32.mrf.mxu1 }
 0x22e   : > { %v1597_v17 = vadd.f32 %v1596_v21, %v1548_v52  ;;  %v4857_v52 = vadd.f32 %v1686_v58, %v1638_v8  ;;  %vm1921_vm14 = vcmp.gt.f32.partialorder %v4844_v49, 0.0 }
 0x230   : > { %1791 = vmatmul.bf16.gmra.mxu1 %v4727_v27  ;;  %1889 = vmatmul.bf16.gmra.mxu3 %v4729_v28  ;;  %v1646_v55 = vadd.f32 %v1645_v63, %v1597_v17  ;;  %v1647_v6 = vpop.f32.mrf.mxu2  ;;  %v2110_v27 = vld [vmem:[%s5436_s4 + $0x18] sm:$0xff]  ;;  %v1584_v28 = vadd.f32 %v4804_v23, %v1535_v34  ;;  %v1953_v63 = vmin.f32 %v4844_v49, 0.0  ;;  %v4862_v23 = vadd.f32 %v1684_v36, %v1636_v24  ;;  %s5456_s4 = smov 124  }
 0x231   : > { %2128 = vperm.xlu2 %3838, %v2110_v27   ;;  %v1949_v35 = vmin.f32 %v4857_v52, 0.0  ;;  %v1943_v34 = vmin.f32 %v4802_v20, 0.0  ;;  %vm1917_vm1 = vcmp.gt.f32.partialorder %v4857_v52, 0.0 }
 0x232   : > { %v1708_v47 = vpop.f32.mrf.mxu0  ;;  %v1633_v53 = vadd.f32 %v4800_v9, %v1584_v28  ;;  %v2011_v58 = vmul.f32 1.442695, %v1953_v63  ;;  %v1947_v17 = vmin.f32 %v4862_v23, 0.0  ;;  %vm1915_vm2 = vcmp.gt.f32.partialorder %v4862_v23, 0.0 }
 0x233   : > { %v1694_v15 = vpop.f32.mrf.mxu3  ;;  %v1709_v25 = vadd.f32 %v1708_v47, %v4741_v38  ;;  %v1991_v24 = vmul.f32 1.442695, %v1943_v34 }
 0x234   : > { %v4847_v4 = vadd.f32 %v1694_v15, %v1646_v55  ;;  %v4866_v14 = vadd.f32 %v4810_v0, %v1633_v53  ;;  %v2003_v55 = vmul.f32 1.442695, %v1949_v35 }
 0x235   : > { %v1598_v40 = vpop.f32.mrf.mxu1 }
 0x236   : > { %v1955_v61 = vmin.f32 %v4847_v4, 0.0  ;;  %v1599_v42 = vadd.f32 %v1598_v40, %v1550_v22  ;;  %v1945_v38 = vmin.f32 %v4866_v14, 0.0  ;;  %vm1923_vm12 = vcmp.gt.f32.partialorder %v4847_v4, 0.0 }
 0x237   : > { %vm1913_vm3 = vcmp.gt.f32.partialorder %v4866_v14, 0.0 }
 0x238   : > { %v2015_v54 = vmul.f32 1.442695, %v1955_v61  ;;  %v1648_v29 = vadd.f32 %v1647_v6, %v1599_v42  ;;  %v1806_v30 = vpop.f32.mrf.mxu2  ;;  %v1999_v6 = vmul.f32 1.442695, %v1947_v17  ;;  %v1995_v28 = vmul.f32 1.442695, %v1945_v38 }
 0x23a   : > { %v1710_v41 = vpop.f32.mrf.mxu0  ;;  %3855 = vpow2.f32 %v2015_v54 }
 0x23b   : > { %v1696_v51 = vpop.f32.mrf.mxu3  ;;  %3857 = vpow2.f32 %v2011_v58  ;;  %v1711_v40 = vadd.f32 %v1710_v41, %v4750_v59 }
 0x23c   : > { %v1697_v21 = vadd.f32 %v1696_v51, %v1648_v29  ;;  %3859 = vpow2.f32 %v2007_v12 }
 0x23d   : > { %v1757_v9 = vpop.f32.mrf.mxu1 }
 0x23e   : > { %v1957_v36 = vmin.f32 %v1697_v21, 0.0  ;;  %v1758_v39 = vadd.f32 %v1757_v9, %v1709_v25  ;;  %vm1925_vm13 = vcmp.gt.f32.partialorder %v1697_v21, 0.0 }
 0x240   : > { %v2019_v0 = vmul.f32 1.442695, %v1957_v36  ;;  %v1807_v5 = vadd.f32 %v1806_v30, %v1758_v39  ;;  %v1808_v15 = vpop.f32.mrf.mxu2  ;;  %v3856_v27 = vpop.eup %3855 }
 0x241   : > { %v3858_v42 = vpop.eup %3857  ;;  %v3260_v54 = vadd.f32 -1.0, %v3856_v27 }
 0x242   : > { %3861 = vpow2.f32 %v2019_v0  ;;  %v1713_v8 = vpop.f32.mrf.mxu0  ;;  %v3860_v2 = vpop.eup %3859  ;;  %v3258_v29 = vadd.f32 -1.0, %v3858_v42 }
 0x243   : > { %v1855_v22 = vpop.f32.mrf.mxu3  ;;  %3863 = vpow2.f32 %v2003_v55  ;;  %v1714_v35 = vadd.f32 %v1713_v8, %v4739_v37  ;;  %v3256_v12 = vadd.f32 -1.0, %v3860_v2  ;;  %v2083_v41 = vsel %vm1923_vm12, %v4847_v4, %v3260_v54 }
 0x244   : > { %v4873_v47 = vadd.f32 %v1855_v22, %v1807_v5  ;;  %3865 = vpow2.f32 %v1999_v6  ;;  %v2081_v6 = vsel %vm1921_vm14, %v4844_v49, %v3258_v29 }
 0x245   : > { %v1759_v61 = vpop.f32.mrf.mxu1  ;;  %3867 = vpow2.f32 %v1995_v28  ;;  %v2079_v27 = vsel %vm1919_vm15, %v4853_v26, %v3256_v12 }
 0x246   : > { %v1928_v63 = vmin.f32 %v4873_v47, 0.0  ;;  %v1760_v53 = vadd.f32 %v1759_v61, %v1711_v40  ;;  %3869 = vpow2.f32 %v1991_v24  ;;  %v2103_v40 = vpack.c.bf16 %v2081_v6, %v2079_v27 }
 0x247   : > { %vm1896_vm5 = vcmp.gt.f32.partialorder %v4873_v47, 0.0 }
 0x248   : > { %v3862_v25 = vpop.eup %3861  ;;  %v1961_v30 = vmul.f32 1.442695, %v1928_v63  ;;  %v1809_v58 = vadd.f32 %v1808_v15, %v1760_v53  ;;  %v1811_v17 = vpop.f32.mrf.mxu2 }
 0x249   : > { %v3262_v51 = vadd.f32 -1.0, %v3862_v25  ;;  %v3864_v59 = vpop.eup %3863 }
 0x24a   : > { %v3866_v39 = vpop.eup %3865  ;;  %v3254_v0 = vadd.f32 -1.0, %v3864_v59  ;;  %v1715_v5 = vpop.f32.mrf.mxu0  ;;  %3871 = vpow2.f32 %v1961_v30 }
 0x24b   : > { %v2085_v9 = vsel %vm1925_vm13, %v1697_v21, %v3262_v51  ;;  %v1857_v36 = vpop.f32.mrf.mxu3  ;;  %v3868_v22 = vpop.eup %3867  ;;  %v3252_v21 = vadd.f32 -1.0, %v3866_v39  ;;  %v1716_v26 = vadd.f32 %v1715_v5, %v4760_v56 }
 0x24c   : > { %v2105_v38 = vpack.c.bf16 %v2085_v9, %v2083_v41  ;;  %v1858_v55 = vadd.f32 %v1857_v36, %v1809_v58  ;;  %v3870_v4 = vpop.eup %3869  ;;  %v3250_v8 = vadd.f32 -1.0, %v3868_v22  ;;  %v2077_v61 = vsel %vm1917_vm1, %v4857_v52, %v3254_v0 }
 0x24d   : > { %v1762_v34 = vpop.f32.mrf.mxu1  ;;  %v3248_v49 = vadd.f32 -1.0, %v3870_v4  ;;  %v2075_v53 = vsel %vm1915_vm2, %v4862_v23, %v3252_v21 }
 0x24e   : > { %v1930_v37 = vmin.f32 %v1858_v55, 0.0  ;;  %v1763_v15 = vadd.f32 %v1762_v34, %v1714_v35  ;;  %2143 = vmatpush.bf16.msra.mxu0 %v2105_v38  ;;  %v2101_v25 = vpack.c.bf16 %v2077_v61, %v2075_v53  ;;  %v2073_v52 = vsel %vm1913_vm3, %v4866_v14, %v3250_v8 }
 0x24f   : > { %v2071_v58 = vsel %vm1911_vm4, %v4802_v20, %v3248_v49  ;;  %vm1898_vm6 = vcmp.gt.f32.partialorder %v1858_v55, 0.0 }
 0x250   : > { %v1965_v28 = vmul.f32 1.442695, %v1930_v37  ;;  %v1812_v24 = vadd.f32 %v1811_v17, %v1763_v15  ;;  %v1813_v42 = vpop.f32.mrf.mxu2  ;;  %v3872_v2 = vpop.eup %3871  ;;  %v2099_v12 = vpack.c.bf16 %v2073_v52, %v2071_v58 }
 0x251   : > { %v3233_v35 = vadd.f32 -1.0, %v3872_v2 }
 0x252   : > { %3873 = vpow2.f32 %v1965_v28  ;;  %2144 = vmatpush.bf16.msra.mxu0 %v2103_v40  ;;  %v1718_v29 = vpop.f32.mrf.mxu0 }
 0x253   : > { %v1860_v63 = vpop.f32.mrf.mxu3  ;;  %v1719_v17 = vadd.f32 %v1718_v29, %v4753_v19  ;;  %v4895_v39 = vsel %vm1896_vm5, %v4873_v47, %v3233_v35  ;;  %v5437_v47 = vpack.c.bf16 %v4792_v48, %v4790_v7  ;;  %v4914_v7 = vld [vmem:[%s5439_s3] sm:$0xff] }
 0x254   : > { %v1861_v54 = vadd.f32 %v1860_v63, %v1812_v24 }
 0x255   : > { %v1764_v51 = vpop.f32.mrf.mxu1 }
 0x256   : > { %v1932_v59 = vmin.f32 %v1861_v54, 0.0  ;;  %v1765_v30 = vadd.f32 %v1764_v51, %v1716_v26  ;;  %2145 = vmatpush.bf16.msra.mxu0 %v2101_v25  ;;  %vm1900_vm7 = vcmp.gt.f32.partialorder %v1861_v54, 0.0 }
 0x258   : > { %v3874_v23 = vpop.eup %3873  ;;  %v1814_v41 = vadd.f32 %v1813_v42, %v1765_v30  ;;  %v1969_v56 = vmul.f32 1.442695, %v1932_v59  ;;  %v1816_v14 = vpop.f32.mrf.mxu2  ;;  %v5440_v42 = vpack.c.bf16 %v4768_v44, %v4766_v3 }
 0x259   : > { %v3235_v9 = vadd.f32 -1.0, %v3874_v23 }
 0x25a   : > { %2146 = vmatpush.bf16.msra.mxu0 %v2099_v12  ;;  %v1720_v5 = vpop.f32.mrf.mxu0  ;;  %3875 = vpow2.f32 %v1969_v56 }
 0x25b   : > { %v1862_v36 = vpop.f32.mrf.mxu3  ;;  %v4897_v38 = vsel %vm1898_vm6, %v1858_v55, %v3235_v9  ;;  %v1721_v21 = vadd.f32 %v1720_v5, %v4733_v32  ;;  %vm2307_vm6 = vcmask 1040384  }
 0x25c   : > { %v1863_v0 = vadd.f32 %v1862_v36, %v1814_v41  ;;  %v2092_v20 = vpack.c.bf16 %v4897_v38, %v4895_v39  ;;  %v4931_v36 = vld [vmem:[%s5439_s3 + $0x8] sm:$0xff]  ;;  %s5455_s3 = smov 116  }
 0x25d   : > { %v1767_v34 = vpop.f32.mrf.mxu1 }
 0x25e   : > { %v1934_v6 = vmin.f32 %v1863_v0, 0.0  ;;  %v1768_v22 = vadd.f32 %v1767_v34, %v1719_v17  ;;  %2147 = vmatpush.bf16.msra.mxu0 %v2097_v16  ;;  %vm1902_vm8 = vcmp.gt.f32.partialorder %v1863_v0, 0.0 }
 0x260   : > { %v1973_v19 = vmul.f32 1.442695, %v1934_v6  ;;  %v1817_v37 = vadd.f32 %v1816_v14, %v1768_v22  ;;  %v1818_v55 = vpop.f32.mrf.mxu2  ;;  %v3876_v4 = vpop.eup %3875 }
 0x261   : > { %v3237_v13 = vadd.f32 -1.0, %v3876_v4 }
 0x262   : > { %3877 = vpow2.f32 %v1973_v19  ;;  %2148 = vmatpush.bf16.msra.mxu0 %v5437_v47  ;;  %v1723_v28 = vpop.f32.mrf.mxu0 }
 0x263   : > { %v1865_v15 = vpop.f32.mrf.mxu3  ;;  %v1724_v48 = vadd.f32 %v1723_v28, %v4705_v11  ;;  %v4920_v63 = vsel %vm1900_vm7, %v1861_v54, %v3237_v13 }
 0x264   : > { %v1866_v27 = vadd.f32 %v1865_v15, %v1817_v37 }
 0x265   : > { %v1769_v40 = vpop.f32.mrf.mxu1 }
 0x266   : > { %v1936_v24 = vmin.f32 %v1866_v27, 0.0  ;;  %v1770_v8 = vadd.f32 %v1769_v40, %v1721_v21  ;;  %2149 = vmatpush.bf16.msra.mxu0 %v5438_v1  ;;  %vm1904_vm9 = vcmp.gt.f32.partialorder %v1866_v27, 0.0 }
 0x268   : > { %v3878_v16 = vpop.eup %3877  ;;  %v1819_v61 = vadd.f32 %v1818_v55, %v1770_v8  ;;  %v1977_v32 = vmul.f32 1.442695, %v1936_v24  ;;  %v1821_v60 = vpop.f32.mrf.mxu2 }
 0x269   : > { %v3239_v49 = vadd.f32 -1.0, %v3878_v16 }
 0x26a   : > { %2150 = vmatpush.bf16.msra.mxu0 %v5440_v42  ;;  %v1725_v25 = vpop.f32.mrf.mxu0  ;;  %3879 = vpow2.f32 %v1977_v32 }
 0x26b   : > { %v1867_v50 = vpop.f32.mrf.mxu3  ;;  %v4922_v53 = vsel %vm1902_vm8, %v1863_v0, %v3239_v49  ;;  %v1726_v30 = vadd.f32 %v1725_v25, %v4731_v31 }
 0x26c   : > { %v1868_v2 = vadd.f32 %v1867_v50, %v1819_v61  ;;  %v2094_v26 = vpack.c.bf16 %v4922_v53, %v4920_v63  ;;  %v2249_v63 = vld [vmem:[%s5388_s5 + $0x40] sm:$0x1] }
 0x26d   : > { %v1772_v29 = vpop.f32.mrf.mxu1  ;;  %2151 = vmatmul.bf16.vlgmr.msra.gmra.mxu0 %v4914_v7  ;;  %v2283_v53 = vunpack.c.l.b16 %v2249_v63 }
 0x26e   : > { %v1938_v11 = vmin.f32 %v1868_v2, 0.0  ;;  %v1773_v51 = vadd.f32 %v1772_v29, %v1724_v48  ;;  %vm1906_vm10 = vcmp.gt.f32.partialorder %v1868_v2, 0.0 }
 0x26f   : > { %v2292_v38 = vpack.c.b16 %v2283_v53, %v2283_v53 }
 0x270   : > { %v1981_v52 = vmul.f32 1.442695, %v1938_v11  ;;  %v1822_v3 = vadd.f32 %v1821_v60, %v1773_v51  ;;  %v1823_v44 = vpop.f32.mrf.mxu2  ;;  %v3880_v54 = vpop.eup %3879 }
 0x271   : > { %v3241_v9 = vadd.f32 -1.0, %v3880_v54 }
 0x272   : > { %3881 = vpow2.f32 %v1981_v52  ;;  %v1728_v58 = vpop.f32.mrf.mxu0 }
 0x273   : > { %v1870_v59 = vpop.f32.mrf.mxu3  ;;  %v1729_v5 = vadd.f32 %v1728_v58, %v4703_v10  ;;  %v4934_v6 = vsel %vm1904_vm9, %v1866_v27, %v3241_v9 }
 0x274   : > { %v1871_v35 = vadd.f32 %v1870_v59, %v1822_v3 }
 0x275   : > { %v1774_v23 = vpop.f32.mrf.mxu1 }
 0x276   : > { %v1940_v12 = vmin.f32 %v1871_v35, 0.0  ;;  %v1775_v41 = vadd.f32 %v1774_v23, %v1726_v30  ;;  %vm1908_vm11 = vcmp.gt.f32.partialorder %v1871_v35, 0.0 }
 0x278   : > { %v3882_v56 = vpop.eup %3881  ;;  %v1824_v17 = vadd.f32 %v1823_v44, %v1775_v41  ;;  %v1985_v0 = vmul.f32 1.442695, %v1940_v12  ;;  %v1826_v31 = vpop.f32.mrf.mxu2 }
 0x279   : > { %v3243_v14 = vadd.f32 -1.0, %v3882_v56 }
 0x27a   : > { %v1730_v47 = vpop.f32.mrf.mxu0  ;;  %3883 = vpow2.f32 %v1985_v0 }
 0x27b   : > { %v1872_v34 = vpop.f32.mrf.mxu3  ;;  %v4936_v22 = vsel %vm1906_vm10, %v1868_v2, %v3243_v14 }
 0x27c   : > { %v1873_v19 = vadd.f32 %v1872_v34, %v1824_v17  ;;  %v2096_v37 = vpack.c.bf16 %v4936_v22, %v4934_v6 }
 0x27d   : > { %v1777_v55 = vpop.f32.mrf.mxu1  ;;  %2156 = vmatmul.bf16.gmra.mxu0 %v4931_v36 }
 0x27e   : > { %v1942_v15 = vmin.f32 %v1873_v19, 0.0  ;;  %v1778_v4 = vadd.f32 %v1777_v55, %v1729_v5  ;;  %vm1910_vm12 = vcmp.gt.f32.partialorder %v1873_v19, 0.0 }
 0x280   : > { %v1989_v21 = vmul.f32 1.442695, %v1942_v15  ;;  %v1827_v28 = vadd.f32 %v1826_v31, %v1778_v4  ;;  %v4941_v10 = vpop.f32.mrf.mxu2  ;;  %v3884_v40 = vpop.eup %3883 }
 0x281   : > { %v3245_v13 = vadd.f32 -1.0, %v3884_v40 }
 0x282   : > { %3885 = vpow2.f32 %v1989_v21  ;;  %v1733_v8 = vpop.f32.mrf.mxu0 }
 0x283   : > { %v1875_v27 = vpop.f32.mrf.mxu3  ;;  %v4945_v48 = vsel %vm1908_vm11, %v1871_v35, %v3245_v13  ;;  %v1734_v14 = vadd.f32 %v1733_v8, %v4737_v33  ;;  %v2119_v22 = vpop.permute.xlu0 %2118 }
 0x284   : > { %v4943_v24 = vadd.f32 %v1875_v27, %v1827_v28 }
 0x285   : > { %v1779_v1 = vpop.f32.mrf.mxu1 }
 0x286   : > { %vm1912_vm5 = vcmp.gt.f32.partialorder %v4943_v24, 0.0 }
 0x288   : > { %v3886_v16 = vpop.eup %3885  ;;  %v1831_v49 = vpop.f32.mrf.mxu2 }
 0x289   : > { %v3247_v61 = vadd.f32 -1.0, %v3886_v16 }
 0x28a   : > { %v1735_v50 = vpop.f32.mrf.mxu0 }
 0x28b   : > { %v1877_v32 = vpop.f32.mrf.mxu3  ;;  %v4947_v42 = vsel %vm1910_vm12, %v1873_v19, %v3247_v61  ;;  %v1736_v34 = vadd.f32 %v1735_v50, %v4683_v62 }
 0x28c   : > { %v2098_v60 = vpack.c.bf16 %v4947_v42, %v4945_v48  ;;  %v2114_v48 = vpop.permute.xlu2 %2113 }
 0x28d   : > { %v1782_v2 = vpop.f32.mrf.mxu1 }
 0x28e   : > { %v1783_v4 = vadd.f32 %v1782_v2, %v1734_v14 }
 0x290   : > { %v1833_v25 = vpop.f32.mrf.mxu2  ;;  %v1832_v16 = vadd.f32 %v1831_v49, %v1783_v4 }
 0x292   : > { %v1738_v11 = vpop.f32.mrf.mxu0 }
 0x293   : > { %v1880_v29 = vpop.f32.mrf.mxu3  ;;  %v1739_v23 = vadd.f32 %v1738_v11, %v4713_v18 }
 0x295   : > { %v1784_v51 = vpop.f32.mrf.mxu1 }
 0x296   : > { %v1785_v21 = vadd.f32 %v1784_v51, %v1736_v34 }
 0x298   : > { %v1836_v52 = vpop.f32.mrf.mxu2  ;;  %v1834_v62 = vadd.f32 %v1833_v25, %v1785_v21 }
 0x29a   : > { %v1740_v44 = vpop.f32.mrf.mxu0 }
 0x29b   : > { %v1882_v3 = vpop.f32.mrf.mxu3  ;;  %v1741_v9 = vadd.f32 %v1740_v44, %v4672_v57 }
 0x29c   : > { %v4962_v11 = vadd.f32 %v1882_v3, %v1834_v62 }
 0x29d   : > { %v1787_v59 = vpop.f32.mrf.mxu1 }
 0x29e   : > { %v1788_v56 = vadd.f32 %v1787_v59, %v1739_v23  ;;  %v1950_v49 = vmin.f32 %v4962_v11, 0.0  ;;  %vm1918_vm2 = vcmp.gt.f32.partialorder %v4962_v11, 0.0 }
 0x2a0   : > { %v1838_v30 = vpop.f32.mrf.mxu2  ;;  %v1837_v55 = vadd.f32 %v1836_v52, %v1788_v56  ;;  %v4967_v52 = vadd.f32 %v1880_v29, %v1832_v16  ;;  %v2005_v23 = vmul.f32 1.442695, %v1950_v49  ;;  %v1944_v29 = vmin.f32 %v4943_v24, 0.0 }
 0x2a2   : > { %v1743_v35 = vpop.f32.mrf.mxu0  ;;  %v1993_v56 = vmul.f32 1.442695, %v1944_v29  ;;  %vm1916_vm3 = vcmp.gt.f32.partialorder %v4967_v52, 0.0 }
 0x2a3   : > { %v1885_v54 = vpop.f32.mrf.mxu3  ;;  %v1744_v12 = vadd.f32 %v1743_v35, %v4647_v45  ;;  %v1731_v45 = vadd.f32 %v1730_v47, %v4746_v46 }
 0x2a4   : > { %v4960_v8 = vadd.f32 %v1885_v54, %v1837_v55  ;;  %v3403_v55 = vld [vmem:[%s5388_s5 + $0x30] sm:$0xff] }
 0x2a5   : > { %v1789_v58 = vpop.f32.mrf.mxu1  ;;  %v1780_v33 = vadd.f32 %v1779_v1, %v1731_v45 }
 0x2a6   : > { %v1790_v0 = vadd.f32 %v1789_v58, %v1741_v9  ;;  %v1952_v46 = vmin.f32 %v4960_v8, 0.0  ;;  %vm1920_vm1 = vcmp.gt.f32.partialorder %v4960_v8, 0.0 }
 0x2a7   : > { %v1829_v51 = vadd.f32 %v4941_v10, %v1780_v33 }
 0x2a8   : > { %v1841_v31 = vpop.f32.mrf.mxu2  ;;  %v1839_v18 = vadd.f32 %v1838_v30, %v1790_v0  ;;  %v2009_v3 = vmul.f32 1.442695, %v1952_v46  ;;  %v1948_v30 = vmin.f32 %v4967_v52, 0.0 }
 0x2a9   : > { %v4969_v59 = vadd.f32 %v1877_v32, %v1829_v51 }
 0x2aa   : > { %v1745_v15 = vpop.f32.mrf.mxu0 }
 0x2ab   : > { %v1887_v41 = vpop.f32.mrf.mxu3  ;;  %v1746_v57 = vadd.f32 %v1745_v15, %v4645_v43  ;;  %v1946_v35 = vmin.f32 %v4969_v59, 0.0  ;;  %vm1914_vm4 = vcmp.gt.f32.partialorder %v4969_v59, 0.0 }
 0x2ac   : > { %v4957_v27 = vadd.f32 %v1887_v41, %v1839_v18 }
 0x2ad   : > { %v1792_v17 = vpop.f32.mrf.mxu1  ;;  %v1997_v41 = vmul.f32 1.442695, %v1946_v35 }
 0x2ae   : > { %v1793_v5 = vadd.f32 %v1792_v17, %v1744_v12  ;;  %v1954_v2 = vmin.f32 %v4957_v27, 0.0  ;;  %v2001_v12 = vmul.f32 1.442695, %v1948_v30  ;;  %v3404_v17 = vld [vmem:[%s5388_s5 + $0x38] sm:$0xff]  ;;  %vm1922_vm15 = vcmp.gt.f32.partialorder %v4957_v27, 0.0 }
 0x2af   : > { %2313 = vmatpush.bf16.msra.mxu2 %v3404_v17 }
 0x2b0   : > { %v1842_v19 = vadd.f32 %v1841_v31, %v1793_v5  ;;  %v1843_v47 = vpop.f32.mrf.mxu2  ;;  %v2013_v25 = vmul.f32 1.442695, %v1954_v2 }
 0x2b3   : > { %v1890_v28 = vpop.f32.mrf.mxu3  ;;  %2314 = vmatpush.bf16.msra.mxu2 %v3403_v55 }
 0x2b4   : > { %v1891_v40 = vadd.f32 %v1890_v28, %v1842_v19 }
 0x2b5   : > { %v1794_v13 = vpop.f32.mrf.mxu1 }
 0x2b6   : > { %v1956_v61 = vmin.f32 %v1891_v40, 0.0  ;;  %v1795_v50 = vadd.f32 %v1794_v13, %v1746_v57  ;;  %vm1924_vm13 = vcmp.gt.f32.partialorder %v1891_v40, 0.0  ;;  %v3402_v13 = vld [vmem:[%s5388_s5 + $0x28] sm:$0xff] }
 0x2b7   : > { %2315 = vmatpush.bf16.msra.mxu2 %v3402_v13 }
 0x2b8   : > { %v2017_v43 = vmul.f32 1.442695, %v1956_v61  ;;  %v1844_v1 = vadd.f32 %v1843_v47, %v1795_v50 }
 0x2ba   : > { %3887 = vpow2.f32 %v2017_v43 }
 0x2bb   : > { %v1892_v44 = vpop.f32.mrf.mxu3  ;;  %3889 = vpow2.f32 %v2013_v25 }
 0x2bc   : > { %v1893_v54 = vadd.f32 %v1892_v44, %v1844_v1  ;;  %3891 = vpow2.f32 %v2009_v3  ;;  %v3398_v44 = vld [vmem:[%s5388_s5 + $0x8] sm:$0xff] }
 0x2be   : > { %v1958_v58 = vmin.f32 %v1893_v54, 0.0  ;;  %vm1926_vm14 = vcmp.gt.f32.partialorder %v1893_v54, 0.0 }
 0x2c0   : > { %v2021_v10 = vmul.f32 1.442695, %v1958_v58  ;;  %v3888_v32 = vpop.eup %3887 }
 0x2c1   : > { %v3890_v9 = vpop.eup %3889  ;;  %v3261_v0 = vadd.f32 -1.0, %v3888_v32  ;;  %v2129_v32 = vpop.permute.xlu2 %2128 }
 0x2c2   : > { %3893 = vpow2.f32 %v2021_v10  ;;  %v3892_v14 = vpop.eup %3891  ;;  %v3259_v31 = vadd.f32 -1.0, %v3890_v9 }
 0x2c3   : > { %3895 = vpow2.f32 %v2005_v23  ;;  %v3257_v15 = vadd.f32 -1.0, %v3892_v14  ;;  %v2084_v4 = vsel %vm1924_vm13, %v1891_v40, %v3261_v0 }
 0x2c4   : > { %3897 = vpow2.f32 %v2001_v12  ;;  %v2082_v57 = vsel %vm1922_vm15, %v4957_v27, %v3259_v31  ;;  %v3401_v27 = vld [vmem:[%s5388_s5 + $0x20] sm:$0xff]  ;;  %vm2351_vm15 = vcmask 269312  }
 0x2c5   : > { %3899 = vpow2.f32 %v1997_v41  ;;  %v2080_v40 = vsel %vm1920_vm1, %v4960_v8, %v3257_v15  ;;  %2316 = vmatpush.bf16.msra.mxu2 %v3401_v27 }
 0x2c6   : > { %3901 = vpow2.f32 %v1993_v56  ;;  %v2104_v61 = vpack.c.bf16 %v2082_v57, %v2080_v40 }
 0x2c8   : > { %v3894_v5 = vpop.eup %3893 }
 0x2c9   : > { %v3263_v34 = vadd.f32 -1.0, %v3894_v5  ;;  %v3896_v19 = vpop.eup %3895 }
 0x2ca   : > { %v3898_v18 = vpop.eup %3897  ;;  %v3255_v28 = vadd.f32 -1.0, %v3896_v19 }
 0x2cb   : > { %v2086_v21 = vsel %vm1926_vm14, %v1893_v54, %v3263_v34  ;;  %v3900_v33 = vpop.eup %3899  ;;  %v3253_v16 = vadd.f32 -1.0, %v3898_v18 }
 0x2cc   : > { %v2106_v45 = vpack.c.bf16 %v2086_v21, %v2084_v4  ;;  %v3902_v62 = vpop.eup %3901  ;;  %v3251_v50 = vadd.f32 -1.0, %v3900_v33  ;;  %v2078_v2 = vsel %vm1918_vm2, %v4962_v11, %v3255_v28  ;;  %v3400_v11 = vld [vmem:[%s5388_s5 + $0x18] sm:$0xff] }
 0x2cd   : > { %v3249_v46 = vadd.f32 -1.0, %v3902_v62  ;;  %v2076_v47 = vsel %vm1916_vm3, %v4967_v52, %v3253_v16  ;;  %2317 = vmatpush.bf16.msra.mxu2 %v3400_v11  ;;  %v3399_v52 = vld [vmem:[%s5388_s5 + $0x10] sm:$0xff] }
 0x2ce   : > { %2162 = vmatpush.bf16.msra.mxu1 %v2106_v45  ;;  %v2102_v8 = vpack.c.bf16 %v2078_v2, %v2076_v47  ;;  %v2074_v51 = vsel %vm1914_vm4, %v4969_v59, %v3251_v50  ;;  %vm2950_vm4 = vcmask 31744  }
 0x2cf   : > { %v2072_v43 = vsel %vm1912_vm5, %v4943_v24, %v3249_v46  ;;  %v3397_v24 = vld [vmem:[%s5388_s5] sm:$0xff]  ;;  %vm3007_vm5 = vcmask 1041409  }
 0x2d0   : > { %v2100_v1 = vpack.c.bf16 %v2074_v51, %v2072_v43 }
 0x2d1   : > { %2318 = vmatpush.bf16.msra.mxu2 %v3399_v52 }
 0x2d2   : > { %2163 = vmatpush.bf16.msra.mxu1 %v2104_v61 }
 0x2d5   : > { %2319 = vmatpush.bf16.msra.mxu2 %v3398_v44 }
 0x2d6   : > { %2164 = vmatpush.bf16.msra.mxu1 %v2102_v8 }
 0x2d9   : > { %2320 = vmatpush.bf16.msra.mxu2 %v3397_v24 }
 0x2da   : > { %2165 = vmatpush.bf16.msra.mxu1 %v2100_v1 }
 0x2de   : > { %2166 = vmatpush.bf16.msra.mxu1 %v2098_v60 }
 0x2e2   : > { %2167 = vmatpush.bf16.msra.mxu1 %v2096_v37 }
 0x2e6   : > { %2168 = vmatpush.bf16.msra.mxu1 %v2094_v26  ;;  %v5441_v26 = vmov 0  }
 0x2e7   : > { %v5028_v54 = vsel %vm2307_vm6, 65535, %v5441_v26  ;;  %vm3009_vm6 = vcmask 1042434  }
 0x2e8   : > { %v2311_v3 = vand.u32 %v5028_v54, %v2292_v38 }
 0x2ea   : > { %v2152_v42 = vpop.f32.mrf.mxu0  ;;  %2169 = vmatpush.bf16.msra.mxu1 %v2092_v20  ;;  %v2124_v20 = vpop.permute.xlu1 %2123  ;;  %2339 = vmatpush.bf16.msra.mxu3 %v2311_v3 }
 0x2eb   : > { %v2153_v60 = vadd.f32 %v2152_v42, %v2114_v48 }
 0x2ed   : > { %v2189_v59 = vmin.f32 %v2153_v60, 0.0  ;;  %2170 = vmatmul.bf16.vlgmr.msra.gmra.mxu1 %v4914_v7  ;;  %vm2181_vm7 = vcmp.gt.f32.partialorder %v2153_v60, 0.0 }
 0x2ef   : > { %v2197_v6 = vmul.f32 1.442695, %v2189_v59 }
 0x2f1   : > { %3903 = vpow2.f32 %v2197_v6 }
 0x2f2   : > { %v2154_v37 = vpop.f32.mrf.mxu0 }
 0x2f3   : > { %v2155_v49 = vadd.f32 %v2154_v37, %v2119_v22 }
 0x2f5   : > { %v2191_v25 = vmin.f32 %v2155_v49, 0.0  ;;  %vm2183_vm8 = vcmp.gt.f32.partialorder %v2155_v49, 0.0 }
 0x2f7   : > { %v2201_v39 = vmul.f32 1.442695, %v2191_v25  ;;  %v3904_v30 = vpop.eup %3903 }
 0x2f8   : > { %v3272_v23 = vadd.f32 -1.0, %v3904_v30 }
 0x2f9   : > { %3905 = vpow2.f32 %v2201_v39 }
 0x2fa   : > { %v2157_v7 = vpop.f32.mrf.mxu0  ;;  %v2221_v41 = vsel %vm2181_vm7, %v2153_v60, %v3272_v23  ;;  %vm3011_vm7 = vcmask 1043459  }
 0x2fb   : > { %v2158_v58 = vadd.f32 %v2157_v7, %v2124_v20 }
 0x2fd   : > { %v2193_v35 = vmin.f32 %v2158_v58, 0.0  ;;  %2175 = vmatmul.bf16.gmra.mxu1 %v4931_v36  ;;  %vm2185_vm9 = vcmp.gt.f32.partialorder %v2158_v58, 0.0 }
 0x2ff   : > { %v3906_v10 = vpop.eup %3905  ;;  %v2205_v12 = vmul.f32 1.442695, %v2193_v35 }
 0x300   : > { %v3274_v29 = vadd.f32 -1.0, %v3906_v10 }
 0x301   : > { %3907 = vpow2.f32 %v2205_v12 }
 0x302   : > { %v2223_v9 = vsel %vm2183_vm8, %v2155_v49, %v3274_v29  ;;  %v2159_v56 = vpop.f32.mrf.mxu0  ;;  %vm3014_vm8 = vcmask 27648  }
 0x303   : > { %v2229_v17 = vpack.c.bf16 %v2223_v9, %v2221_v41  ;;  %v2160_v14 = vadd.f32 %v2159_v56, %v2129_v32 }
 0x305   : > { %v2195_v0 = vmin.f32 %v2160_v14, 0.0  ;;  %2321 = vmatmul.bf16.vlgmr.msra.gmra.mxu2 %v2229_v17  ;;  %vm2187_vm10 = vcmp.gt.f32.partialorder %v2160_v14, 0.0 }
 0x307   : > { %v2209_v5 = vmul.f32 1.442695, %v2195_v0  ;;  %v3908_v31 = vpop.eup %3907 }
 0x308   : > { %v3276_v34 = vadd.f32 -1.0, %v3908_v31 }
 0x309   : > { %3909 = vpow2.f32 %v2209_v5 }
 0x30a   : > { %v2225_v55 = vsel %vm2185_vm9, %v2158_v58, %v3276_v34  ;;  %vm3028_vm9 = vcmask 24576  }
 0x30f   : > { %v3910_v36 = vpop.eup %3909 }
 0x310   : > { %v3278_v19 = vadd.f32 -1.0, %v3910_v36 }
 0x312   : > { %v2227_v15 = vsel %vm2187_vm10, %v2160_v14, %v3278_v19 }
 0x313   : > { %v2231_v4 = vpack.c.bf16 %v2227_v15, %v2225_v55 }
 0x315   : > { %2326 = vmatmul.bf16.gmra.mxu2 %v2231_v4 }
 0x36a   : > { %v2171_v21 = vpop.f32.mrf.mxu1 }
 0x36b   : > { %v2172_v18 = vadd.f32 %v2171_v21, %v2114_v48  ;;  %v2704_v21 = vld [vmem:[%s5390_s7] sm:$0xff] }
 0x36d   : > { %v2190_v45 = vmin.f32 %v2172_v18, 0.0  ;;  %vm2182_vm11 = vcmp.gt.f32.partialorder %v2172_v18, 0.0 }
 0x36f   : > { %v2199_v28 = vmul.f32 1.442695, %v2190_v45  ;;  %v2706_v45 = vld [vmem:[%s5390_s7 + $0x10] sm:$0xff] }
 0x371   : > { %3911 = vpow2.f32 %v2199_v28 }
 0x372   : > { %v2173_v57 = vpop.f32.mrf.mxu1 }
 0x373   : > { %v2174_v33 = vadd.f32 %v2173_v57, %v2119_v22 }
 0x375   : > { %v2192_v13 = vmin.f32 %v2174_v33, 0.0  ;;  %vm2184_vm12 = vcmp.gt.f32.partialorder %v2174_v33, 0.0 }
 0x377   : > { %v2203_v16 = vmul.f32 1.442695, %v2192_v13  ;;  %v3912_v62 = vpop.eup %3911  ;;  %v2707_v13 = vld [vmem:[%s5390_s7 + $0x18] sm:$0xff] }
 0x378   : > { %v3273_v2 = vadd.f32 -1.0, %v3912_v62 }
 0x379   : > { %3913 = vpow2.f32 %v2203_v16 }
 0x37a   : > { %v2176_v40 = vpop.f32.mrf.mxu1  ;;  %v2222_v8 = vsel %vm2182_vm11, %v2172_v18, %v3273_v2  ;;  %v2705_v18 = vld [vmem:[%s5390_s7 + $0x8] sm:$0xff] }
 0x37b   : > { %v2177_v61 = vadd.f32 %v2176_v40, %v2124_v20 }
 0x37d   : > { %v2194_v50 = vmin.f32 %v2177_v61, 0.0  ;;  %vm2186_vm13 = vcmp.gt.f32.partialorder %v2177_v61, 0.0 }
 0x37f   : > { %v3914_v27 = vpop.eup %3913  ;;  %v2207_v47 = vmul.f32 1.442695, %v2194_v50 }
 0x380   : > { %v3275_v46 = vadd.f32 -1.0, %v3914_v27 }
 0x381   : > { %3915 = vpow2.f32 %v2207_v47 }
 0x382   : > { %v2224_v51 = vsel %vm2184_vm12, %v2174_v33, %v3275_v46  ;;  %v2178_v11 = vpop.f32.mrf.mxu1 }
 0x383   : > { %v2230_v43 = vpack.c.bf16 %v2224_v51, %v2222_v8  ;;  %v2179_v1 = vadd.f32 %v2178_v11, %v2129_v32 }
 0x385   : > { %v2196_v52 = vmin.f32 %v2179_v1, 0.0  ;;  %3312 = vmatmul.msk.bf16.vlgmr.msra.gmra.mxu3 %vm389_vm0, %v2230_v43  ;;  %vm2188_vm14 = vcmp.gt.f32.partialorder %v2179_v1, 0.0 }
 0x387   : > { %v2211_v44 = vmul.f32 1.442695, %v2196_v52  ;;  %v3916_v24 = vpop.eup %3915 }
 0x388   : > { %v3277_v48 = vadd.f32 -1.0, %v3916_v24  ;;  %v2322_v37 = vpop.f32.mrf.mxu2 }
 0x389   : > { %3917 = vpow2.f32 %v2211_v44 }
 0x38a   : > { %v2226_v59 = vsel %vm2186_vm13, %v2177_v61, %v3277_v48 }
 0x38f   : > { %v3918_v42 = vpop.eup %3917 }
 0x390   : > { %v3279_v60 = vadd.f32 -1.0, %v3918_v42  ;;  %v2324_v63 = vpop.f32.mrf.mxu2 }
 0x392   : > { %v2228_v6 = vsel %vm2188_vm14, %v2179_v1, %v3279_v60 }
 0x393   : > { %v2232_v22 = vpack.c.bf16 %v2228_v6, %v2226_v59 }
 0x395   : > { %3313 = vmatmul.msk.bf16.gmra.mxu3 %vm389_vm0, %v2232_v22 }
 0x398   : > { %v2327_v39 = vpop.f32.mrf.mxu2 }
 0x3a0   : > { %v2329_v7 = vpop.f32.mrf.mxu2 }
 0x408   : > { %v2341_v49 = vpop.f32.mrf.mxu3 }
 0x409   : > { %v5034_v25 = vadd.f32 %v2341_v49, %v2322_v37 }
 0x40b   : > { %2584 = vrot.lane.b32.xlu0 %v5034_v25, %s5442_s14  ;;  %2392 = vrot.lane.b32.xlu1 %v5034_v25, %s5443_s25  ;;  %2352 = vst.msk [vmem:[#allocation3] sm:$0xff] %vm2351_vm15, %v5034_v25 }
 0x40c   : > { %2520 = vrot.lane.b32.xlu2 %v5034_v25, %s5444_s24 }
 0x410   : > { %v2343_v53 = vpop.f32.mrf.mxu3 }
 0x411   : > { %v5044_v26 = vadd.f32 %v2343_v53, %v2324_v63 }
 0x413   : > { %2504 = vrot.lane.b32.xlu0 %v5034_v25, %s5445_s22  ;;  %2568 = vrot.lane.b32.xlu1 %v5034_v25, %s5446_s29  ;;  %2353 = vst.msk [vmem:[#allocation3 + $0x8] sm:$0xff] %vm2351_vm15, %v5044_v26 }
 0x414   : > { %2456 = vrot.lane.b32.xlu2 %v5034_v25, %s5447_s12 }
 0x418   : > { %v2346_v38 = vpop.f32.mrf.mxu3 }
 0x419   : > { %v2347_v20 = vadd.f32 %v2346_v38, %v2327_v39 }
 0x41b   : > { %2440 = vrot.lane.b32.xlu0 %v5034_v25, %s5448_s16  ;;  %2488 = vrot.lane.b32.xlu1 %v5034_v25, %s5449_s13  ;;  %2354 = vst.msk [vmem:[#allocation3 + $0x10] sm:$0xff] %vm2351_vm15, %v2347_v20 }
 0x41c   : > { %2376 = vrot.lane.b32.xlu2 %v5034_v25, %s5450_s30 }
 0x420   : > { %v2348_v3 = vpop.f32.mrf.mxu3 }
 0x421   : > { %v5061_v30 = vadd.f32 %v2348_v3, %v2329_v7 }
 0x423   : > { %2360 = vrot.lane.b32.xlu0 %v5034_v25, %s5451_s15  ;;  %2424 = vrot.lane.b32.xlu1 %v5034_v25, %s5452_s0  ;;  %2355 = vst.msk [vmem:[#allocation3 + $0x18] sm:$0xff] %vm2351_vm15, %v5061_v30 }
 0x424   : > { %2552 = vrot.lane.b32.xlu2 %v5034_v25, %s5453_s1 }
 0x42b   : > { %2472 = vrot.lane.b32.xlu0 %v5034_v25, %s5454_s2  ;;  %2586 = vrot.lane.b32.xlu1 %v5044_v26, %s5442_s14 }
 0x42c   : > { %2536 = vrot.lane.b32.xlu2 %v5034_v25, %s5455_s3 }
 0x433   : > { %2506 = vrot.lane.b32.xlu1 %v5044_v26, %s5445_s22  ;;  %2522 = vrot.lane.b32.xlu0 %v5044_v26, %s5444_s24 }
 0x434   : > { %2394 = vrot.lane.b32.xlu2 %v5044_v26, %s5443_s25 }
 0x43b   : > { %2442 = vrot.lane.b32.xlu1 %v5044_v26, %s5448_s16  ;;  %2458 = vrot.lane.b32.xlu0 %v5044_v26, %s5447_s12 }
 0x43c   : > { %2570 = vrot.lane.b32.xlu2 %v5044_v26, %s5446_s29 }
 0x443   : > { %2362 = vrot.lane.b32.xlu1 %v5044_v26, %s5451_s15  ;;  %2378 = vrot.lane.b32.xlu0 %v5044_v26, %s5450_s30 }
 0x444   : > { %2490 = vrot.lane.b32.xlu2 %v5044_v26, %s5449_s13 }
 0x44b   : > { %2474 = vrot.lane.b32.xlu1 %v5044_v26, %s5454_s2  ;;  %2554 = vrot.lane.b32.xlu0 %v5044_v26, %s5453_s1 }
 0x44c   : > { %2426 = vrot.lane.b32.xlu2 %v5044_v26, %s5452_s0 }
 0x453   : > { %2588 = vrot.lane.b32.xlu1 %v2347_v20, %s5442_s14  ;;  %2524 = vrot.lane.b32.xlu0 %v2347_v20, %s5444_s24 }
 0x454   : > { %2396 = vrot.lane.b32.xlu2 %v2347_v20, %s5443_s25 }
 0x45b   : > { %2508 = vrot.lane.b32.xlu1 %v2347_v20, %s5445_s22  ;;  %2460 = vrot.lane.b32.xlu0 %v2347_v20, %s5447_s12 }
 0x45c   : > { %2572 = vrot.lane.b32.xlu2 %v2347_v20, %s5446_s29 }
 0x463   : > { %2444 = vrot.lane.b32.xlu1 %v2347_v20, %s5448_s16  ;;  %2380 = vrot.lane.b32.xlu0 %v2347_v20, %s5450_s30 }
 0x464   : > { %2492 = vrot.lane.b32.xlu2 %v2347_v20, %s5449_s13 }
 0x466   : > { %v2521_v58 = vpop.permute.xlu2 %2520 }
 0x467   : > { %2532 = vst.msk [vmem:[#allocation3 + $0x160] sm:$0xff] %vm2351_vm15, %v2521_v58 }
 0x46b   : > { %2364 = vrot.lane.b32.xlu1 %v2347_v20, %s5451_s15  ;;  %2556 = vrot.lane.b32.xlu0 %v2347_v20, %s5453_s1 }
 0x46c   : > { %2428 = vrot.lane.b32.xlu2 %v2347_v20, %s5452_s0 }
 0x46e   : > { %v2457_v35 = vpop.permute.xlu2 %2456 }
 0x46f   : > { %2468 = vst.msk [vmem:[#allocation3 + $0xe0] sm:$0xff] %vm2351_vm15, %v2457_v35 }
 0x473   : > { %2412 = vrot.lane.b32.xlu1 %v2347_v20, %s5456_s4  ;;  %2476 = vrot.lane.b32.xlu0 %v2347_v20, %s5454_s2 }
 0x474   : > { %2540 = vrot.lane.b32.xlu2 %v2347_v20, %s5455_s3 }
 0x476   : > { %v2377_v23 = vpop.permute.xlu2 %2376 }
 0x477   : > { %2388 = vst.msk [vmem:[#allocation3 + $0x40] sm:$0xff] %vm2351_vm15, %v2377_v23 }
 0x47b   : > { %2398 = vrot.lane.b32.xlu0 %v5061_v30, %s5443_s25  ;;  %2526 = vrot.lane.b32.xlu1 %v5061_v30, %s5444_s24  ;;  %s377_s25 = sand.u32 1, %s3981_s18  }
 0x47c   : > { %2590 = vrot.lane.b32.xlu2 %v5061_v30, %s5442_s14 }
 0x47d   : > { %v2585_v10 = vpop.permute.xlu0 %2584  ;;  %v2393_v29 = vpop.permute.xlu1 %2392 }
 0x47e   : > { %2596 = vst.msk [vmem:[#allocation3 + $0x1e0] sm:$0xff] %vm2351_vm15, %v2585_v10  ;;  %v2553_v12 = vpop.permute.xlu2 %2552 }
 0x47f   : > { %2404 = vst.msk [vmem:[#allocation3 + $0x60] sm:$0xff] %vm2351_vm15, %v2393_v29 }
 0x480   : > { %2564 = vst.msk [vmem:[#allocation3 + $0x1a0] sm:$0xff] %vm2351_vm15, %v2553_v12 }
 0x483   : > { %2574 = vrot.lane.b32.xlu0 %v5061_v30, %s5446_s29  ;;  %2462 = vrot.lane.b32.xlu1 %v5061_v30, %s5447_s12  ;;  %s378_s29 = scalar_lea.vmem [#allocation4], %s377_s25 }
 0x484   : > { %2510 = vrot.lane.b32.xlu2 %v5061_v30, %s5445_s22  ;;  %s3039_s22 = scalar_lea.hbm %s5394_s11, %s4136_s21  ;;  %s3041_s12 = sshll.u32 %s378_s29, 4  ;;  %s3042_s12 = int_to_ptr.vmem [resolvable:$true] %s3041_s12 }
 0x485   : > { %v2505_v32 = vpop.permute.xlu0 %2504  ;;  %v2569_v41 = vpop.permute.xlu1 %2568  ;;  %v2668_v22 = vld [vmem:[#allocation3 + $0x1e0] sm:$0xff] }
 0x486   : > { %2516 = vst.msk [vmem:[#allocation3 + $0x140] sm:$0xff] %vm2351_vm15, %v2505_v32  ;;  %v2537_v9 = vpop.permute.xlu2 %2536  ;;  %v2620_v12 = vld [vmem:[#allocation3 + $0x60] sm:$0xff] }
 0x487   : > { %2580 = vst.msk [vmem:[#allocation3 + $0x1c0] sm:$0xff] %vm2351_vm15, %v2569_v41 }
 0x488   : > { %2548 = vst.msk [vmem:[#allocation3 + $0x180] sm:$0xff] %vm2351_vm15, %v2537_v9  ;;  %v2652_v9 = vld [vmem:[#allocation3 + $0x160] sm:$0xff] }
 0x48b   : > { %2494 = vrot.lane.b32.xlu0 %v5061_v30, %s5449_s13  ;;  %2382 = vrot.lane.b32.xlu1 %v5061_v30, %s5450_s30  ;;  %s3031_s13 = scalar_lea.sflag [#allocation5], %s377_s25 }
 0x48c   : > { %2446 = vrot.lane.b32.xlu2 %v5061_v30, %s5448_s16  ;;  %s3043_s16 = sshll.u32 %s3039_s22, 4  ;;  %s3044_s16 = int_to_ptr.hbm [resolvable:$true] %s3043_s16 }
 0x48d   : > { %v2441_v56 = vpop.permute.xlu0 %2440  ;;  %v2489_v17 = vpop.permute.xlu1 %2488  ;;  %s3941_s30 = sshra.s32 %s3044_s16, 4  ;;  %s3942_s30 = int_to_ptr.hbm [resolvable:$true] %s3941_s30 }
 0x48e   : > { %2452 = vst.msk [vmem:[#allocation3 + $0xc0] sm:$0xff] %vm2351_vm15, %v2441_v56  ;;  %v2395_v14 = vpop.permute.xlu2 %2394  ;;  %p3948_p0 = scmp.lt.s32.totalorder %s3942_s30, %s5394_s11 }
 0x48f   : > { %2500 = vst.msk [vmem:[#allocation3 + $0x120] sm:$0xff] %vm2351_vm15, %v2489_v17 }
 0x490   : > { %2405 = vst.msk [vmem:[#allocation3 + $0x68] sm:$0xff] %vm2351_vm15, %v2395_v14 }
 0x493   : > { %2430 = vrot.lane.b32.xlu0 %v5061_v30, %s5452_s0  ;;  %2558 = vrot.lane.b32.xlu1 %v5061_v30, %s5453_s1  ;;  %s3947_s1 = scalar_lea.hbm %s5394_s11, 2 }
 0x494   : > { %2366 = vrot.lane.b32.xlu2 %v5061_v30, %s5451_s15  ;;  %s3943_s15 = scalar_lea.hbm %s3942_s30, 1 }
 0x495   : > { %v2361_v0 = vpop.permute.xlu0 %2360  ;;  %v2425_v5 = vpop.permute.xlu1 %2424  ;;  %p3944_p11 = scmp.ne.s32.totalorder %s3942_s30, %s3943_s15  ;;  %p3949_p1 = scmp.lt.s32.totalorder %s3947_s1, %s3943_s15 }
 0x496   : > { %2372 = vst.msk [vmem:[#allocation3 + $0x20] sm:$0xff] %vm2351_vm15, %v2361_v0  ;;  %v2571_v31 = vpop.permute.xlu2 %2570 }
 0x497   : > { %2436 = vst.msk [vmem:[#allocation3 + $0xa0] sm:$0xff] %vm2351_vm15, %v2425_v5  ;;  %v2621_v10 = vld [vmem:[#allocation3 + $0x68] sm:$0xff]  ;;  %p3945_p12 = pnand %p3944_p11, %p4153_p5  ;;  %p3950_p2 = por %p3949_p1, %p3948_p0 }
 0x498   : > { %2581 = vst.msk [vmem:[#allocation3 + $0x1c8] sm:$0xff] %vm2351_vm15, %v2571_v31  ;;  %v2678_v41 = vpack.c.bf16 %v2621_v10, %v2620_v12 }
 0x499   : > { %p3946_p13 = pneg %p3945_p12 }
 0x49b   : > { %2542 = vrot.lane.b32.xlu0 %v5061_v30, %s5455_s3  ;;  %2478 = vrot.lane.b32.xlu1 %v5061_v30, %s5454_s2  ;;  %p3951_p3 = pnand %p3950_p2, %p3946_p13 }
 0x49c   : > { %2414 = vrot.lane.b32.xlu2 %v5061_v30, %s5456_s4 }
 0x49d   : > { %v2473_v34 = vpop.permute.xlu0 %2472  ;;  %v2587_v36 = vpop.permute.xlu1 %2586  ;;  %v2612_v10 = vld [vmem:[#allocation3 + $0x20] sm:$0xff] }
 0x49e   : > { %2484 = vst.msk [vmem:[#allocation3 + $0x100] sm:$0xff] %vm2351_vm15, %v2473_v34  ;;  %v2491_v19 = vpop.permute.xlu2 %2490 }
 0x49f   : > { %2597 = vst.msk [vmem:[#allocation3 + $0x1e8] sm:$0xff] %vm2351_vm15, %v2587_v36 }
 0x4a0   : > { %2501 = vst.msk [vmem:[#allocation3 + $0x128] sm:$0xff] %vm2351_vm15, %v2491_v19  ;;  %v2665_v19 = vld [vmem:[#allocation3 + $0x1c8] sm:$0xff] }
 0x4a3   : > { %2538 = vrot.lane.b32.xlu0 %v5044_v26, %s5455_s3  ;;  %2408 = vrot.lane.b32.xlu1 %v5034_v25, %s5456_s4 }
 0x4a4   : > { %2410 = vrot.lane.b32.xlu2 %v5044_v26, %s5456_s4 }
 0x4a5   : > { %v2507_v55 = vpop.permute.xlu1 %2506  ;;  %v2523_v15 = vpop.permute.xlu0 %2522 }
 0x4a6   : > { %2517 = vst.msk [vmem:[#allocation3 + $0x148] sm:$0xff] %vm2351_vm15, %v2507_v55  ;;  %v2427_v4 = vpop.permute.xlu2 %2426  ;;  %v2669_v6 = vld [vmem:[#allocation3 + $0x1e8] sm:$0xff] }
 0x4a7   : > { %2437 = vst.msk [vmem:[#allocation3 + $0xa8] sm:$0xff] %vm2351_vm15, %v2427_v4  ;;  %v2702_v37 = vpack.c.bf16 %v2669_v6, %v2668_v22  ;;  %v2644_v6 = vld [vmem:[#allocation3 + $0x120] sm:$0xff] }
 0x4a8   : > { %2533 = vst.msk [vmem:[#allocation3 + $0x168] sm:$0xff] %vm2351_vm15, %v2523_v15 }
 0x4ab   : > { %2710 = vperm.xlu0 %3836, %v2704_v21   ;;  %2715 = vperm.xlu1 %3837, %v2705_v18  }
 0x4ac   : > { %2720 = vperm.xlu2 %3838, %v2706_v45  }
 0x4ad   : > { %v2443_v28 = vpop.permute.xlu1 %2442  ;;  %v2459_v57 = vpop.permute.xlu0 %2458 }
 0x4ae   : > { %2453 = vst.msk [vmem:[#allocation3 + $0xc8] sm:$0xff] %vm2351_vm15, %v2443_v28  ;;  %v2397_v33 = vpop.permute.xlu2 %2396  ;;  %v2649_v28 = vld [vmem:[#allocation3 + $0x148] sm:$0xff] }
 0x4af   : > { %2469 = vst.msk [vmem:[#allocation3 + $0xe8] sm:$0xff] %vm2351_vm15, %v2459_v57  ;;  %v2653_v32 = vld [vmem:[#allocation3 + $0x168] sm:$0xff]  ;;  %v2664_v57 = vld [vmem:[#allocation3 + $0x1c0] sm:$0xff] }
 0x4b0   : > { %2406 = vst.msk [vmem:[#allocation3 + $0x70] sm:$0xff] %vm2351_vm15, %v2397_v33  ;;  %v2694_v56 = vpack.c.bf16 %v2653_v32, %v2652_v9  ;;  %v2700_v33 = vpack.c.bf16 %v2665_v19, %v2664_v57  ;;  %v2611_v9 = vld [vmem:[#allocation3 + $0x18] sm:$0xff]  ;;  %v2610_v19 = vld [vmem:[#allocation3 + $0x10] sm:$0xff] }
 0x4b1   : > { %v3408_v57 = vld [vmem:[%s5389_s6 + $0x14] sm:$0xf0] }
 0x4b3   : > { %2725 = vperm.xlu0 %3836, %v2707_v13   ;;  %v2636_v13 = vld [vmem:[#allocation3 + $0xe0] sm:$0xff] }
 0x4b5   : > { %v2363_v16 = vpop.permute.xlu1 %2362  ;;  %v2379_v40 = vpop.permute.xlu0 %2378 }
 0x4b6   : > { %2373 = vst.msk [vmem:[#allocation3 + $0x28] sm:$0xff] %vm2351_vm15, %v2363_v16  ;;  %v2573_v62 = vpop.permute.xlu2 %2572  ;;  %v2637_v45 = vld [vmem:[#allocation3 + $0xe8] sm:$0xff]  ;;  %v2648_v16 = vld [vmem:[#allocation3 + $0x140] sm:$0xff] }
 0x4b7   : > { %2389 = vst.msk [vmem:[#allocation3 + $0x48] sm:$0xff] %vm2351_vm15, %v2379_v40  ;;  %v2622_v7 = vld [vmem:[#allocation3 + $0x70] sm:$0xff]  ;;  %v2686_v40 = vpack.c.bf16 %v2637_v45, %v2636_v13  ;;  %v2609_v45 = vld [vmem:[#allocation3 + $0x8] sm:$0xff]  ;;  %v3316_v13 = vld [vmem:[%s5389_s6] sm:$0xf] }
 0x4b8   : > { %2582 = vst.msk [vmem:[#allocation3 + $0x1d0] sm:$0xff] %vm2351_vm15, %v2573_v62  ;;  %v2692_v62 = vpack.c.bf16 %v2649_v28, %v2648_v16  ;;  %v3324_v28 = vld [vmem:[%s5389_s6 + $0x8] sm:$0xf]  ;;  %v3407_v16 = vld [vmem:[%s5389_s6 + $0xc] sm:$0xf0] }
 0x4bd   : > { %v2475_v61 = vpop.permute.xlu1 %2474  ;;  %v2555_v50 = vpop.permute.xlu0 %2554 }
 0x4be   : > { %2485 = vst.msk [vmem:[#allocation3 + $0x108] sm:$0xff] %vm2351_vm15, %v2475_v61  ;;  %v2493_v2 = vpop.permute.xlu2 %2492 }
 0x4bf   : > { %2565 = vst.msk [vmem:[#allocation3 + $0x1a8] sm:$0xff] %vm2351_vm15, %v2555_v50  ;;  %v2666_v5 = vld [vmem:[#allocation3 + $0x1d0] sm:$0xff] }
 0x4c0   : > { %2502 = vst.msk [vmem:[#allocation3 + $0x130] sm:$0xff] %vm2351_vm15, %v2493_v2 }
 0x4c5   : > { %v2589_v27 = vpop.permute.xlu1 %2588  ;;  %v2525_v46 = vpop.permute.xlu0 %2524 }
 0x4c6   : > { %2598 = vst.msk [vmem:[#allocation3 + $0x1f0] sm:$0xff] %vm2351_vm15, %v2589_v27  ;;  %v2429_v47 = vpop.permute.xlu2 %2428 }
 0x4c7   : > { %2438 = vst.msk [vmem:[#allocation3 + $0xb0] sm:$0xff] %vm2351_vm15, %v2429_v47 }
 0x4c8   : > { %2534 = vst.msk [vmem:[#allocation3 + $0x170] sm:$0xff] %vm2351_vm15, %v2525_v46  ;;  %v2646_v46 = vld [vmem:[#allocation3 + $0x130] sm:$0xff] }
 0x4cd   : > { %v2509_v8 = vpop.permute.xlu1 %2508  ;;  %v2461_v51 = vpop.permute.xlu0 %2460  ;;  %v2670_v42 = vld [vmem:[#allocation3 + $0x1f0] sm:$0xff] }
 0x4ce   : > { %2518 = vst.msk [vmem:[#allocation3 + $0x150] sm:$0xff] %vm2351_vm15, %v2509_v8  ;;  %v2541_v11 = vpop.permute.xlu2 %2540 }
 0x4cf   : > { %2550 = vst.msk [vmem:[#allocation3 + $0x190] sm:$0xff] %vm2351_vm15, %v2541_v11  ;;  %v2654_v35 = vld [vmem:[#allocation3 + $0x170] sm:$0xff] }
 0x4d0   : > { %2470 = vst.msk [vmem:[#allocation3 + $0xf0] sm:$0xff] %vm2351_vm15, %v2461_v51 }
 0x4d5   : > { %v2445_v43 = vpop.permute.xlu1 %2444  ;;  %v2381_v1 = vpop.permute.xlu0 %2380  ;;  %v2650_v4 = vld [vmem:[#allocation3 + $0x150] sm:$0xff] }
 0x4d6   : > { %2454 = vst.msk [vmem:[#allocation3 + $0xd0] sm:$0xff] %vm2351_vm15, %v2445_v43  ;;  %v2591_v52 = vpop.permute.xlu2 %2590 }
 0x4d7   : > { %2390 = vst.msk [vmem:[#allocation3 + $0x50] sm:$0xff] %vm2351_vm15, %v2381_v1  ;;  %v2638_v55 = vld [vmem:[#allocation3 + $0xf0] sm:$0xff] }
 0x4d8   : > { %2599 = vst.msk [vmem:[#allocation3 + $0x1f8] sm:$0xff] %vm2351_vm15, %v2591_v52  ;;  %v2617_v52 = vld [vmem:[#allocation3 + $0x48] sm:$0xff] }
 0x4dd   : > { %v2365_v44 = vpop.permute.xlu1 %2364  ;;  %v2557_v24 = vpop.permute.xlu0 %2556  ;;  %v2634_v51 = vld [vmem:[#allocation3 + $0xd0] sm:$0xff] }
 0x4de   : > { %2374 = vst.msk [vmem:[#allocation3 + $0x30] sm:$0xff] %vm2351_vm15, %v2365_v44  ;;  %v2511_v48 = vpop.permute.xlu2 %2510  ;;  %v2618_v47 = vld [vmem:[#allocation3 + $0x50] sm:$0xff]  ;;  %v2633_v44 = vld [vmem:[#allocation3 + $0xc8] sm:$0xff] }
 0x4df   : > { %2566 = vst.msk [vmem:[#allocation3 + $0x1b0] sm:$0xff] %vm2351_vm15, %v2557_v24  ;;  %v2671_v60 = vld [vmem:[#allocation3 + $0x1f8] sm:$0xff]  ;;  %v2645_v24 = vld [vmem:[#allocation3 + $0x128] sm:$0xff] }
 0x4e0   : > { %2519 = vst.msk [vmem:[#allocation3 + $0x158] sm:$0xff] %vm2351_vm15, %v2511_v48  ;;  %v2703_v59 = vpack.c.bf16 %v2671_v60, %v2670_v42  ;;  %v2616_v48 = vld [vmem:[#allocation3 + $0x40] sm:$0xff]  ;;  %v2690_v22 = vpack.c.bf16 %v2645_v24, %v2644_v6  ;;  %v3411_v6 = vld [vmem:[%s5389_s6 + $0x2c] sm:$0xf0] }
 0x4e1   : > { %v2632_v42 = vld [vmem:[#allocation3 + $0xc0] sm:$0xff]  ;;  %v2676_v60 = vpack.c.bf16 %v2617_v52, %v2616_v48 }
 0x4e2   : > { %2825 = vmatpush.bf16.msrb.mxu3 %v2703_v59  ;;  %v2684_v59 = vpack.c.bf16 %v2633_v44, %v2632_v42  ;;  %v3340_v42 = vld [vmem:[%s5389_s6 + $0x28] sm:$0xf] }
 0x4e5   : > { %v2413_v49 = vpop.permute.xlu1 %2412  ;;  %v2477_v25 = vpop.permute.xlu0 %2476 }
 0x4e6   : > { %2826 = vmatpush.bf16.msrb.mxu3 %v2702_v37  ;;  %2422 = vst.msk [vmem:[#allocation3 + $0x90] sm:$0xff] %vm2351_vm15, %v2413_v49  ;;  %v2447_v63 = vpop.permute.xlu2 %2446 }
 0x4e7   : > { %2486 = vst.msk [vmem:[#allocation3 + $0x110] sm:$0xff] %vm2351_vm15, %v2477_v25  ;;  %v2651_v0 = vld [vmem:[#allocation3 + $0x158] sm:$0xff] }
 0x4e8   : > { %2455 = vst.msk [vmem:[#allocation3 + $0xd8] sm:$0xff] %vm2351_vm15, %v2447_v63  ;;  %v2693_v18 = vpack.c.bf16 %v2651_v0, %v2650_v4  ;;  %v2630_v63 = vld [vmem:[#allocation3 + $0xb0] sm:$0xff]  ;;  %v2673_v4 = vpack.c.bf16 %v2611_v9, %v2610_v19 }
 0x4e9   : > { %v2658_v0 = vld [vmem:[#allocation3 + $0x190] sm:$0xff] }
 0x4ed   : > { %v2399_v53 = vpop.permute.xlu0 %2398  ;;  %v2527_v26 = vpop.permute.xlu1 %2526 }
 0x4ee   : > { %v2367_v39 = vpop.permute.xlu2 %2366  ;;  %2407 = vst.msk [vmem:[#allocation3 + $0x78] sm:$0xff] %vm2351_vm15, %v2399_v53 }
 0x4ef   : > { %2375 = vst.msk [vmem:[#allocation3 + $0x38] sm:$0xff] %vm2351_vm15, %v2367_v39  ;;  %v2635_v2 = vld [vmem:[#allocation3 + $0xd8] sm:$0xff]  ;;  %v2662_v39 = vld [vmem:[#allocation3 + $0x1b0] sm:$0xff] }
 0x4f0   : > { %2535 = vst.msk [vmem:[#allocation3 + $0x178] sm:$0xff] %vm2351_vm15, %v2527_v26  ;;  %v2685_v1 = vpack.c.bf16 %v2635_v2, %v2634_v51  ;;  %v2656_v2 = vld [vmem:[#allocation3 + $0x180] sm:$0xff] }
 0x4f1   : > { %v3405_v51 = vld [vmem:[%s5389_s6 + $0x4] sm:$0xf] }
 0x4f5   : > { %v2575_v38 = vpop.permute.xlu0 %2574  ;;  %v2463_v20 = vpop.permute.xlu1 %2462  ;;  %v2623_v3 = vld [vmem:[#allocation3 + $0x78] sm:$0xff] }
 0x4f6   : > { %v2415_v30 = vpop.permute.xlu2 %2414  ;;  %2583 = vst.msk [vmem:[#allocation3 + $0x1d8] sm:$0xff] %vm2351_vm15, %v2575_v38  ;;  %v2679_v58 = vpack.c.bf16 %v2623_v3, %v2622_v7  ;;  %v2615_v25 = vld [vmem:[#allocation3 + $0x38] sm:$0xff] }
 0x4f7   : > { %2423 = vst.msk [vmem:[#allocation3 + $0x98] sm:$0xff] %vm2351_vm15, %v2415_v30  ;;  %v2655_v23 = vld [vmem:[#allocation3 + $0x178] sm:$0xff]  ;;  %v2661_v30 = vld [vmem:[#allocation3 + $0x1a8] sm:$0xff] }
 0x4f8   : > { %2471 = vst.msk [vmem:[#allocation3 + $0xf8] sm:$0xff] %vm2351_vm15, %v2463_v20  ;;  %2768 = vmatpush.bf16.msrb.mxu0 %v2679_v58  ;;  %v2695_v29 = vpack.c.bf16 %v2655_v23, %v2654_v35  ;;  %v2614_v20 = vld [vmem:[#allocation3 + $0x30] sm:$0xff]  ;;  %v2613_v58 = vld [vmem:[#allocation3 + $0x28] sm:$0xff]  ;;  %v2660_v23 = vld [vmem:[#allocation3 + $0x1a0] sm:$0xff] }
 0x4f9   : > { %v2675_v3 = vpack.c.bf16 %v2615_v25, %v2614_v20  ;;  %v2629_v35 = vld [vmem:[#allocation3 + $0xa8] sm:$0xff]  ;;  %v2698_v12 = vpack.c.bf16 %v2661_v30, %v2660_v23  ;;  %v2674_v32 = vpack.c.bf16 %v2613_v58, %v2612_v10  ;;  %v3413_v23 = vld [vmem:[%s5391_s8] sm:$0xff] }
 0x4fa   : > { %2806 = vmatpush.bf16.msrb.mxu2 %v2695_v29  ;;  %v2628_v29 = vld [vmem:[#allocation3 + $0xa0] sm:$0xff]  ;;  %v3414_v30 = vld [vmem:[%s5391_s8 + $0x8] sm:$0xff] }
 0x4fc   : > { %2769 = vmatpush.bf16.msrb.mxu0 %v2678_v41  ;;  %v2682_v41 = vpack.c.bf16 %v2629_v35, %v2628_v29 }
 0x4fd   : > { %v2495_v17 = vpop.permute.xlu0 %2494  ;;  %v2383_v14 = vpop.permute.xlu1 %2382  ;;  %v2667_v31 = vld [vmem:[#allocation3 + $0x1d8] sm:$0xff] }
 0x4fe   : > { %2807 = vmatpush.bf16.msrb.mxu2 %v2694_v56  ;;  %v2411_v34 = vpop.permute.xlu2 %2410  ;;  %2503 = vst.msk [vmem:[#allocation3 + $0x138] sm:$0xff] %vm2351_vm15, %v2495_v17  ;;  %v2701_v36 = vpack.c.bf16 %v2667_v31, %v2666_v5  ;;  %v2642_v31 = vld [vmem:[#allocation3 + $0x110] sm:$0xff] }
 0x4ff   : > { %2421 = vst.msk [vmem:[#allocation3 + $0x88] sm:$0xff] %vm2351_vm15, %v2411_v34  ;;  %v2639_v15 = vld [vmem:[#allocation3 + $0xf8] sm:$0xff] }
 0x500   : > { %2391 = vst.msk [vmem:[#allocation3 + $0x58] sm:$0xff] %vm2351_vm15, %v2383_v14  ;;  %v2687_v21 = vpack.c.bf16 %v2639_v15, %v2638_v55  ;;  %2827 = vmatpush.bf16.msrb.mxu3 %v2701_v36  ;;  %v2627_v14 = vld [vmem:[#allocation3 + $0x98] sm:$0xff]  ;;  %v2626_v55 = vld [vmem:[#allocation3 + $0x90] sm:$0xff] }
 0x502   : > { %2787 = vmatpush.bf16.msrb.mxu1 %v2687_v21  ;;  %2808 = vmatpush.bf16.msrb.mxu2 %v2693_v18  ;;  %v2681_v21 = vpack.c.bf16 %v2627_v14, %v2626_v55  ;;  %v2641_v18 = vld [vmem:[#allocation3 + $0x108] sm:$0xff] }
 0x504   : > { %2828 = vmatpush.bf16.msrb.mxu3 %v2700_v33  ;;  %v2640_v33 = vld [vmem:[#allocation3 + $0x100] sm:$0xff] }
 0x505   : > { %v2431_v61 = vpop.permute.xlu0 %2430  ;;  %v2559_v50 = vpop.permute.xlu1 %2558  ;;  %v2647_v27 = vld [vmem:[#allocation3 + $0x138] sm:$0xff] }
 0x506   : > { %2788 = vmatpush.bf16.msrb.mxu1 %v2686_v40  ;;  %2809 = vmatpush.bf16.msrb.mxu2 %v2692_v62  ;;  %2439 = vst.msk [vmem:[#allocation3 + $0xb8] sm:$0xff] %vm2351_vm15, %v2431_v61  ;;  %v2691_v11 = vpack.c.bf16 %v2647_v27, %v2646_v46  ;;  %v2608_v40 = vld [vmem:[#allocation3] sm:$0xff]  ;;  %v2688_v62 = vpack.c.bf16 %v2641_v18, %v2640_v33  ;;  %v3406_v27 = vld [vmem:[%s5389_s6 + $0xc] sm:$0xf]  ;;  %v3326_v46 = vld [vmem:[%s5389_s6 + $0x18] sm:$0xf0] }
 0x507   : > { %2567 = vst.msk [vmem:[#allocation3 + $0x1b8] sm:$0xff] %vm2351_vm15, %v2559_v50  ;;  %v2619_v8 = vld [vmem:[#allocation3 + $0x58] sm:$0xff]  ;;  %v2672_v61 = vpack.c.bf16 %v2609_v45, %v2608_v40  ;;  %v3325_v50 = vor.u32 %v3408_v57, %v3324_v28  ;;  %v3329_v24 = vor.u32 %v3406_v27, %v3326_v46 }
 0x508   : > { %v2677_v43 = vpack.c.bf16 %v2619_v8, %v2618_v47  ;;  %v3317_v47 = vor.u32 %v3407_v16, %v3316_v13 }
 0x50a   : > { %2770 = vmatpush.bf16.msrb.mxu0 %v2677_v43  ;;  %2789 = vmatpush.bf16.msrb.mxu1 %v2685_v1  ;;  %v2625_v1 = vld [vmem:[#allocation3 + $0x88] sm:$0xff] }
 0x50b   : > { %2810 = vmatpush.bf16.msrb.mxu2 %v2691_v11  ;;  %v3318_v11 = vld [vmem:[%s5389_s6 + $0x10] sm:$0xf0] }
 0x50c   : > { %v3321_v48 = vor.u32 %v3405_v51, %v3318_v11 }
 0x50d   : > { %v2543_v37 = vpop.permute.xlu0 %2542  ;;  %v2479_v49 = vpop.permute.xlu1 %2478  ;;  %v2631_v53 = vld [vmem:[#allocation3 + $0xb8] sm:$0xff] }
 0x50e   : > { %2771 = vmatpush.bf16.msrb.mxu0 %v2676_v60  ;;  %2790 = vmatpush.bf16.msrb.mxu1 %v2684_v59  ;;  %2551 = vst.msk [vmem:[#allocation3 + $0x198] sm:$0xff] %vm2351_vm15, %v2543_v37  ;;  %v2683_v26 = vpack.c.bf16 %v2631_v53, %v2630_v63  ;;  %v2663_v38 = vld [vmem:[#allocation3 + $0x1b8] sm:$0xff]  ;;  %v3332_v59 = vld [vmem:[%s5389_s6 + $0x20] sm:$0xf]  ;;  %v3410_v37 = vld [vmem:[%s5389_s6 + $0x2c] sm:$0xf] }
 0x50f   : > { %2811 = vmatpush.bf16.msrb.mxu2 %v2690_v22  ;;  %2487 = vst.msk [vmem:[#allocation3 + $0x118] sm:$0xff] %vm2351_vm15, %v2479_v49  ;;  %v2699_v7 = vpack.c.bf16 %v2663_v38, %v2662_v39  ;;  %v3412_v60 = vld [vmem:[%s5389_s6 + $0x34] sm:$0xf0]  ;;  %v3342_v49 = vld [vmem:[%s5389_s6 + $0x38] sm:$0xf0]  ;;  %v3333_v25 = vor.u32 %v3411_v6, %v3332_v59 }
 0x510   : > { %v3341_v22 = vor.u32 %v3412_v60, %v3340_v42  ;;  %v3409_v63 = vld [vmem:[%s5389_s6 + $0x24] sm:$0xf]  ;;  %v3334_v53 = vld [vmem:[%s5389_s6 + $0x30] sm:$0xf0]  ;;  %v2874_v38 = vld [vmem:[%s5391_s8 + $0x10] sm:$0x1] }
 0x511   : > { %2829 = vmatpush.bf16.msrb.mxu3 %v2699_v7  ;;  %v3337_v39 = vor.u32 %v3409_v63, %v3334_v53  ;;  %v2884_v20 = vunpack.c.l.b16 %v2874_v38 }
 0x512   : > { %2772 = vmatpush.bf16.msrb.mxu0 %v2675_v3  ;;  %2791 = vmatpush.bf16.msrb.mxu1 %v2683_v26  ;;  %v3345_v26 = vor.u32 %v3410_v37, %v3342_v49 }
 0x513   : > { %v2887_v7 = vpack.c.b16 %v2884_v20, %v2884_v20  ;;  %v2918_v20 = vld [vmem:[%s5392_s9] sm:$0xff] }
 0x515   : > { %2830 = vmatpush.bf16.msrb.mxu3 %v2698_v12  ;;  %v2539_v56 = vpop.permute.xlu0 %2538  ;;  %v2409_v17 = vpop.permute.xlu1 %2408  ;;  %v2659_v5 = vld [vmem:[#allocation3 + $0x198] sm:$0xff]  ;;  %v2897_v3 = vand.u32 %v2887_v7, %v5028_v54  ;;  %v2922_v7 = vld [vmem:[%s5392_s9 + $0x20] sm:$0xff] }
 0x516   : > { %2773 = vmatpush.bf16.msrb.mxu0 %v2674_v32  ;;  %2792 = vmatpush.bf16.msrb.mxu1 %v2682_v41  ;;  %2549 = vst.msk [vmem:[#allocation3 + $0x188] sm:$0xff] %vm2351_vm15, %v2539_v56  ;;  %v2643_v34 = vld [vmem:[#allocation3 + $0x118] sm:$0xff]  ;;  %v2697_v36 = vpack.c.bf16 %v2659_v5, %v2658_v0 }
 0x517   : > { %2420 = vst.msk [vmem:[#allocation3 + $0x80] sm:$0xff] %vm2351_vm15, %v2409_v17  ;;  %v2689_v15 = vpack.c.bf16 %v2643_v34, %v2642_v31 }
 0x519   : > { %2812 = vmatpush.bf16.msrb.mxu2 %v2689_v15  ;;  %2831 = vmatpush.bf16.msrb.mxu3 %v2697_v36 }
 0x51a   : > { %2774 = vmatpush.bf16.msrb.mxu0 %v2673_v4  ;;  %2793 = vmatpush.bf16.msrb.mxu1 %v2681_v21  ;;  %v2721_v4 = vpop.permute.xlu2 %2720 }
 0x51d   : > { %2813 = vmatpush.bf16.msrb.mxu2 %v2688_v62  ;;  %v2657_v8 = vld [vmem:[#allocation3 + $0x188] sm:$0xff]  ;;  %v2711_v35 = vpop.permute.xlu0 %2710  ;;  %v2716_v56 = vpop.permute.xlu1 %2715 }
 0x51e   : > { %2775 = vmatpush.bf16.msrb.mxu0 %v2672_v61  ;;  %v2624_v43 = vld [vmem:[#allocation3 + $0x80] sm:$0xff]  ;;  %v2696_v52 = vpack.c.bf16 %v2657_v8, %v2656_v2 }
 0x51f   : > { %v2680_v44 = vpack.c.bf16 %v2625_v1, %v2624_v43 }
 0x520   : > { %2814 = vmatmul.bf16.vlgmr.msrb.gmra.mxu2 %v3325_v50  ;;  %2832 = vmatpush.bf16.msrb.mxu3 %v2696_v52 }
 0x521   : > { %2776 = vmatmul.bf16.vlgmr.msrb.gmra.mxu0 %v3317_v47  ;;  %2794 = vmatpush.bf16.msrb.mxu1 %v2680_v44 }
 0x522   : > { %2904 = vmatpush.bf16.msra.mxu0 %v2897_v3 }
 0x523   : > { %2833 = vmatmul.bf16.vlgmr.msrb.gmra.mxu3 %v3329_v24 }
 0x524   : > { %2795 = vmatmul.bf16.vlgmr.msrb.gmra.mxu1 %v3321_v48 }
 0x525   : > { %3415 = vmatpush.bf16.msra.mxu1 %v2897_v3  ;;  %v2726_v50 = vpop.permute.xlu0 %2725  ;;  %v2919_v3 = vld [vmem:[%s5392_s9 + $0x8] sm:$0xff] }
 0x526   : > { %2905 = vmatpush.bf16.msra.mxu0 %v3414_v30 }
 0x529   : > { %3416 = vmatpush.bf16.msra.mxu1 %v3414_v30 }
 0x52a   : > { %2906 = vmatpush.bf16.msra.mxu0 %v3413_v23 }
 0x52d   : > { %3417 = vmatpush.bf16.msra.mxu1 %v3413_v23  ;;  %v2931_v23 = vld [vmem:[%s5392_s9 + $0x68] sm:$0xff] }
 0x530   : > { %2819 = vmatmul.bf16.gmra.mxu2 %v3341_v22 }
 0x531   : > { %2781 = vmatmul.bf16.gmra.mxu0 %v3333_v25 }
 0x533   : > { %2838 = vmatmul.bf16.gmra.mxu3 %v3345_v26 }
 0x534   : > { %2800 = vmatmul.bf16.gmra.mxu1 %v3337_v39 }
 0x59e   : > { %v2777_v58 = vpop.f32.mrf.mxu0 }
 0x59f   : > { %v2778_v10 = vadd.f32 %v2777_v58, %v2711_v35  ;;  %v2923_v58 = vld [vmem:[%s5392_s9 + $0x28] sm:$0xff] }
 0x5a0   : > { %v2927_v35 = vld [vmem:[%s5392_s9 + $0x48] sm:$0xff] }
 0x5a1   : > { %v2796_v29 = vpop.f32.mrf.mxu1 }
 0x5a2   : > { %v2797_v12 = vadd.f32 %v2796_v29, %v2778_v10  ;;  %v2926_v10 = vld [vmem:[%s5392_s9 + $0x40] sm:$0xff] }
 0x5a3   : > { %v2815_v54 = vpop.f32.mrf.mxu2  ;;  %v2930_v29 = vld [vmem:[%s5392_s9 + $0x60] sm:$0xff] }
 0x5a4   : > { %v2816_v32 = vadd.f32 %v2815_v54, %v2797_v12  ;;  %v2920_v12 = vld [vmem:[%s5392_s9 + $0x10] sm:$0xff] }
 0x5a6   : > { %v2779_v41 = vpop.f32.mrf.mxu0  ;;  %v2834_v9 = vpop.f32.mrf.mxu3 }
 0x5a7   : > { %v2835_v17 = vadd.f32 %v2834_v9, %v2816_v32  ;;  %v2780_v14 = vadd.f32 %v2779_v41, %v2716_v56  ;;  %v2924_v32 = vld [vmem:[%s5392_s9 + $0x30] sm:$0xff] }
 0x5a8   : > { %v2928_v41 = vld [vmem:[%s5392_s9 + $0x50] sm:$0xff] }
 0x5a9   : > { %v2848_v0 = vmin.f32 %v2835_v17, 0.0  ;;  %v2798_v5 = vpop.f32.mrf.mxu1  ;;  %vm2844_vm0 = vcmp.gt.f32.partialorder %v2835_v17, 0.0  ;;  %v2932_v9 = vld [vmem:[%s5392_s9 + $0x70] sm:$0xff] }
 0x5aa   : > { %v2799_v31 = vadd.f32 %v2798_v5, %v2780_v14 }
 0x5ab   : > { %v2817_v34 = vpop.f32.mrf.mxu2  ;;  %v2852_v36 = vmul.f32 1.442695, %v2848_v0 }
 0x5ac   : > { %v2818_v19 = vadd.f32 %v2817_v34, %v2799_v31 }
 0x5ad   : > { %3919 = vpow2.f32 %v2852_v36 }
 0x5ae   : > { %v2782_v55 = vpop.f32.mrf.mxu0  ;;  %v2836_v15 = vpop.f32.mrf.mxu3 }
 0x5af   : > { %v2837_v21 = vadd.f32 %v2836_v15, %v2818_v19  ;;  %v2783_v18 = vadd.f32 %v2782_v55, %v2721_v4 }
 0x5b1   : > { %v2849_v45 = vmin.f32 %v2837_v21, 0.0  ;;  %v2801_v28 = vpop.f32.mrf.mxu1  ;;  %vm2845_vm1 = vcmp.gt.f32.partialorder %v2837_v21, 0.0 }
 0x5b2   : > { %v2802_v57 = vadd.f32 %v2801_v28, %v2783_v18 }
 0x5b3   : > { %v2854_v33 = vmul.f32 1.442695, %v2849_v45  ;;  %v2820_v13 = vpop.f32.mrf.mxu2  ;;  %v3920_v61 = vpop.eup %3919 }
 0x5b4   : > { %v2821_v16 = vadd.f32 %v2820_v13, %v2802_v57  ;;  %v3346_v8 = vadd.f32 -1.0, %v3920_v61  ;;  %v2921_v57 = vld [vmem:[%s5392_s9 + $0x18] sm:$0xff] }
 0x5b5   : > { %3921 = vpow2.f32 %v2854_v33  ;;  %v2925_v33 = vld [vmem:[%s5392_s9 + $0x38] sm:$0xff] }
 0x5b6   : > { %v2784_v40 = vpop.f32.mrf.mxu0  ;;  %v2839_v62 = vpop.f32.mrf.mxu3  ;;  %v2864_v24 = vsel %vm2844_vm0, %v2835_v17, %v3346_v8  ;;  %v2929_v61 = vld [vmem:[%s5392_s9 + $0x58] sm:$0xff] }
 0x5b7   : > { %v2840_v2 = vadd.f32 %v2839_v62, %v2821_v16  ;;  %v2785_v27 = vadd.f32 %v2784_v40, %v2726_v50  ;;  %v2933_v50 = vld [vmem:[%s5392_s9 + $0x78] sm:$0xff] }
 0x5b9   : > { %v2850_v46 = vmin.f32 %v2840_v2, 0.0  ;;  %v2803_v47 = vpop.f32.mrf.mxu1  ;;  %vm2846_vm2 = vcmp.gt.f32.partialorder %v2840_v2, 0.0 }
 0x5ba   : > { %v2804_v51 = vadd.f32 %v2803_v47, %v2785_v27 }
 0x5bb   : > { %v3922_v11 = vpop.eup %3921  ;;  %v2822_v43 = vpop.f32.mrf.mxu2  ;;  %v2856_v52 = vmul.f32 1.442695, %v2850_v46 }
 0x5bc   : > { %v3347_v1 = vadd.f32 -1.0, %v3922_v11  ;;  %v2823_v44 = vadd.f32 %v2822_v43, %v2804_v51 }
 0x5bd   : > { %3923 = vpow2.f32 %v2856_v52 }
 0x5be   : > { %v2865_v48 = vsel %vm2845_vm1, %v2837_v21, %v3347_v1  ;;  %v2841_v42 = vpop.f32.mrf.mxu3 }
 0x5bf   : > { %v2868_v60 = vpack.c.bf16 %v2865_v48, %v2864_v24  ;;  %v2842_v59 = vadd.f32 %v2841_v42, %v2823_v44 }
 0x5c1   : > { %v2851_v6 = vmin.f32 %v2842_v59, 0.0  ;;  %3358 = vmatmul.msk.bf16.vlgmr.msra.gmra.mxu0 %vm2351_vm15, %v2868_v60  ;;  %vm2847_vm3 = vcmp.gt.f32.partialorder %v2842_v59, 0.0 }
 0x5c3   : > { %v2858_v22 = vmul.f32 1.442695, %v2851_v6  ;;  %v3924_v37 = vpop.eup %3923 }
 0x5c4   : > { %v3348_v49 = vadd.f32 -1.0, %v3924_v37 }
 0x5c5   : > { %3925 = vpow2.f32 %v2858_v22 }
 0x5c6   : > { %v2866_v53 = vsel %vm2846_vm2, %v2840_v2, %v3348_v49 }
 0x5cb   : > { %v3926_v25 = vpop.eup %3925 }
 0x5cc   : > { %v3349_v63 = vadd.f32 -1.0, %v3926_v25 }
 0x5ce   : > { %v2867_v26 = vsel %vm2847_vm3, %v2842_v59, %v3349_v63 }
 0x5cf   : > { %v2869_v39 = vpack.c.bf16 %v2867_v26, %v2866_v53 }
 0x5d1   : > { %3359 = vmatmul.msk.bf16.vlgmr.msra.gmra.mxu1 %vm2351_vm15, %v2869_v39 }
 0x63e   : > { %v2908_v38 = vpop.f32.mrf.mxu0 }
 0x63f   : > { %v2934_v5 = vmul.f32 %v2918_v20, %v2908_v38  ;;  %v2938_v31 = vmul.f32 %v2922_v7, %v2908_v38  ;;  %v2942_v34 = vmul.f32 %v2926_v10, %v2908_v38  ;;  %v2946_v36 = vmul.f32 %v2930_v29, %v2908_v38 }
 0x641   : > { %v2951_v13 = vsel %vm2950_vm4, %v2934_v5, 0.0  ;;  %v2964_v16 = vsel %vm2950_vm4, %v2938_v31, 0.0  ;;  %v2977_v40 = vsel %vm2950_vm4, %v2942_v34, 0.0  ;;  %v2990_v62 = vsel %vm2950_vm4, %v2946_v36, 0.0 }
 0x646   : > { %v2910_v30 = vpop.f32.mrf.mxu0 }
 0x647   : > { %v2935_v56 = vmul.f32 %v2919_v3, %v2910_v30  ;;  %v2939_v17 = vmul.f32 %v2923_v58, %v2910_v30  ;;  %v2943_v14 = vmul.f32 %v2927_v35, %v2910_v30  ;;  %v2947_v0 = vmul.f32 %v2931_v23, %v2910_v30 }
 0x649   : > { %v2952_v21 = vsel %vm2950_vm4, %v2935_v56, 0.0  ;;  %v2965_v18 = vsel %vm2950_vm4, %v2939_v17, 0.0  ;;  %v2978_v45 = vsel %vm2950_vm4, %v2943_v14, 0.0  ;;  %v2991_v28 = vsel %vm2950_vm4, %v2947_v0, 0.0 }
 0x64a   : > { %v2953_v8 = vadd.f32 %v2952_v21, %v2951_v13  ;;  %v2966_v51 = vadd.f32 %v2965_v18, %v2964_v16  ;;  %v2979_v11 = vadd.f32 %v2978_v45, %v2977_v40  ;;  %v2992_v43 = vadd.f32 %v2991_v28, %v2990_v62  ;;  %v3018_v18 = vld [vmem:[%s5393_s10] sm:$0xf] }
 0x64e   : > { %v2913_v54 = vpop.f32.mrf.mxu1 }
 0x64f   : > { %v2936_v19 = vmul.f32 %v2920_v12, %v2913_v54  ;;  %v2940_v55 = vmul.f32 %v2924_v32, %v2913_v54  ;;  %v2944_v15 = vmul.f32 %v2928_v41, %v2913_v54  ;;  %v2948_v4 = vmul.f32 %v2932_v9, %v2913_v54 }
 0x651   : > { %v2954_v2 = vsel %vm2950_vm4, %v2936_v19, 0.0  ;;  %v2967_v27 = vsel %vm2950_vm4, %v2940_v55, 0.0  ;;  %v2980_v46 = vsel %vm2950_vm4, %v2944_v15, 0.0  ;;  %v2993_v47 = vsel %vm2950_vm4, %v2948_v4, 0.0 }
 0x652   : > { %v2955_v42 = vadd.f32 %v2954_v2, %v2953_v8  ;;  %v2968_v60 = vadd.f32 %v2967_v27, %v2966_v51  ;;  %v2981_v59 = vadd.f32 %v2980_v46, %v2979_v11  ;;  %v2994_v6 = vadd.f32 %v2993_v47, %v2992_v43 }
 0x656   : > { %v2915_v1 = vpop.f32.mrf.mxu1 }
 0x657   : > { %v2937_v52 = vmul.f32 %v2921_v57, %v2915_v1  ;;  %v2941_v44 = vmul.f32 %v2925_v33, %v2915_v1  ;;  %v2945_v24 = vmul.f32 %v2929_v61, %v2915_v1  ;;  %v2949_v48 = vmul.f32 %v2933_v50, %v2915_v1 }
 0x658   : > { %v3024_v57 = vlaneseq }
 0x659   : > { %v2956_v22 = vsel %vm2950_vm4, %v2937_v52, 0.0  ;;  %v2969_v37 = vsel %vm2950_vm4, %v2941_v44, 0.0  ;;  %v2982_v49 = vsel %vm2950_vm4, %v2945_v24, 0.0  ;;  %v2995_v25 = vsel %vm2950_vm4, %v2949_v48, 0.0 }
 0x65a   : > { %v2957_v63 = vadd.f32 %v2956_v22, %v2955_v42  ;;  %v2970_v53 = vadd.f32 %v2969_v37, %v2968_v60  ;;  %v2983_v26 = vadd.f32 %v2982_v49, %v2981_v59  ;;  %v2996_v39 = vadd.f32 %v2995_v25, %v2994_v6 }
 0x65b   : > { %v3025_v33 = vand.u32 127, %v3024_v57 }
 0x65c   : > { %v2958_v38 = vrot.slane %v2957_v63, 4  ;;  %v2971_v20 = vrot.slane %v2970_v53, 4  ;;  %v2984_v7 = vrot.slane %v2983_v26, 4  ;;  %v2997_v3 = vrot.slane %v2996_v39, 4 }
 0x65e   : > { %v2959_v30 = vadd.f32 %v2958_v38, %v2957_v63  ;;  %v2972_v58 = vadd.f32 %v2971_v20, %v2970_v53  ;;  %v2985_v35 = vadd.f32 %v2984_v7, %v2983_v26  ;;  %v2998_v23 = vadd.f32 %v2997_v3, %v2996_v39 }
 0x660   : > { %v2960_v10 = vrot.slane %v2959_v30, 2  ;;  %v2973_v29 = vrot.slane %v2972_v58, 2  ;;  %v2986_v12 = vrot.slane %v2985_v35, 2  ;;  %v2999_v54 = vrot.slane %v2998_v23, 2 }
 0x662   : > { %v2961_v32 = vadd.f32 %v2960_v10, %v2959_v30  ;;  %v2974_v41 = vadd.f32 %v2973_v29, %v2972_v58  ;;  %v2987_v9 = vadd.f32 %v2986_v12, %v2985_v35  ;;  %v3000_v56 = vadd.f32 %v2999_v54, %v2998_v23 }
 0x664   : > { %v2962_v17 = vrot.slane %v2961_v32, 1  ;;  %v2975_v14 = vrot.slane %v2974_v41, 1  ;;  %v2988_v0 = vrot.slane %v2987_v9, 1  ;;  %v3001_v5 = vrot.slane %v3000_v56, 1 }
 0x666   : > { %v2963_v31 = vadd.f32 %v2962_v17, %v2961_v32  ;;  %v2976_v34 = vadd.f32 %v2975_v14, %v2974_v41  ;;  %v2989_v36 = vadd.f32 %v2988_v0, %v2987_v9  ;;  %v3002_v19 = vadd.f32 %v3001_v5, %v3000_v56 }
 0x668   : > { %v3008_v55 = vsel %vm3007_vm5, %v2976_v34, %v2963_v31 }
 0x669   : > { %v3010_v15 = vsel %vm3009_vm6, %v2989_v36, %v3008_v55 }
 0x66a   : > { %v3012_v4 = vsel %vm3011_vm7, %v3002_v19, %v3010_v15 }
 0x66b   : > { %v3015_v21 = vsel %vm3014_vm8, %v3012_v4, 0.0 }
 0x66c   : > { %3016 = vadd.xlane.f32.xlu1 %v3015_v21 }
 0x6df   : > { %v3017_v45 = vpop.xlane.xlu1 %3016 }
 0x6e0   : > { %v3019_v28 = vadd.f32 %v3018_v18, %v3017_v45 }
 0x6e2   : > { %3022 = vperm.xlu2 %3838, %v3019_v28  }
 0x73c   : > { %v3023_v13 = vpop.permute.xlu2 %3022 }
 0x73d   : > { %v3026_v16 = vperm.slane %v3023_v13, %v3025_v33 }
 0x73f   : > { %3029 = vst.msk [vmem:[%s378_s29] sm:$0x1] %vm3028_vm9, %v3026_v16 }
 0x740   : > { %3954 = shalt.err (!%p3951_p3)
}
 0x741   : > { %3418 = dma.vmem_to_hbm [thread:$0]  (%p4153_p5), %s3042_s12, 16, %s3044_s16, %s3031_s13  }
 0x742 PF: > { %p3424_p4 = scmp.ge.s32.totalorder %s3989_s20, 2  ;;  %s3055_s14 = sand.u32 1, %s3977_s17  }
 0x743   : > { %s3056_s25 = scalar_lea.sflag [#allocation5], %s3055_s14 }
 0x744   : > { %p3421_p7 = pnand %p3424_p4, %p4157_p6 }
 0x746   : > { %p3422_p8 = pneg %p3421_p7 }
 0x748   : > { %3972 = dma.done.wait (%p3422_p8), %s3056_s25, 16  }
 0x749   : > { %3974 = vsyncadd (%p3422_p8), %s3056_s25, 4294967280  ;;  %p21_p9 = scmp.ge.s32.totalorder %s4140_s23, 4   ;;  %s5457_s17 = smov %s3981_s18 }
 0x74a   : > { %s5458_s18 = smov %s3985_s19  ;;  %s5459_s19 = smov %s4151_s26 }
 0x74b   : > { %s5460_s20 = smov %s4140_s23  ;;  %23 = sbr.rel (!%p21_p9) target bundleno = 9 (0x9), region = 99 }
 0x750   :  { %3061 = vsyncpa [#allocation5], 1 }
 0x751   :  { %3063 = vsyncpa [#allocation5 + $0x1], 1 }

</bundles_post_ra>
